<compile_context>
chip_gen: v6e
topology: v6e:2x2x1
jax: 0.10.0
libtpu: 0.0.40
codegen_flags: <defaults>
</compile_context>

<pallas_src>
import functools

import jax
import jax.numpy as jnp
from jax.experimental import pallas as pl
from jax.experimental.pallas import tpu as pltpu

_VMEM_LIMIT = 48 * 1024 * 1024   # explicit scoped-VMEM budget (fits v7x's 64 MiB)


# ---------------------------- Pallas kernels ----------------------------

def conv_relu_pool_kernel(cols_ref, w_ref, b_ref, o_ref):
    """Fused conv(stride 1, same) + bias + ReLU + 2x2/2 maxpool for one M-tile.

    cols_ref: (4, TM, K) bf16  im2col slabs, one per pool parity (ph, pw)
    w_ref:    (K, Cout)  bf16  weight, K = KH*KW*Cin (tap-major, then cin)
    b_ref:    (1, Cout)  f32
    o_ref:    (TM, Cout) bf16  pooled rows in NHWC (n, ho, wo) order
    """
    w = w_ref[...]
    b = b_ref[...]

    def branch(p):
        y = jnp.dot(cols_ref[p], w, preferred_element_type=jnp.float32)
        return jnp.maximum(y + b, 0.0)

    pooled = jnp.maximum(jnp.maximum(branch(0), branch(1)),
                         jnp.maximum(branch(2), branch(3)))
    o_ref[...] = pooled.astype(o_ref.dtype)


def conv_relu_kernel(cols_ref, w_ref, b_ref, o_ref):
    """Fused conv + bias + ReLU (no pool) for one M-tile."""
    y = jnp.dot(cols_ref[...], w_ref[...], preferred_element_type=jnp.float32)
    o_ref[...] = jnp.maximum(y + b_ref[...], 0.0).astype(o_ref.dtype)


def dense_heads_kernel(x_ref, w1_ref, b1_ref, wh_ref, bh_ref, o_ref, acc_ref):
    """K-tiled dense trunk (->1024, ReLU) + fused share/style heads (ReLU).

    Grid axis 0 iterates K-chunks of the (F, 1024) trunk weight (reduction).
    x_ref:  (N, TK) bf16      w1_ref: (TK, 1024) bf16    b1_ref: (1, 1024) f32
    wh_ref: (1024, HP) bf16   bh_ref: (1, HP) f32        o_ref:  (N, HP)   f32
    acc_ref:(N, 1024) f32 VMEM accumulator
    HP = 2*latent padded up to a multiple of 128 (lane-dense store).
    """
    k = pl.program_id(0)

    @pl.when(k == 0)
    def _():
        acc_ref[...] = jnp.zeros_like(acc_ref)

    acc_ref[...] += jnp.dot(x_ref[...], w1_ref[...],
                            preferred_element_type=jnp.float32)

    @pl.when(k == pl.num_programs(0) - 1)
    def _():
        h = jnp.maximum(acc_ref[...] + b1_ref[...], 0.0).astype(jnp.bfloat16)
        z = jnp.dot(h, wh_ref[...], preferred_element_type=jnp.float32)
        o_ref[...] = jnp.maximum(z + bh_ref[...], 0.0)


# ---------------------------- wrappers (glue) ----------------------------

def _pick_tile(m, cap, step=8):
    """Largest multiple-of-`step` divisor of m that is <= cap (m itself if m <= cap)."""
    if m <= cap:
        return m
    t = (cap // step) * step
    while t >= step:
        if m % t == 0:
            return t
        t -= step
    return m


def _im2col(x_nhwc, ksize, pad):
    """(N,H,W,C) -> (N*H*W, ksize*ksize*C); column order (kh, kw, cin)."""
    N, H, W, C = x_nhwc.shape
    xp = jnp.pad(x_nhwc, ((0, 0), (pad, pad), (pad, pad), (0, 0)))
    taps = [xp[:, i:i + H, j:j + W, :] for i in range(ksize) for j in range(ksize)]
    return jnp.concatenate(taps, axis=-1).reshape(N * H * W, ksize * ksize * C)


def _im2col_pooled(x_nhwc, ksize, pad):
    """im2col split by 2x2-pool parity.

    Returns (4, N*(H//2)*(W//2), ksize*ksize*C).  Axis 0 enumerates (ph, pw) in
    {0,1}^2: parity p covers conv-output positions (2*ho+ph, 2*wo+pw).  The
    kernel max-reduces over axis 0 -- exactly the 2x2/2 max pool -- and the
    surviving rows are already in NHWC (n, ho, wo) order.
    """
    N, H, W, C = x_nhwc.shape
    xp = jnp.pad(x_nhwc, ((0, 0), (pad, pad), (pad, pad), (0, 0)))
    Ho, Wo = H // 2, W // 2
    K = ksize * ksize * C
    slabs = []
    for ph in range(2):
        for pw in range(2):
            taps = [xp[:, i:i + H, j:j + W, :][:, ph::2, pw::2, :]
                    for i in range(ksize) for j in range(ksize)]
            slabs.append(jnp.concatenate(taps, axis=-1).reshape(N * Ho * Wo, K))
    return jnp.stack(slabs, axis=0)


def conv2d_relu_pool(x_nhwc, w, b, ksize, pad, m_tile=512):
    """conv(stride1, same) + ReLU + 2x2/2 maxpool, fused in one Pallas kernel."""
    N, H, W, Cin = x_nhwc.shape
    K, Cout = w.shape
    assert K == ksize * ksize * Cin and H % 2 == 0 and W % 2 == 0
    cols = _im2col_pooled(x_nhwc, ksize, pad)          # (4, M4, K) bf16
    M4 = cols.shape[1]
    tm = _pick_tile(M4, m_tile)
    out = pl.pallas_call(
        conv_relu_pool_kernel,
        out_shape=jax.ShapeDtypeStruct((M4, Cout), jnp.bfloat16),
        grid=(M4 // tm,),
        in_specs=[
            pl.BlockSpec((4, tm, K), lambda m: (0, m, 0)),
            pl.BlockSpec((K, Cout), lambda m: (0, 0)),
            pl.BlockSpec((1, Cout), lambda m: (0, 0)),
        ],
        out_specs=pl.BlockSpec((tm, Cout), lambda m: (m, 0)),
        compiler_params=pltpu.CompilerParams(
            dimension_semantics=("parallel",),
            vmem_limit_bytes=_VMEM_LIMIT),
    )(cols, w, b)
    return out.reshape(N, H // 2, W // 2, Cout)


def conv2d_relu(x_nhwc, w, b, ksize, pad, m_tile=512):
    N, H, W, Cin = x_nhwc.shape
    K, Cout = w.shape
    assert K == ksize * ksize * Cin
    cols = _im2col(x_nhwc, ksize, pad)                 # (M, K) bf16
    M = N * H * W
    tm = _pick_tile(M, m_tile)
    out = pl.pallas_call(
        conv_relu_kernel,
        out_shape=jax.ShapeDtypeStruct((M, Cout), jnp.bfloat16),
        grid=(M // tm,),
        in_specs=[
            pl.BlockSpec((tm, K), lambda m: (m, 0)),
            pl.BlockSpec((K, Cout), lambda m: (0, 0)),
            pl.BlockSpec((1, Cout), lambda m: (0, 0)),
        ],
        out_specs=pl.BlockSpec((tm, Cout), lambda m: (m, 0)),
        compiler_params=pltpu.CompilerParams(
            dimension_semantics=("parallel",),
            vmem_limit_bytes=_VMEM_LIMIT),
    )(cols, w, b)
    return out.reshape(N, H, W, Cout)


def dense_heads(feat, w1, b1, wh, bh, latent_dim, k_tile=512):
    N, F = feat.shape
    Hn = w1.shape[1]
    HP = wh.shape[1]
    tk = _pick_tile(F, k_tile, step=128)
    out = pl.pallas_call(
        dense_heads_kernel,
        out_shape=jax.ShapeDtypeStruct((N, HP), jnp.float32),
        grid=(F // tk,),
        in_specs=[
            pl.BlockSpec((N, tk), lambda k: (0, k)),
            pl.BlockSpec((tk, Hn), lambda k: (k, 0)),
            pl.BlockSpec((1, Hn), lambda k: (0, 0)),
            pl.BlockSpec((Hn, HP), lambda k: (0, 0)),
            pl.BlockSpec((1, HP), lambda k: (0, 0)),
        ],
        out_specs=pl.BlockSpec((N, HP), lambda k: (0, 0)),
        scratch_shapes=[pltpu.VMEM((N, Hn), jnp.float32)],
        compiler_params=pltpu.CompilerParams(
            dimension_semantics=("arbitrary",),
            vmem_limit_bytes=_VMEM_LIMIT),
    )(feat, w1, b1, wh, bh)
    return out[:, :latent_dim], out[:, latent_dim:2 * latent_dim]


def encoder_forward(x_nchw, params, latent_dim, nb_channels=3):
    # Mirrors Encoder.forward
    if (x_nchw.shape[1] == 1) and (nb_channels == 3):
        x_nchw = jnp.tile(x_nchw, (1, 3, 1, 1))
    x = jnp.transpose(x_nchw, (0, 2, 3, 1)).astype(jnp.bfloat16)   # NCHW -> NHWC once

    x = conv2d_relu_pool(x, params["w_c1"], params["b_c1"], ksize=5, pad=2)
    x = conv2d_relu_pool(x, params["w_c2"], params["b_c2"], ksize=5, pad=2)
    x = conv2d_relu(x, params["w_c3"], params["b_c3"], ksize=3, pad=1)

    # NHWC flatten; w_d rows were permuted at init to match torch's NCHW view.
    feat = x.reshape(x.shape[0], -1)
    return dense_heads(feat, params["w_d"], params["b_d"],
                       params["w_heads"], params["b_heads"], latent_dim)


def init_params(key, latent_dim, img_size, nb_channels=3):
    """Deterministic synthetic parameters, generated in torch layouts and then
    converted to the kernel layouts (documents the exact state_dict mapping)."""
    C, H, W = img_size
    assert C == nb_channels and H % 4 == 0 and W % 4 == 0
    ks = jax.random.split(key, 12)
    scale = 0.05

    def nrm(k, shape):
        return jax.random.normal(k, shape, jnp.float32) * scale

    def conv_wb(kw, kb, cout, cin, ksz):
        wt = nrm(kw, (cout, cin, ksz, ksz))                  # torch Conv2d weight
        w = jnp.transpose(wt, (2, 3, 1, 0)).reshape(ksz * ksz * cin, cout)
        return w.astype(jnp.bfloat16), nrm(kb, (1, cout))

    w_c1, b_c1 = conv_wb(ks[0], ks[1], 32, nb_channels, 5)
    w_c2, b_c2 = conv_wb(ks[2], ks[3], 64, 32, 5)
    w_c3, b_c3 = conv_wb(ks[4], ks[5], 128, 64, 3)

    H3, W3 = H // 4, W // 4
    feat_dim = 128 * H3 * W3

    # Dense trunk: torch Linear weight is (1024, feat_dim) with inputs flattened
    # NCHW; permute rows once to NHWC flatten order so the forward pass needs no
    # activation transpose before the dense layer.
    w_d_t = nrm(ks[6], (1024, feat_dim))
    w_d = (w_d_t.T.reshape(128, H3, W3, 1024)
           .transpose(1, 2, 0, 3).reshape(feat_dim, 1024).astype(jnp.bfloat16))
    b_d = nrm(ks[7], (1, 1024))

    # Heads: concat share|style along the output dim, zero-pad to 128 lanes.
    w_sh_t, b_sh = nrm(ks[8], (latent_dim, 1024)), nrm(ks[9], (latent_dim,))
    w_st_t, b_st = nrm(ks[10], (latent_dim, 1024)), nrm(ks[11], (latent_dim,))
    hp = ((2 * latent_dim + 127) // 128) * 128
    w_heads = jnp.zeros((1024, hp), jnp.float32)
    w_heads = w_heads.at[:, :latent_dim].set(w_sh_t.T)
    w_heads = w_heads.at[:, latent_dim:2 * latent_dim].set(w_st_t.T)
    b_heads = jnp.zeros((1, hp), jnp.float32)
    b_heads = b_heads.at[0, :latent_dim].set(b_sh)
    b_heads = b_heads.at[0, latent_dim:2 * latent_dim].set(b_st)

    return {
        "w_c1": w_c1, "b_c1": b_c1,
        "w_c2": w_c2, "b_c2": b_c2,
        "w_c3": w_c3, "b_c3": b_c3,
        "w_d": w_d, "b_d": b_d,
        "w_heads": w_heads.astype(jnp.bfloat16), "b_heads": b_heads,
    }


if __name__ == "__main__":
    latent_dim = 32
    img_size = (3, 16, 16)      # (C, H, W) as passed to the torch module
    batch = 2

    key = jax.random.PRNGKey(0)
    k_x, k_p = jax.random.split(key)
    x = jax.random.normal(k_x, (batch, *img_size), jnp.float32)   # NCHW like torch
    params = init_params(k_p, latent_dim, img_size, nb_channels=3)

    fwd = jax.jit(functools.partial(encoder_forward,
                                    latent_dim=latent_dim, nb_channels=3))
    z_share, z_style = fwd(x, params)
    jax.block_until_ready((z_share, z_style))

    assert z_share.shape == (batch, latent_dim)
    assert z_style.shape == (batch, latent_dim)
    assert bool(jnp.all(jnp.isfinite(z_share))) and bool(jnp.all(jnp.isfinite(z_style)))
    print("KERNEL_OK")
</pallas_src>

<mosaic_0001>
module attributes {stable_mosaic.version = 11 : i64} {
  func.func @conv_relu_pool_kernel(%arg0: i32, %arg1: memref<4x128x75xbf16, #tpu.memory_space<vmem>>, %arg2: memref<75x32xbf16, #tpu.memory_space<vmem>>, %arg3: memref<1x32xf32, #tpu.memory_space<vmem>>, %arg4: memref<128x32xbf16, #tpu.memory_space<vmem>>) attributes {dimension_semantics = [#tpu.dimension_semantics<parallel>], iteration_bounds = array<i64: 1>, scalar_prefetch = 0 : i64, scratch_operands = 0 : i64, tpu.core_type = #tpu.core_type<tc>, window_params = [{transform_indices = @transform_0, window_bounds = array<i64: 4, 128, 75>}, {pipeline_mode = #tpu.pipeline_mode<synchronous>, transform_indices = @transform_1, window_bounds = array<i64: 75, 32>}, {pipeline_mode = #tpu.pipeline_mode<synchronous>, transform_indices = @transform_2, window_bounds = array<i64: 1, 32>}, {transform_indices = @transform_3, window_bounds = array<i64: 128, 32>}]} {
    %c0 = arith.constant 0 : index
    %c0_0 = arith.constant 0 : index
    %0 = vector.load %arg2[%c0, %c0_0] : memref<75x32xbf16, #tpu.memory_space<vmem>>, vector<75x32xbf16>
    %c0_1 = arith.constant 0 : index
    %c0_2 = arith.constant 0 : index
    %1 = vector.load %arg3[%c0_1, %c0_2] : memref<1x32xf32, #tpu.memory_space<vmem>>, vector<1x32xf32>
    %c0_3 = arith.constant 0 : index
    %c0_4 = arith.constant 0 : index
    %c0_5 = arith.constant 0 : index
    %2 = vector.load %arg1[%c0_3, %c0_4, %c0_5] : memref<4x128x75xbf16, #tpu.memory_space<vmem>>, vector<1x128x75xbf16>
    %3 = vector.shape_cast %2 : vector<1x128x75xbf16> to vector<128x75xbf16>
    %cst = arith.constant dense<0.000000e+00> : vector<128x32xf32>
    %4 = tpu.matmul %3, %0, %cst {dimension_numbers = #tpu.dot_dimension_numbers<[1], [0], [0], [1], [0, 0, 1, 1], [], []>} : vector<128x75xbf16>, vector<75x32xbf16>, vector<128x32xf32> -> vector<128x32xf32>
    %5 = vector.broadcast %1 : vector<1x32xf32> to vector<128x32xf32>
    %6 = arith.addf %4, %5 : vector<128x32xf32>
    %cst_6 = arith.constant 0.000000e+00 : f32
    %7 = vector.broadcast %cst_6 : f32 to vector<128x32xf32>
    %8 = arith.maximumf %6, %7 : vector<128x32xf32>
    %c1 = arith.constant 1 : index
    %c0_7 = arith.constant 0 : index
    %c0_8 = arith.constant 0 : index
    %9 = vector.load %arg1[%c1, %c0_7, %c0_8] : memref<4x128x75xbf16, #tpu.memory_space<vmem>>, vector<1x128x75xbf16>
    %10 = vector.shape_cast %9 : vector<1x128x75xbf16> to vector<128x75xbf16>
    %cst_9 = arith.constant dense<0.000000e+00> : vector<128x32xf32>
    %11 = tpu.matmul %10, %0, %cst_9 {dimension_numbers = #tpu.dot_dimension_numbers<[1], [0], [0], [1], [0, 0, 1, 1], [], []>} : vector<128x75xbf16>, vector<75x32xbf16>, vector<128x32xf32> -> vector<128x32xf32>
    %12 = vector.broadcast %1 : vector<1x32xf32> to vector<128x32xf32>
    %13 = arith.addf %11, %12 : vector<128x32xf32>
    %cst_10 = arith.constant 0.000000e+00 : f32
    %14 = vector.broadcast %cst_10 : f32 to vector<128x32xf32>
    %15 = arith.maximumf %13, %14 : vector<128x32xf32>
    %16 = arith.maximumf %8, %15 : vector<128x32xf32>
    %c2 = arith.constant 2 : index
    %c0_11 = arith.constant 0 : index
    %c0_12 = arith.constant 0 : index
    %17 = vector.load %arg1[%c2, %c0_11, %c0_12] : memref<4x128x75xbf16, #tpu.memory_space<vmem>>, vector<1x128x75xbf16>
    %18 = vector.shape_cast %17 : vector<1x128x75xbf16> to vector<128x75xbf16>
    %cst_13 = arith.constant dense<0.000000e+00> : vector<128x32xf32>
    %19 = tpu.matmul %18, %0, %cst_13 {dimension_numbers = #tpu.dot_dimension_numbers<[1], [0], [0], [1], [0, 0, 1, 1], [], []>} : vector<128x75xbf16>, vector<75x32xbf16>, vector<128x32xf32> -> vector<128x32xf32>
    %20 = vector.broadcast %1 : vector<1x32xf32> to vector<128x32xf32>
    %21 = arith.addf %19, %20 : vector<128x32xf32>
    %cst_14 = arith.constant 0.000000e+00 : f32
    %22 = vector.broadcast %cst_14 : f32 to vector<128x32xf32>
    %23 = arith.maximumf %21, %22 : vector<128x32xf32>
    %c3 = arith.constant 3 : index
    %c0_15 = arith.constant 0 : index
    %c0_16 = arith.constant 0 : index
    %24 = vector.load %arg1[%c3, %c0_15, %c0_16] : memref<4x128x75xbf16, #tpu.memory_space<vmem>>, vector<1x128x75xbf16>
    %25 = vector.shape_cast %24 : vector<1x128x75xbf16> to vector<128x75xbf16>
    %cst_17 = arith.constant dense<0.000000e+00> : vector<128x32xf32>
    %26 = tpu.matmul %25, %0, %cst_17 {dimension_numbers = #tpu.dot_dimension_numbers<[1], [0], [0], [1], [0, 0, 1, 1], [], []>} : vector<128x75xbf16>, vector<75x32xbf16>, vector<128x32xf32> -> vector<128x32xf32>
    %27 = vector.broadcast %1 : vector<1x32xf32> to vector<128x32xf32>
    %28 = arith.addf %26, %27 : vector<128x32xf32>
    %cst_18 = arith.constant 0.000000e+00 : f32
    %29 = vector.broadcast %cst_18 : f32 to vector<128x32xf32>
    %30 = arith.maximumf %28, %29 : vector<128x32xf32>
    %31 = arith.maximumf %23, %30 : vector<128x32xf32>
    %32 = arith.maximumf %16, %31 : vector<128x32xf32>
    %33 = arith.truncf %32 : vector<128x32xf32> to vector<128x32xbf16>
    %c0_19 = arith.constant 0 : index
    %c0_20 = arith.constant 0 : index
    %34 = vector.load %arg4[%c0_19, %c0_20] : memref<128x32xbf16, #tpu.memory_space<vmem>>, vector<128x32xbf16>
    tpu.vector_store %arg4[%c0_19, %c0_20], %33 {strides = array<i32>} : memref<128x32xbf16, #tpu.memory_space<vmem>>, vector<128x32xbf16>,
    return
  }
  func.func @transform_0(%arg0: i32) -> (i32, i32, i32) {
    %c0_i32 = arith.constant 0 : i32
    %c0_i32_0 = arith.constant 0 : i32
    %c0_i32_1 = arith.constant 0 : i32
    return %c0_i32, %arg0, %c0_i32_0 : i32, i32, i32
  }
  func.func @transform_1(%arg0: i32) -> (i32, i32) {
    %c0_i32 = arith.constant 0 : i32
    %c0_i32_0 = arith.constant 0 : i32
    %c0_i32_1 = arith.constant 0 : i32
    return %c0_i32, %c0_i32_0 : i32, i32
  }
  func.func @transform_2(%arg0: i32) -> (i32, i32) {
    %c0_i32 = arith.constant 0 : i32
    %c0_i32_0 = arith.constant 0 : i32
    %c0_i32_1 = arith.constant 0 : i32
    return %c0_i32, %c0_i32_0 : i32, i32
  }
  func.func @transform_3(%arg0: i32) -> (i32, i32) {
    %c0_i32 = arith.constant 0 : i32
    %c0_i32_0 = arith.constant 0 : i32
    return %arg0, %c0_i32 : i32, i32
  }
}

module attributes {stable_mosaic.version = 11 : i64} {
  func.func @conv_relu_pool_kernel(%arg0: i32, %arg1: memref<4x32x800xbf16, #tpu.memory_space<vmem>>, %arg2: memref<800x64xbf16, #tpu.memory_space<vmem>>, %arg3: memref<1x64xf32, #tpu.memory_space<vmem>>, %arg4: memref<32x64xbf16, #tpu.memory_space<vmem>>) attributes {dimension_semantics = [#tpu.dimension_semantics<parallel>], iteration_bounds = array<i64: 1>, scalar_prefetch = 0 : i64, scratch_operands = 0 : i64, tpu.core_type = #tpu.core_type<tc>, window_params = [{transform_indices = @transform_0, window_bounds = array<i64: 4, 32, 800>}, {pipeline_mode = #tpu.pipeline_mode<synchronous>, transform_indices = @transform_1, window_bounds = array<i64: 800, 64>}, {pipeline_mode = #tpu.pipeline_mode<synchronous>, transform_indices = @transform_2, window_bounds = array<i64: 1, 64>}, {transform_indices = @transform_3, window_bounds = array<i64: 32, 64>}]} {
    %c0 = arith.constant 0 : index
    %c0_0 = arith.constant 0 : index
    %0 = vector.load %arg2[%c0, %c0_0] : memref<800x64xbf16, #tpu.memory_space<vmem>>, vector<800x64xbf16>
    %c0_1 = arith.constant 0 : index
    %c0_2 = arith.constant 0 : index
    %1 = vector.load %arg3[%c0_1, %c0_2] : memref<1x64xf32, #tpu.memory_space<vmem>>, vector<1x64xf32>
    %c0_3 = arith.constant 0 : index
    %c0_4 = arith.constant 0 : index
    %c0_5 = arith.constant 0 : index
    %2 = vector.load %arg1[%c0_3, %c0_4, %c0_5] : memref<4x32x800xbf16, #tpu.memory_space<vmem>>, vector<1x32x800xbf16>
    %3 = vector.shape_cast %2 : vector<1x32x800xbf16> to vector<32x800xbf16>
    %cst = arith.constant dense<0.000000e+00> : vector<32x64xf32>
    %4 = tpu.matmul %3, %0, %cst {dimension_numbers = #tpu.dot_dimension_numbers<[1], [0], [0], [1], [0, 0, 1, 1], [], []>} : vector<32x800xbf16>, vector<800x64xbf16>, vector<32x64xf32> -> vector<32x64xf32>
    %5 = vector.broadcast %1 : vector<1x64xf32> to vector<32x64xf32>
    %6 = arith.addf %4, %5 : vector<32x64xf32>
    %cst_6 = arith.constant 0.000000e+00 : f32
    %7 = vector.broadcast %cst_6 : f32 to vector<32x64xf32>
    %8 = arith.maximumf %6, %7 : vector<32x64xf32>
    %c1 = arith.constant 1 : index
    %c0_7 = arith.constant 0 : index
    %c0_8 = arith.constant 0 : index
    %9 = vector.load %arg1[%c1, %c0_7, %c0_8] : memref<4x32x800xbf16, #tpu.memory_space<vmem>>, vector<1x32x800xbf16>
    %10 = vector.shape_cast %9 : vector<1x32x800xbf16> to vector<32x800xbf16>
    %cst_9 = arith.constant dense<0.000000e+00> : vector<32x64xf32>
    %11 = tpu.matmul %10, %0, %cst_9 {dimension_numbers = #tpu.dot_dimension_numbers<[1], [0], [0], [1], [0, 0, 1, 1], [], []>} : vector<32x800xbf16>, vector<800x64xbf16>, vector<32x64xf32> -> vector<32x64xf32>
    %12 = vector.broadcast %1 : vector<1x64xf32> to vector<32x64xf32>
    %13 = arith.addf %11, %12 : vector<32x64xf32>
    %cst_10 = arith.constant 0.000000e+00 : f32
    %14 = vector.broadcast %cst_10 : f32 to vector<32x64xf32>
    %15 = arith.maximumf %13, %14 : vector<32x64xf32>
    %16 = arith.maximumf %8, %15 : vector<32x64xf32>
    %c2 = arith.constant 2 : index
    %c0_11 = arith.constant 0 : index
    %c0_12 = arith.constant 0 : index
    %17 = vector.load %arg1[%c2, %c0_11, %c0_12] : memref<4x32x800xbf16, #tpu.memory_space<vmem>>, vector<1x32x800xbf16>
    %18 = vector.shape_cast %17 : vector<1x32x800xbf16> to vector<32x800xbf16>
    %cst_13 = arith.constant dense<0.000000e+00> : vector<32x64xf32>
    %19 = tpu.matmul %18, %0, %cst_13 {dimension_numbers = #tpu.dot_dimension_numbers<[1], [0], [0], [1], [0, 0, 1, 1], [], []>} : vector<32x800xbf16>, vector<800x64xbf16>, vector<32x64xf32> -> vector<32x64xf32>
    %20 = vector.broadcast %1 : vector<1x64xf32> to vector<32x64xf32>
    %21 = arith.addf %19, %20 : vector<32x64xf32>
    %cst_14 = arith.constant 0.000000e+00 : f32
    %22 = vector.broadcast %cst_14 : f32 to vector<32x64xf32>
    %23 = arith.maximumf %21, %22 : vector<32x64xf32>
    %c3 = arith.constant 3 : index
    %c0_15 = arith.constant 0 : index
    %c0_16 = arith.constant 0 : index
    %24 = vector.load %arg1[%c3, %c0_15, %c0_16] : memref<4x32x800xbf16, #tpu.memory_space<vmem>>, vector<1x32x800xbf16>
    %25 = vector.shape_cast %24 : vector<1x32x800xbf16> to vector<32x800xbf16>
    %cst_17 = arith.constant dense<0.000000e+00> : vector<32x64xf32>
    %26 = tpu.matmul %25, %0, %cst_17 {dimension_numbers = #tpu.dot_dimension_numbers<[1], [0], [0], [1], [0, 0, 1, 1], [], []>} : vector<32x800xbf16>, vector<800x64xbf16>, vector<32x64xf32> -> vector<32x64xf32>
    %27 = vector.broadcast %1 : vector<1x64xf32> to vector<32x64xf32>
    %28 = arith.addf %26, %27 : vector<32x64xf32>
    %cst_18 = arith.constant 0.000000e+00 : f32
    %29 = vector.broadcast %cst_18 : f32 to vector<32x64xf32>
    %30 = arith.maximumf %28, %29 : vector<32x64xf32>
    %31 = arith.maximumf %23, %30 : vector<32x64xf32>
    %32 = arith.maximumf %16, %31 : vector<32x64xf32>
    %33 = arith.truncf %32 : vector<32x64xf32> to vector<32x64xbf16>
    %c0_19 = arith.constant 0 : index
    %c0_20 = arith.constant 0 : index
    %34 = vector.load %arg4[%c0_19, %c0_20] : memref<32x64xbf16, #tpu.memory_space<vmem>>, vector<32x64xbf16>
    tpu.vector_store %arg4[%c0_19, %c0_20], %33 {strides = array<i32>} : memref<32x64xbf16, #tpu.memory_space<vmem>>, vector<32x64xbf16>,
    return
  }
  func.func @transform_0(%arg0: i32) -> (i32, i32, i32) {
    %c0_i32 = arith.constant 0 : i32
    %c0_i32_0 = arith.constant 0 : i32
    %c0_i32_1 = arith.constant 0 : i32
    return %c0_i32, %arg0, %c0_i32_0 : i32, i32, i32
  }
  func.func @transform_1(%arg0: i32) -> (i32, i32) {
    %c0_i32 = arith.constant 0 : i32
    %c0_i32_0 = arith.constant 0 : i32
    %c0_i32_1 = arith.constant 0 : i32
    return %c0_i32, %c0_i32_0 : i32, i32
  }
  func.func @transform_2(%arg0: i32) -> (i32, i32) {
    %c0_i32 = arith.constant 0 : i32
    %c0_i32_0 = arith.constant 0 : i32
    %c0_i32_1 = arith.constant 0 : i32
    return %c0_i32, %c0_i32_0 : i32, i32
  }
  func.func @transform_3(%arg0: i32) -> (i32, i32) {
    %c0_i32 = arith.constant 0 : i32
    %c0_i32_0 = arith.constant 0 : i32
    return %arg0, %c0_i32 : i32, i32
  }
}

module attributes {stable_mosaic.version = 11 : i64} {
  func.func @conv_relu_kernel(%arg0: i32, %arg1: memref<32x576xbf16, #tpu.memory_space<vmem>>, %arg2: memref<576x128xbf16, #tpu.memory_space<vmem>>, %arg3: memref<1x128xf32, #tpu.memory_space<vmem>>, %arg4: memref<32x128xbf16, #tpu.memory_space<vmem>>) attributes {dimension_semantics = [#tpu.dimension_semantics<parallel>], iteration_bounds = array<i64: 1>, scalar_prefetch = 0 : i64, scratch_operands = 0 : i64, tpu.core_type = #tpu.core_type<tc>, window_params = [{transform_indices = @transform_0, window_bounds = array<i64: 32, 576>}, {pipeline_mode = #tpu.pipeline_mode<synchronous>, transform_indices = @transform_1, window_bounds = array<i64: 576, 128>}, {pipeline_mode = #tpu.pipeline_mode<synchronous>, transform_indices = @transform_2, window_bounds = array<i64: 1, 128>}, {transform_indices = @transform_3, window_bounds = array<i64: 32, 128>}]} {
    %c0 = arith.constant 0 : index
    %c0_0 = arith.constant 0 : index
    %0 = vector.load %arg1[%c0, %c0_0] : memref<32x576xbf16, #tpu.memory_space<vmem>>, vector<32x576xbf16>
    %c0_1 = arith.constant 0 : index
    %c0_2 = arith.constant 0 : index
    %1 = vector.load %arg2[%c0_1, %c0_2] : memref<576x128xbf16, #tpu.memory_space<vmem>>, vector<576x128xbf16>
    %cst = arith.constant dense<0.000000e+00> : vector<32x128xf32>
    %2 = tpu.matmul %0, %1, %cst {dimension_numbers = #tpu.dot_dimension_numbers<[1], [0], [0], [1], [0, 0, 1, 1], [], []>} : vector<32x576xbf16>, vector<576x128xbf16>, vector<32x128xf32> -> vector<32x128xf32>
    %c0_3 = arith.constant 0 : index
    %c0_4 = arith.constant 0 : index
    %3 = vector.load %arg3[%c0_3, %c0_4] : memref<1x128xf32, #tpu.memory_space<vmem>>, vector<1x128xf32>
    %4 = vector.broadcast %3 : vector<1x128xf32> to vector<32x128xf32>
    %5 = arith.addf %2, %4 : vector<32x128xf32>
    %cst_5 = arith.constant 0.000000e+00 : f32
    %6 = vector.broadcast %cst_5 : f32 to vector<32x128xf32>
    %7 = arith.maximumf %5, %6 : vector<32x128xf32>
    %8 = arith.truncf %7 : vector<32x128xf32> to vector<32x128xbf16>
    %c0_6 = arith.constant 0 : index
    %c0_7 = arith.constant 0 : index
    %9 = vector.load %arg4[%c0_6, %c0_7] : memref<32x128xbf16, #tpu.memory_space<vmem>>, vector<32x128xbf16>
    tpu.vector_store %arg4[%c0_6, %c0_7], %8 {strides = array<i32>} : memref<32x128xbf16, #tpu.memory_space<vmem>>, vector<32x128xbf16>,
    return
  }
  func.func @transform_0(%arg0: i32) -> (i32, i32) {
    %c0_i32 = arith.constant 0 : i32
    %c0_i32_0 = arith.constant 0 : i32
    return %arg0, %c0_i32 : i32, i32
  }
  func.func @transform_1(%arg0: i32) -> (i32, i32) {
    %c0_i32 = arith.constant 0 : i32
    %c0_i32_0 = arith.constant 0 : i32
    %c0_i32_1 = arith.constant 0 : i32
    return %c0_i32, %c0_i32_0 : i32, i32
  }
  func.func @transform_2(%arg0: i32) -> (i32, i32) {
    %c0_i32 = arith.constant 0 : i32
    %c0_i32_0 = arith.constant 0 : i32
    %c0_i32_1 = arith.constant 0 : i32
    return %c0_i32, %c0_i32_0 : i32, i32
  }
  func.func @transform_3(%arg0: i32) -> (i32, i32) {
    %c0_i32 = arith.constant 0 : i32
    %c0_i32_0 = arith.constant 0 : i32
    return %arg0, %c0_i32 : i32, i32
  }
}

module attributes {stable_mosaic.version = 11 : i64} {
  func.func @dense_heads_kernel(%arg0: i32, %arg1: memref<2x512xbf16, #tpu.memory_space<vmem>>, %arg2: memref<512x1024xbf16, #tpu.memory_space<vmem>>, %arg3: memref<1x1024xf32, #tpu.memory_space<vmem>>, %arg4: memref<1024x128xbf16, #tpu.memory_space<vmem>>, %arg5: memref<1x128xf32, #tpu.memory_space<vmem>>, %arg6: memref<2x128xf32, #tpu.memory_space<vmem>>, %arg7: memref<2x1024xf32, #tpu.memory_space<vmem>>) attributes {dimension_semantics = [#tpu.dimension_semantics<arbitrary>], iteration_bounds = array<i64: 4>, scalar_prefetch = 0 : i64, scratch_operands = 1 : i64, tpu.core_type = #tpu.core_type<tc>, window_params = [{transform_indices = @transform_0, window_bounds = array<i64: 2, 512>}, {transform_indices = @transform_1, window_bounds = array<i64: 512, 1024>}, {pipeline_mode = #tpu.pipeline_mode<synchronous>, transform_indices = @transform_2, window_bounds = array<i64: 1, 1024>}, {pipeline_mode = #tpu.pipeline_mode<synchronous>, transform_indices = @transform_3, window_bounds = array<i64: 1024, 128>}, {pipeline_mode = #tpu.pipeline_mode<synchronous>, transform_indices = @transform_4, window_bounds = array<i64: 1, 128>}, {pipeline_mode = #tpu.pipeline_mode<synchronous>, transform_indices = @transform_5, window_bounds = array<i64: 2, 128>}]} {
    %c0_i32 = arith.constant 0 : i32
    %0 = arith.cmpi eq, %arg0, %c0_i32 : i32
    %1 = arith.extui %0 : i1 to i32
    %c0_i32_0 = arith.constant 0 : i32
    %2 = arith.cmpi ne, %1, %c0_i32_0 : i32
    scf.if %2 {
      %cst_9 = arith.constant 0.000000e+00 : f32
      %12 = vector.broadcast %cst_9 : f32 to vector<2x1024xf32>
      %c0_10 = arith.constant 0 : index
      %c0_11 = arith.constant 0 : index
      %13 = vector.load %arg7[%c0_10, %c0_11] : memref<2x1024xf32, #tpu.memory_space<vmem>>, vector<2x1024xf32>
      tpu.vector_store %arg7[%c0_10, %c0_11], %12 {strides = array<i32>} : memref<2x1024xf32, #tpu.memory_space<vmem>>, vector<2x1024xf32>,
    } else {
    }
    %c0 = arith.constant 0 : index
    %c0_1 = arith.constant 0 : index
    %3 = vector.load %arg7[%c0, %c0_1] : memref<2x1024xf32, #tpu.memory_space<vmem>>, vector<2x1024xf32>
    %c0_2 = arith.constant 0 : index
    %c0_3 = arith.constant 0 : index
    %4 = vector.load %arg1[%c0_2, %c0_3] : memref<2x512xbf16, #tpu.memory_space<vmem>>, vector<2x512xbf16>
    %c0_4 = arith.constant 0 : index
    %c0_5 = arith.constant 0 : index
    %5 = vector.load %arg2[%c0_4, %c0_5] : memref<512x1024xbf16, #tpu.memory_space<vmem>>, vector<512x1024xbf16>
    %cst = arith.constant dense<0.000000e+00> : vector<2x1024xf32>
    %6 = tpu.matmul %4, %5, %cst {dimension_numbers = #tpu.dot_dimension_numbers<[1], [0], [0], [1], [0, 0, 1, 1], [], []>} : vector<2x512xbf16>, vector<512x1024xbf16>, vector<2x1024xf32> -> vector<2x1024xf32>
    %7 = arith.addf %3, %6 : vector<2x1024xf32>
    %c0_6 = arith.constant 0 : index
    %c0_7 = arith.constant 0 : index
    %8 = vector.load %arg7[%c0_6, %c0_7] : memref<2x1024xf32, #tpu.memory_space<vmem>>, vector<2x1024xf32>
    tpu.vector_store %arg7[%c0_6, %c0_7], %7 {strides = array<i32>} : memref<2x1024xf32, #tpu.memory_space<vmem>>, vector<2x1024xf32>,
    %c3_i32 = arith.constant 3 : i32
    %9 = arith.cmpi eq, %arg0, %c3_i32 : i32
    %10 = arith.extui %9 : i1 to i32
    %c0_i32_8 = arith.constant 0 : i32
    %11 = arith.cmpi ne, %10, %c0_i32_8 : i32
    scf.if %11 {
      %c0_9 = arith.constant 0 : index
      %c0_10 = arith.constant 0 : index
      %12 = vector.load %arg7[%c0_9, %c0_10] : memref<2x1024xf32, #tpu.memory_space<vmem>>, vector<2x1024xf32>
      %c0_11 = arith.constant 0 : index
      %c0_12 = arith.constant 0 : index
      %13 = vector.load %arg3[%c0_11, %c0_12] : memref<1x1024xf32, #tpu.memory_space<vmem>>, vector<1x1024xf32>
      %14 = vector.broadcast %13 : vector<1x1024xf32> to vector<2x1024xf32>
      %15 = arith.addf %12, %14 : vector<2x1024xf32>
      %cst_13 = arith.constant 0.000000e+00 : f32
      %16 = vector.broadcast %cst_13 : f32 to vector<2x1024xf32>
      %17 = arith.maximumf %15, %16 : vector<2x1024xf32>
      %18 = arith.truncf %17 : vector<2x1024xf32> to vector<2x1024xbf16>
      %c0_14 = arith.constant 0 : index
      %c0_15 = arith.constant 0 : index
      %19 = vector.load %arg4[%c0_14, %c0_15] : memref<1024x128xbf16, #tpu.memory_space<vmem>>, vector<1024x128xbf16>
      %cst_16 = arith.constant dense<0.000000e+00> : vector<2x128xf32>
      %20 = tpu.matmul %18, %19, %cst_16 {dimension_numbers = #tpu.dot_dimension_numbers<[1], [0], [0], [1], [0, 0, 1, 1], [], []>} : vector<2x1024xbf16>, vector<1024x128xbf16>, vector<2x128xf32> -> vector<2x128xf32>
      %c0_17 = arith.constant 0 : index
      %c0_18 = arith.constant 0 : index
      %21 = vector.load %arg5[%c0_17, %c0_18] : memref<1x128xf32, #tpu.memory_space<vmem>>, vector<1x128xf32>
      %22 = vector.broadcast %21 : vector<1x128xf32> to vector<2x128xf32>
      %23 = arith.addf %20, %22 : vector<2x128xf32>
      %cst_19 = arith.constant 0.000000e+00 : f32
      %24 = vector.broadcast %cst_19 : f32 to vector<2x128xf32>
      %25 = arith.maximumf %23, %24 : vector<2x128xf32>
      %c0_20 = arith.constant 0 : index
      %c0_21 = arith.constant 0 : index
      %26 = vector.load %arg6[%c0_20, %c0_21] : memref<2x128xf32, #tpu.memory_space<vmem>>, vector<2x128xf32>
      tpu.vector_store %arg6[%c0_20, %c0_21], %25 {strides = array<i32>} : memref<2x128xf32, #tpu.memory_space<vmem>>, vector<2x128xf32>,
    } else {
    }
    return
  }
  func.func @transform_0(%arg0: i32) -> (i32, i32) {
    %c0_i32 = arith.constant 0 : i32
    %c0_i32_0 = arith.constant 0 : i32
    return %c0_i32, %arg0 : i32, i32
  }
  func.func @transform_1(%arg0: i32) -> (i32, i32) {
    %c0_i32 = arith.constant 0 : i32
    %c0_i32_0 = arith.constant 0 : i32
    return %arg0, %c0_i32 : i32, i32
  }
  func.func @transform_2(%arg0: i32) -> (i32, i32) {
    %c0_i32 = arith.constant 0 : i32
    %c0_i32_0 = arith.constant 0 : i32
    %c0_i32_1 = arith.constant 0 : i32
    return %c0_i32, %c0_i32_0 : i32, i32
  }
  func.func @transform_3(%arg0: i32) -> (i32, i32) {
    %c0_i32 = arith.constant 0 : i32
    %c0_i32_0 = arith.constant 0 : i32
    %c0_i32_1 = arith.constant 0 : i32
    return %c0_i32, %c0_i32_0 : i32, i32
  }
  func.func @transform_4(%arg0: i32) -> (i32, i32) {
    %c0_i32 = arith.constant 0 : i32
    %c0_i32_0 = arith.constant 0 : i32
    %c0_i32_1 = arith.constant 0 : i32
    return %c0_i32, %c0_i32_0 : i32, i32
  }
  func.func @transform_5(%arg0: i32) -> (i32, i32) {
    %c0_i32 = arith.constant 0 : i32
    %c0_i32_0 = arith.constant 0 : i32
    %c0_i32_1 = arith.constant 0 : i32
    return %c0_i32, %c0_i32_0 : i32, i32
  }
}

</mosaic_0001>

<bundles_post_ra>
// kernel: encoder_forward.4
= control target key start
LH: loop header
LB: loop body
LE: loop exit
PB: predicated region body
PF: predicated region fallthrough
CT: control target
= control target key end

     0   :  { %vm142_vm0 = vcmask 1044480   ;;  %vm143_vm1 = vcmask 1045504   ;;  %v1321_v1 = vmov 65535   ;;  %vm117_vm2 = vcmask 613376   ;;  %s1693_s1 = inlined_call_operand.vmem [shape: bf16[75,32], index: 1, kind: input, shape index: {}]   ;;  %s1694_s0 = inlined_call_operand.vmem [shape: bf16[4,128,75], index: 0, kind: input, shape index: {}]   ;;  %s1695_s2 = inlined_call_operand.vmem [shape: f32[1,32], index: 2, kind: input, shape index: {}]   ;;  %s1696_s3 = inlined_call_operand.vmem [shape: bf16[128,32], index: 3, kind: output, shape index: {}]  }
   0x1   :  { %v1284_v0 = vld [vmem:[%s1693_s1 + $0x20] sm:$0x3f]   ;;  %v144_v2 = vsel %vm142_vm0, 4294967295, %v1321_v1  ;;  %v1285_v5 = vld [vmem:[%s1693_s1 + $0x18] sm:$0xff]   ;;  %v1286_v8 = vld [vmem:[%s1693_s1 + $0x10] sm:$0xff]   ;;  %vm956_vm3 = vcmask 257024  }
   0x2   :  { %v145_v3 = vsel %vm143_vm1, %v144_v2, 0  ;;  %v1289_v6 = vld [vmem:[%s1694_s0] sm:$0xff]   ;;  %v1287_v9 = vld [vmem:[%s1693_s1 + $0x8] sm:$0xff]   ;;  %v1293_v13 = vld [vmem:[%s1694_s0 + $0x10] sm:$0xff]  }
   0x3   :  { %v147_v4 = vand.u32 %v1284_v0, %v145_v3  ;;  %v1290_v7 = vld [vmem:[%s1694_s0 + $0x40] sm:$0xff]   ;;  %1189 = vmatprep.mubr.msk.bf16.mxu0 %vm117_vm2, %v1289_v6  ;;  %v1291_v11 = vld [vmem:[%s1694_s0 + $0x8] sm:$0xff]   ;;  %v1294_v14 = vld [vmem:[%s1694_s0 + $0x50] sm:$0xff]  }
   0x4   :  { %1215 = vmatprep.mubr.msk.bf16.mxu1 %vm117_vm2, %v1290_v7  ;;  %v1288_v10 = vld [vmem:[%s1693_s1] sm:$0xff]   ;;  %v1292_v12 = vld [vmem:[%s1694_s0 + $0x48] sm:$0xff]   ;;  %v1295_v15 = vld [vmem:[%s1694_s0 + $0x18] sm:$0xff]  }
   0x5   :  { %1179 = vmatprep.subr.bf16.mxu0 %v147_v4  ;;  %1205 = vmatprep.subr.bf16.mxu1 %v147_v4  ;;  %v1296_v16 = vld [vmem:[%s1694_s0 + $0x58] sm:$0xff]   ;;  %v1297_v17 = vld [vmem:[%s1694_s0 + $0x20] sm:$0xff]   ;;  %v1299_v19 = vld [vmem:[%s1694_s0 + $0x28] sm:$0xff]  }
   0x6   :  { %1180 = vmatpush3.bf16.msra.mxu0 %v147_v4  ;;  %1206 = vmatpush3.bf16.msra.mxu1 %v147_v4  ;;  %v1298_v18 = vld [vmem:[%s1694_s0 + $0x60] sm:$0xff]   ;;  %v1300_v20 = vld [vmem:[%s1694_s0 + $0x68] sm:$0xff]   ;;  %v1301_v21 = vld [vmem:[%s1694_s0 + $0x30] sm:$0xff]  }
   0x7   :  { %1181 = vmatprep.subr.bf16.mxu0 %v1285_v5  ;;  %1207 = vmatprep.subr.bf16.mxu1 %v1285_v5  ;;  %v1302_v22 = vld [vmem:[%s1694_s0 + $0x70] sm:$0xff]   ;;  %v1303_v23 = vld [vmem:[%s1694_s0 + $0x38] sm:$0xff]   ;;  %v1305_v25 = vld [vmem:[%s1694_s0 + $0x80] sm:$0xff]  }
   0x8   :  { %v1304_v24 = vld [vmem:[%s1694_s0 + $0x78] sm:$0xff]   ;;  %v1306_v26 = vld [vmem:[%s1694_s0 + $0xc0] sm:$0xff]   ;;  %v1307_v27 = vld [vmem:[%s1694_s0 + $0x88] sm:$0xff]  }
   0x9   :  { %v1308_v28 = vld [vmem:[%s1694_s0 + $0xc8] sm:$0xff]   ;;  %v1309_v29 = vld [vmem:[%s1694_s0 + $0x90] sm:$0xff]   ;;  %v1311_v31 = vld [vmem:[%s1694_s0 + $0x98] sm:$0xff]  }
   0xa   :  { %1182 = vmatpush3.bf16.msra.mxu0 %v1285_v5  ;;  %1208 = vmatpush3.bf16.msra.mxu1 %v1285_v5  ;;  %v1310_v30 = vld [vmem:[%s1694_s0 + $0xd0] sm:$0xff]   ;;  %v1312_v32 = vld [vmem:[%s1694_s0 + $0xd8] sm:$0xff]   ;;  %v1313_v33 = vld [vmem:[%s1694_s0 + $0xa0] sm:$0xff]  }
   0xb   :  { %1183 = vmatprep.subr.bf16.mxu0 %v1286_v8  ;;  %1209 = vmatprep.subr.bf16.mxu1 %v1286_v8  ;;  %v1314_v34 = vld [vmem:[%s1694_s0 + $0xe0] sm:$0xff]   ;;  %v1315_v35 = vld [vmem:[%s1694_s0 + $0xa8] sm:$0xff]   ;;  %v1317_v37 = vld [vmem:[%s1694_s0 + $0xb0] sm:$0xff]  }
   0xc   :  { %v1316_v36 = vld [vmem:[%s1694_s0 + $0xe8] sm:$0xff]   ;;  %v1318_v38 = vld [vmem:[%s1694_s0 + $0xf0] sm:$0xff]   ;;  %v1319_v39 = vld [vmem:[%s1694_s0 + $0xb8] sm:$0xff]  }
   0xd   :  { %v1320_v40 = vld [vmem:[%s1694_s0 + $0xf8] sm:$0xff]   ;;  %v1488_v53 = vld [vmem:[%s1695_s2] ss:$0 sm:$0xff] }
   0xe   :  { %1184 = vmatpush3.bf16.msra.mxu0 %v1286_v8  ;;  %1210 = vmatpush3.bf16.msra.mxu1 %v1286_v8 }
   0xf   :  { %1185 = vmatprep.subr.bf16.mxu0 %v1287_v9  ;;  %1211 = vmatprep.subr.bf16.mxu1 %v1287_v9 }
  0x12   :  { %1186 = vmatpush3.bf16.msra.mxu0 %v1287_v9  ;;  %1212 = vmatpush3.bf16.msra.mxu1 %v1287_v9 }
  0x13   :  { %1187 = vmatprep.subr.bf16.mxu0 %v1288_v10  ;;  %1213 = vmatprep.subr.bf16.mxu1 %v1288_v10 }
  0x16   :  { %1188 = vmatpush3.bf16.msra.mxu0 %v1288_v10  ;;  %1214 = vmatpush3.bf16.msra.mxu1 %v1288_v10 }
  0x17   :  { %1231 = vmatprep.subr.bf16.mxu0 %v147_v4  ;;  %1257 = vmatprep.subr.bf16.mxu1 %v147_v4 }
  0x19   :  { %1190 = vmatmul.mubr.msk.bf16.vlgmr.msra.gmra.mxu0 %vm117_vm2, %v1291_v11  ;;  %1216 = vmatmul.mubr.msk.bf16.vlgmr.msra.gmra.mxu1 %vm117_vm2, %v1292_v12 }
  0x1a   :  { %1232 = vmatpush3.bf16.msra.mxu0 %v147_v4  ;;  %1258 = vmatpush3.bf16.msra.mxu1 %v147_v4 }
  0x1b   :  { %1193 = vmatprep.mubr.msk.bf16.mxu0 %vm117_vm2, %v1293_v13  ;;  %1219 = vmatprep.mubr.msk.bf16.mxu1 %vm117_vm2, %v1294_v14 }
  0x1c   :  { %1233 = vmatprep.subr.bf16.mxu0 %v1285_v5  ;;  %1259 = vmatprep.subr.bf16.mxu1 %v1285_v5 }
  0x1e   :  { %1234 = vmatpush3.bf16.msra.mxu0 %v1285_v5  ;;  %1260 = vmatpush3.bf16.msra.mxu1 %v1285_v5 }
  0x1f   :  { %1235 = vmatprep.subr.bf16.mxu0 %v1286_v8  ;;  %1261 = vmatprep.subr.bf16.mxu1 %v1286_v8 }
  0x21   :  { %1194 = vmatmul.mubr.msk.bf16.gmra.mxu0 %vm117_vm2, %v1295_v15  ;;  %1220 = vmatmul.mubr.msk.bf16.gmra.mxu1 %vm117_vm2, %v1296_v16 }
  0x22   :  { %1236 = vmatpush3.bf16.msra.mxu0 %v1286_v8  ;;  %1262 = vmatpush3.bf16.msra.mxu1 %v1286_v8 }
  0x23   :  { %1197 = vmatprep.mubr.msk.bf16.mxu0 %vm117_vm2, %v1297_v17  ;;  %1223 = vmatprep.mubr.msk.bf16.mxu1 %vm117_vm2, %v1298_v18 }
  0x24   :  { %1237 = vmatprep.subr.bf16.mxu0 %v1287_v9  ;;  %1263 = vmatprep.subr.bf16.mxu1 %v1287_v9 }
  0x26   :  { %1238 = vmatpush3.bf16.msra.mxu0 %v1287_v9  ;;  %1264 = vmatpush3.bf16.msra.mxu1 %v1287_v9 }
  0x27   :  { %1239 = vmatprep.subr.bf16.mxu0 %v1288_v10  ;;  %1265 = vmatprep.subr.bf16.mxu1 %v1288_v10 }
  0x29   :  { %1198 = vmatmul.mubr.msk.bf16.gmra.mxu0 %vm117_vm2, %v1299_v19  ;;  %1224 = vmatmul.mubr.msk.bf16.gmra.mxu1 %vm117_vm2, %v1300_v20 }
  0x2a   :  { %1201 = vmatprep.mubr.msk.bf16.mxu0 %vm117_vm2, %v1301_v21  ;;  %1227 = vmatprep.mubr.msk.bf16.mxu1 %vm117_vm2, %v1302_v22 }
  0x2b   :  { %1240 = vmatpush3.bf16.msra.mxu0 %v1288_v10  ;;  %1266 = vmatpush3.bf16.msra.mxu1 %v1288_v10 }
  0x31   :  { %1202 = vmatmul.mubr.msk.bf16.gmra.mxu0 %vm117_vm2, %v1303_v23  ;;  %1228 = vmatmul.mubr.msk.bf16.gmra.mxu1 %vm117_vm2, %v1304_v24 }
  0x32   :  { %1241 = vmatprep.mubr.msk.bf16.mxu0 %vm117_vm2, %v1305_v25  ;;  %1267 = vmatprep.mubr.msk.bf16.mxu1 %vm117_vm2, %v1306_v26 }
  0x39   :  { %1242 = vmatmul.mubr.msk.bf16.vlgmr.msra.gmra.mxu0 %vm117_vm2, %v1307_v27  ;;  %1268 = vmatmul.mubr.msk.bf16.vlgmr.msra.gmra.mxu1 %vm117_vm2, %v1308_v28 }
  0x3a   :  { %1245 = vmatprep.mubr.msk.bf16.mxu0 %vm117_vm2, %v1309_v29  ;;  %1271 = vmatprep.mubr.msk.bf16.mxu1 %vm117_vm2, %v1310_v30 }
  0x41   :  { %1246 = vmatmul.mubr.msk.bf16.gmra.mxu0 %vm117_vm2, %v1311_v31  ;;  %1272 = vmatmul.mubr.msk.bf16.gmra.mxu1 %vm117_vm2, %v1312_v32 }
  0x42   :  { %1249 = vmatprep.mubr.msk.bf16.mxu0 %vm117_vm2, %v1313_v33  ;;  %1275 = vmatprep.mubr.msk.bf16.mxu1 %vm117_vm2, %v1314_v34 }
  0x49   :  { %1250 = vmatmul.mubr.msk.bf16.gmra.mxu0 %vm117_vm2, %v1315_v35  ;;  %1276 = vmatmul.mubr.msk.bf16.gmra.mxu1 %vm117_vm2, %v1316_v36 }
  0x4a   :  { %1253 = vmatprep.mubr.msk.bf16.mxu0 %vm117_vm2, %v1317_v37  ;;  %1279 = vmatprep.mubr.msk.bf16.mxu1 %vm117_vm2, %v1318_v38 }
  0x51   :  { %1254 = vmatmul.mubr.msk.bf16.gmra.mxu0 %vm117_vm2, %v1319_v39  ;;  %1280 = vmatmul.mubr.msk.bf16.gmra.mxu1 %vm117_vm2, %v1320_v40 }
  0xd9   :  { %v1191_v41 = vpop.f32.mrf.mxu0  ;;  %v1217_v42 = vpop.f32.mrf.mxu1 }
  0xda   :  { %v192_v56 = vadd.f32 %v1191_v41, %v1488_v53  ;;  %v386_v57 = vadd.f32 %v1217_v42, %v1488_v53 }
  0xdb   :  { %v183_v43 = vpop.f32.mrf.mxu0  ;;  %v377_v44 = vpop.f32.mrf.mxu1 }
  0xdc   :  { %v248_v62 = vmax.f32 %v192_v56, 0.0  ;;  %v442_v63 = vmax.f32 %v386_v57, 0.0  ;;  %v184_v2 = vadd.f32 %v1488_v53, %v183_v43  ;;  %v378_v3 = vadd.f32 %v1488_v53, %v377_v44 }
  0xdd   :  { %v1192_v45 = vpop.f32.mrf.mxu0  ;;  %v1218_v46 = vpop.f32.mrf.mxu1 }
  0xde   :  { %v195_v4 = vadd.f32 %v1192_v45, %v1488_v53  ;;  %v389_v5 = vadd.f32 %v1218_v46, %v1488_v53  ;;  %v1498_v10 = vmax.f32 %v248_v62, %v442_v63  ;;  %v246_v13 = vmax.f32 %v184_v2, 0.0 }
  0xdf   :  { %v186_v47 = vpop.f32.mrf.mxu0  ;;  %v380_v48 = vpop.f32.mrf.mxu1  ;;  %v440_v14 = vmax.f32 %v378_v3, 0.0 }
  0xe0   :  { %v187_v6 = vadd.f32 %v1488_v53, %v186_v47  ;;  %v381_v7 = vadd.f32 %v1488_v53, %v380_v48  ;;  %v249_v17 = vmax.f32 %v195_v4, 0.0  ;;  %v443_v18 = vmax.f32 %v389_v5, 0.0 }
  0xe1   :  { %v1195_v49 = vpop.f32.mrf.mxu0  ;;  %v1221_v50 = vpop.f32.mrf.mxu1  ;;  %v1514_v37 = vmax.f32 %v246_v13, %v440_v14 }
  0xe2   :  { %v208_v15 = vadd.f32 %v1195_v49, %v1488_v53  ;;  %v402_v16 = vadd.f32 %v1221_v50, %v1488_v53  ;;  %v247_v19 = vmax.f32 %v187_v6, 0.0  ;;  %v441_v20 = vmax.f32 %v381_v7, 0.0 }
  0xe3   :  { %v199_v51 = vpop.f32.mrf.mxu0  ;;  %v393_v52 = vpop.f32.mrf.mxu1  ;;  %v1516_v38 = vmax.f32 %v249_v17, %v443_v18 }
  0xe4   :  { %v200_v23 = vadd.f32 %v1488_v53, %v199_v51  ;;  %v394_v24 = vadd.f32 %v1488_v53, %v393_v52  ;;  %v252_v33 = vmax.f32 %v208_v15, 0.0  ;;  %v446_v34 = vmax.f32 %v402_v16, 0.0 }
  0xe5   :  { %v1196_v54 = vpop.f32.mrf.mxu0  ;;  %v1222_v55 = vpop.f32.mrf.mxu1 }
  0xe6   :  { %v211_v25 = vadd.f32 %v1196_v54, %v1488_v53  ;;  %v405_v26 = vadd.f32 %v1222_v55, %v1488_v53  ;;  %v250_v43 = vmax.f32 %v200_v23, 0.0  ;;  %v444_v44 = vmax.f32 %v394_v24, 0.0 }
  0xe7   :  { %v202_v58 = vpop.f32.mrf.mxu0  ;;  %v396_v59 = vpop.f32.mrf.mxu1  ;;  %v1528_v54 = vmax.f32 %v247_v19, %v441_v20  ;;  %v1530_v55 = vmax.f32 %v252_v33, %v446_v34 }
  0xe8   :  { %v203_v27 = vadd.f32 %v1488_v53, %v202_v58  ;;  %v397_v28 = vadd.f32 %v1488_v53, %v396_v59  ;;  %v253_v45 = vmax.f32 %v211_v25, 0.0  ;;  %v447_v46 = vmax.f32 %v405_v26, 0.0 }
  0xe9   :  { %v1199_v60 = vpop.f32.mrf.mxu0  ;;  %v1225_v61 = vpop.f32.mrf.mxu1 }
  0xea   :  { %v224_v29 = vadd.f32 %v1199_v60, %v1488_v53  ;;  %v418_v30 = vadd.f32 %v1225_v61, %v1488_v53  ;;  %v251_v47 = vmax.f32 %v203_v27, 0.0  ;;  %v445_v48 = vmax.f32 %v397_v28, 0.0 }
  0xeb   :  { %v215_v0 = vpop.f32.mrf.mxu0  ;;  %v409_v1 = vpop.f32.mrf.mxu1 }
  0xec   :  { %v216_v35 = vadd.f32 %v1488_v53, %v215_v0  ;;  %v410_v36 = vadd.f32 %v1488_v53, %v409_v1  ;;  %v256_v49 = vmax.f32 %v224_v29, 0.0  ;;  %v450_v50 = vmax.f32 %v418_v30, 0.0 }
  0xed   :  { %v1200_v8 = vpop.f32.mrf.mxu0  ;;  %v1226_v9 = vpop.f32.mrf.mxu1  ;;  %v1534_v0 = vmax.f32 %v250_v43, %v444_v44  ;;  %v1536_v1 = vmax.f32 %v253_v45, %v447_v46  ;;  %v1540_v4 = vmax.f32 %v251_v47, %v445_v48 }
  0xee   :  { %v227_v39 = vadd.f32 %v1200_v8, %v1488_v53  ;;  %v421_v40 = vadd.f32 %v1226_v9, %v1488_v53  ;;  %v254_v56 = vmax.f32 %v216_v35, 0.0  ;;  %v448_v57 = vmax.f32 %v410_v36, 0.0 }
  0xef   :  { %v218_v11 = vpop.f32.mrf.mxu0  ;;  %v412_v12 = vpop.f32.mrf.mxu1  ;;  %v1542_v5 = vmax.f32 %v256_v49, %v450_v50 }
  0xf0   :  { %v257_v58 = vmax.f32 %v227_v39, 0.0  ;;  %v451_v59 = vmax.f32 %v421_v40, 0.0  ;;  %v219_v60 = vadd.f32 %v1488_v53, %v218_v11  ;;  %v413_v61 = vadd.f32 %v1488_v53, %v412_v12 }
  0xf1   :  { %v1203_v21 = vpop.f32.mrf.mxu0  ;;  %v1229_v22 = vpop.f32.mrf.mxu1  ;;  %v1546_v11 = vmax.f32 %v254_v56, %v448_v57 }
  0xf2   :  { %v240_v6 = vadd.f32 %v1203_v21, %v1488_v53  ;;  %v434_v7 = vadd.f32 %v1229_v22, %v1488_v53  ;;  %v1549_v15 = vmax.f32 %v257_v58, %v451_v59  ;;  %v255_v16 = vmax.f32 %v219_v60, 0.0 }
  0xf3   :  { %v231_v31 = vpop.f32.mrf.mxu0  ;;  %v1510_v32 = vpop.f32.mrf.mxu1  ;;  %v449_v17 = vmax.f32 %v413_v61, 0.0 }
  0xf4   :  { %v260_v25 = vmax.f32 %v240_v6, 0.0  ;;  %v454_v26 = vmax.f32 %v434_v7, 0.0  ;;  %v1555_v27 = vadd.f32 %v1488_v53, %v231_v31  ;;  %v1563_v40 = vadd.f32 %v1488_v53, %v1510_v32 }
  0xf5   :  { %v1520_v41 = vpop.f32.mrf.mxu0  ;;  %v1522_v42 = vpop.f32.mrf.mxu1  ;;  %v1559_v39 = vmax.f32 %v255_v16, %v449_v17 }
  0xf6   :  { %v1567_v49 = vmax.f32 %v260_v25, %v454_v26 }
  0xf7   :  { %v1524_v51 = vpop.f32.mrf.mxu0  ;;  %v1526_v52 = vpop.f32.mrf.mxu1 }
  0xf9   :  { %v1243_v62 = vpop.f32.mrf.mxu0  ;;  %v1269_v63 = vpop.f32.mrf.mxu1 }
  0xfa   :  { %v596_v2 = vadd.f32 %v1243_v62, %v1488_v53  ;;  %v790_v3 = vadd.f32 %v1269_v63, %v1488_v53  ;;  %v258_v63 = vmax.f32 %v1555_v27, 0.0 }
  0xfb   :  { %v587_v8 = vpop.f32.mrf.mxu0  ;;  %v781_v9 = vpop.f32.mrf.mxu1 }
  0xfc   :  { %v652_v12 = vmax.f32 %v596_v2, 0.0  ;;  %v846_v13 = vmax.f32 %v790_v3, 0.0  ;;  %v588_v14 = vadd.f32 %v1488_v53, %v587_v8  ;;  %v782_v18 = vadd.f32 %v1488_v53, %v781_v9 }
  0xfd   :  { %v1244_v19 = vpop.f32.mrf.mxu0  ;;  %v1270_v20 = vpop.f32.mrf.mxu1 }
  0xfe   :  { %v862_v23 = vmax.f32 %v652_v12, %v846_v13  ;;  %v650_v21 = vmax.f32 %v588_v14, 0.0  ;;  %v599_v22 = vadd.f32 %v1244_v19, %v1488_v53  ;;  %v793_v24 = vadd.f32 %v1270_v20, %v1488_v53 }
  0xff   :  { %v844_v28 = vmax.f32 %v782_v18, 0.0  ;;  %v590_v29 = vpop.f32.mrf.mxu0  ;;  %v784_v30 = vpop.f32.mrf.mxu1  ;;  %v452_v14 = vmax.f32 %v1563_v40, 0.0 }
 0x100   :  { %v878_v33 = vmax.f32 %v1498_v10, %v862_v23  ;;  %v653_v34 = vmax.f32 %v599_v22, 0.0  ;;  %v847_v35 = vmax.f32 %v793_v24, 0.0  ;;  %v591_v36 = vadd.f32 %v1488_v53, %v590_v29 }
 0x101   :  { %v860_v43 = vmax.f32 %v650_v21, %v844_v28  ;;  %v785_v44 = vadd.f32 %v1488_v53, %v784_v30  ;;  %v1247_v31 = vpop.f32.mrf.mxu0  ;;  %v1273_v45 = vpop.f32.mrf.mxu1  ;;  %v1595_v24 = vadd.f32 %v1520_v41, %v1488_v53 }
 0x102   :  { %v1113_v46 = vpack.c.bf16 %v878_v33, %v878_v33  ;;  %v863_v47 = vmax.f32 %v653_v34, %v847_v35  ;;  %v651_v48 = vmax.f32 %v591_v36, 0.0  ;;  %v612_v10 = vadd.f32 %v1247_v31, %v1488_v53 }
 0x103   :  { %v876_v50 = vmax.f32 %v1514_v37, %v860_v43  ;;  %v845_v56 = vmax.f32 %v785_v44, 0.0  ;;  %v806_v57 = vadd.f32 %v1273_v45, %v1488_v53  ;;  %v603_v58 = vpop.f32.mrf.mxu0  ;;  %v797_v32 = vpop.f32.mrf.mxu1  ;;  %v1602_v36 = vadd.f32 %v1522_v42, %v1488_v53 }
 0x104   :  { %959 = vst.msk [vmem:[%s1696_s3 + $0x8] sm:$0xf] %vm956_vm3, %v1113_v46  ;;  %v879_v59 = vmax.f32 %v1516_v38, %v863_v47  ;;  %v656_v60 = vmax.f32 %v612_v10, 0.0  ;;  %v604_v61 = vadd.f32 %v1488_v53, %v603_v58  ;;  %v798_v62 = vadd.f32 %v1488_v53, %v797_v32 }
 0x105   :  { %v1111_v37 = vpack.c.bf16 %v876_v50, %v876_v50  ;;  %v861_v2 = vmax.f32 %v651_v48, %v845_v56  ;;  %v850_v3 = vmax.f32 %v806_v57, 0.0  ;;  %v1248_v6 = vpop.f32.mrf.mxu0  ;;  %v1274_v7 = vpop.f32.mrf.mxu1  ;;  %v261_v48 = vmax.f32 %v1595_v24, 0.0 }
 0x106   :  { %v1114_v8 = vpack.c.bf16 %v879_v59, %v879_v59  ;;  %v654_v9 = vmax.f32 %v604_v61, 0.0  ;;  %v848_v12 = vmax.f32 %v798_v62, 0.0  ;;  %v615_v13 = vadd.f32 %v1248_v6, %v1488_v53 }
 0x107   :  { %957 = vst.msk [vmem:[%s1696_s3] sm:$0xf] %vm956_vm3, %v1111_v37  ;;  %v877_v38 = vmax.f32 %v1528_v54, %v861_v2  ;;  %v866_v16 = vmax.f32 %v656_v60, %v850_v3  ;;  %v809_v17 = vadd.f32 %v1274_v7, %v1488_v53  ;;  %v606_v18 = vpop.f32.mrf.mxu0  ;;  %v800_v19 = vpop.f32.mrf.mxu1 }
 0x108   :  { %960 = vst.msk [vmem:[%s1696_s3 + $0xc] sm:$0xf] %vm956_vm3, %v1114_v8  ;;  %v864_v20 = vmax.f32 %v654_v9, %v848_v12  ;;  %v657_v23 = vmax.f32 %v615_v13, 0.0  ;;  %v607_v21 = vadd.f32 %v1488_v53, %v606_v18  ;;  %v801_v22 = vadd.f32 %v1488_v53, %v800_v19 }
 0x109   :  { %v1112_v54 = vpack.c.bf16 %v877_v38, %v877_v38  ;;  %v882_v25 = vmax.f32 %v1530_v55, %v866_v16  ;;  %v851_v26 = vmax.f32 %v809_v17, 0.0  ;;  %v1251_v28 = vpop.f32.mrf.mxu0  ;;  %v1277_v29 = vpop.f32.mrf.mxu1 }
 0x10a   :  { %v880_v30 = vmax.f32 %v1534_v0, %v864_v20  ;;  %v655_v33 = vmax.f32 %v607_v21, 0.0  ;;  %v849_v34 = vmax.f32 %v801_v22, 0.0  ;;  %v628_v35 = vadd.f32 %v1251_v28, %v1488_v53 }
 0x10b   :  { %958 = vst.msk [vmem:[%s1696_s3 + $0x4] sm:$0xf] %vm956_vm3, %v1112_v54  ;;  %v1117_v41 = vpack.c.bf16 %v882_v25, %v882_v25  ;;  %v867_v55 = vmax.f32 %v657_v23, %v851_v26  ;;  %v822_v43 = vadd.f32 %v1277_v29, %v1488_v53  ;;  %v619_v44 = vpop.f32.mrf.mxu0  ;;  %v813_v31 = vpop.f32.mrf.mxu1  ;;  %v455_v20 = vmax.f32 %v1602_v36, 0.0 }
 0x10c   :  { %v1115_v0 = vpack.c.bf16 %v880_v30, %v880_v30  ;;  %v865_v45 = vmax.f32 %v655_v33, %v849_v34  ;;  %v660_v46 = vmax.f32 %v628_v35, 0.0  ;;  %v620_v47 = vadd.f32 %v1488_v53, %v619_v44 }
 0x10d   :  { %963 = vst.msk [vmem:[%s1696_s3 + $0x18] sm:$0xf] %vm956_vm3, %v1117_v41  ;;  %v883_v42 = vmax.f32 %v1536_v1, %v867_v55  ;;  %v854_v10 = vmax.f32 %v822_v43, 0.0  ;;  %v814_v50 = vadd.f32 %v1488_v53, %v813_v31  ;;  %v1252_v56 = vpop.f32.mrf.mxu0  ;;  %v1278_v57 = vpop.f32.mrf.mxu1  ;;  %v1626_v1 = vadd.f32 %v1488_v53, %v1524_v51 }
 0x10e   :  { %961 = vst.msk [vmem:[%s1696_s3 + $0x10] sm:$0xf] %vm956_vm3, %v1115_v0  ;;  %v881_v58 = vmax.f32 %v1540_v4, %v865_v45  ;;  %v658_v32 = vmax.f32 %v620_v47, 0.0  ;;  %v631_v59 = vadd.f32 %v1252_v56, %v1488_v53  ;;  %v825_v60 = vadd.f32 %v1278_v57, %v1488_v53 }
 0x10f   :  { %v1118_v61 = vpack.c.bf16 %v883_v42, %v883_v42  ;;  %v870_v62 = vmax.f32 %v660_v46, %v854_v10  ;;  %v852_v37 = vmax.f32 %v814_v50, 0.0  ;;  %v622_v2 = vpop.f32.mrf.mxu0  ;;  %v816_v3 = vpop.f32.mrf.mxu1  ;;  %v429_v4 = vadd.f32 %v1488_v53, %v1526_v52 }
 0x110   :  { %v1116_v6 = vpack.c.bf16 %v881_v58, %v881_v58  ;;  %v661_v7 = vmax.f32 %v631_v59, 0.0  ;;  %v855_v8 = vmax.f32 %v825_v60, 0.0  ;;  %v623_v9 = vadd.f32 %v1488_v53, %v622_v2 }
 0x111   :  { %964 = vst.msk [vmem:[%s1696_s3 + $0x1c] sm:$0xf] %vm956_vm3, %v1118_v61  ;;  %v886_v51 = vmax.f32 %v1542_v5, %v870_v62  ;;  %v868_v12 = vmax.f32 %v658_v32, %v852_v37  ;;  %v817_v13 = vadd.f32 %v1488_v53, %v816_v3  ;;  %v1255_v38 = vpop.f32.mrf.mxu0  ;;  %v1281_v16 = vpop.f32.mrf.mxu1  ;;  %v259_v30 = vmax.f32 %v1626_v1, 0.0 }
 0x112   :  { %962 = vst.msk [vmem:[%s1696_s3 + $0x14] sm:$0xf] %vm956_vm3, %v1116_v6  ;;  %v871_v17 = vmax.f32 %v661_v7, %v855_v8  ;;  %v659_v18 = vmax.f32 %v623_v9, 0.0  ;;  %v644_v52 = vadd.f32 %v1255_v38, %v1488_v53  ;;  %v838_v19 = vadd.f32 %v1281_v16, %v1488_v53 }
 0x113   :  { %v1121_v23 = vpack.c.bf16 %v886_v51, %v886_v51  ;;  %v884_v5 = vmax.f32 %v1546_v11, %v868_v12  ;;  %v853_v21 = vmax.f32 %v817_v13, 0.0  ;;  %v635_v22 = vpop.f32.mrf.mxu0  ;;  %v829_v54 = vpop.f32.mrf.mxu1  ;;  %v453_v44 = vmax.f32 %v429_v4, 0.0 }
 0x114   :  { %v887_v25 = vmax.f32 %v1549_v15, %v871_v17  ;;  %v664_v26 = vmax.f32 %v644_v52, 0.0  ;;  %v858_v28 = vmax.f32 %v838_v19, 0.0  ;;  %v636_v29 = vadd.f32 %v1488_v53, %v635_v22 }
 0x115   :  { %967 = vst.msk [vmem:[%s1696_s3 + $0x28] sm:$0xf] %vm956_vm3, %v1121_v23  ;;  %v1119_v33 = vpack.c.bf16 %v884_v5, %v884_v5  ;;  %v869_v34 = vmax.f32 %v659_v18, %v853_v21  ;;  %v830_v11 = vadd.f32 %v1488_v53, %v829_v54  ;;  %v1256_v35 = vpop.f32.mrf.mxu0  ;;  %v1282_v36 = vpop.f32.mrf.mxu1  ;;  %v471_v61 = vmax.f32 %v261_v48, %v455_v20 }
 0x116   :  { %v1122_v41 = vpack.c.bf16 %v887_v25, %v887_v25  ;;  %v874_v55 = vmax.f32 %v664_v26, %v858_v28  ;;  %v662_v15 = vmax.f32 %v636_v29, 0.0  ;;  %v647_v43 = vadd.f32 %v1256_v35, %v1488_v53 }
 0x117   :  { %965 = vst.msk [vmem:[%s1696_s3 + $0x20] sm:$0xf] %vm956_vm3, %v1119_v33  ;;  %v885_v31 = vmax.f32 %v1559_v39, %v869_v34  ;;  %v856_v0 = vmax.f32 %v830_v11, 0.0  ;;  %v841_v45 = vadd.f32 %v1282_v36, %v1488_v53  ;;  %v638_v46 = vpop.f32.mrf.mxu0  ;;  %v832_v47 = vpop.f32.mrf.mxu1  ;;  %v468_v39 = vmax.f32 %v258_v63, %v452_v14 }
 0x118   :  { %968 = vst.msk [vmem:[%s1696_s3 + $0x2c] sm:$0xf] %vm956_vm3, %v1122_v41  ;;  %v890_v42 = vmax.f32 %v1567_v49, %v874_v55  ;;  %v665_v10 = vmax.f32 %v647_v43, 0.0  ;;  %v639_v50 = vadd.f32 %v1488_v53, %v638_v46  ;;  %v833_v56 = vadd.f32 %v1488_v53, %v832_v47 }
 0x119   :  { %v1120_v57 = vpack.c.bf16 %v885_v31, %v885_v31  ;;  %v872_v58 = vmax.f32 %v662_v15, %v856_v0  ;;  %v859_v32 = vmax.f32 %v841_v45, 0.0  ;;  %v469_v40 = vmax.f32 %v259_v30, %v453_v44 }
 0x11a   :  { %v1125_v59 = vpack.c.bf16 %v890_v42, %v890_v42  ;;  %v663_v60 = vmax.f32 %v639_v50, 0.0  ;;  %v857_v1 = vmax.f32 %v833_v56, 0.0 }
 0x11b   :  { %966 = vst.msk [vmem:[%s1696_s3 + $0x24] sm:$0xf] %vm956_vm3, %v1120_v57  ;;  %v888_v53 = vmax.f32 %v468_v39, %v872_v58  ;;  %v875_v49 = vmax.f32 %v665_v10, %v859_v32 }
 0x11c   :  { %971 = vst.msk [vmem:[%s1696_s3 + $0x38] sm:$0xf] %vm956_vm3, %v1125_v59  ;;  %v873_v27 = vmax.f32 %v663_v60, %v857_v1 }
 0x11d   :  { %v1123_v63 = vpack.c.bf16 %v888_v53, %v888_v53  ;;  %v891_v14 = vmax.f32 %v471_v61, %v875_v49 }
 0x11e   :  { %v889_v62 = vmax.f32 %v469_v40, %v873_v27 }
 0x11f   :  { %969 = vst.msk [vmem:[%s1696_s3 + $0x30] sm:$0xf] %vm956_vm3, %v1123_v63  ;;  %v1126_v24 = vpack.c.bf16 %v891_v14, %v891_v14 }
 0x120   :  { %v1124_v48 = vpack.c.bf16 %v889_v62, %v889_v62 }
 0x121   :  { %972 = vst.msk [vmem:[%s1696_s3 + $0x3c] sm:$0xf] %vm956_vm3, %v1126_v24 }
 0x122   :  { %970 = vst.msk [vmem:[%s1696_s3 + $0x34] sm:$0xf] %vm956_vm3, %v1124_v48 }

// kernel: encoder_forward.6
= control target key start
LH: loop header
LB: loop body
LE: loop exit
PB: predicated region body
PF: predicated region fallthrough
CT: control target
= control target key end

     0   :  { %vm372_vm0 = vcmask 523264   ;;  %s913_s1 = inlined_call_operand.vmem [shape: bf16[576,128], index: 1, kind: input, shape index: {}]   ;;  %s914_s0 = inlined_call_operand.vmem [shape: bf16[32,576], index: 0, kind: input, shape index: {}]   ;;  %s915_s2 = inlined_call_operand.vmem [shape: f32[1,128], index: 2, kind: input, shape index: {}]   ;;  %s916_s3 = inlined_call_operand.vmem [shape: bf16[32,128], index: 3, kind: output, shape index: {}]  }
   0x1   :  { %v696_v0 = vld [vmem:[%s913_s1 + $0x78] sm:$0xff]   ;;  %v700_v4 = vld [vmem:[%s913_s1 + $0x70] sm:$0xff]   ;;  %v704_v8 = vld [vmem:[%s913_s1 + $0x68] sm:$0xff]  }
   0x2   :  { %v697_v1 = vld [vmem:[%s913_s1 + $0xf8] sm:$0xff]   ;;  %622 = vmatprep.subr.bf16.mxu0 %v696_v0  ;;  %v701_v5 = vld [vmem:[%s913_s1 + $0xf0] sm:$0xff]   ;;  %v705_v9 = vld [vmem:[%s913_s1 + $0xe8] sm:$0xff]  }
   0x3   :  { %v698_v2 = vld [vmem:[%s913_s1 + $0x38] sm:$0xff]   ;;  %650 = vmatprep.subr.bf16.mxu1 %v697_v1  ;;  %v702_v6 = vld [vmem:[%s913_s1 + $0x30] sm:$0xff]   ;;  %v706_v10 = vld [vmem:[%s913_s1 + $0x28] sm:$0xff]  }
   0x4   :  { %v699_v3 = vld [vmem:[%s913_s1 + $0xb8] sm:$0xff]   ;;  %623 = vmatpush3.bf16.msra.mxu0 %v698_v2  ;;  %v703_v7 = vld [vmem:[%s913_s1 + $0xb0] sm:$0xff]   ;;  %v707_v11 = vld [vmem:[%s913_s1 + $0xa8] sm:$0xff]  }
   0x5   :  { %651 = vmatpush3.bf16.msra.mxu1 %v699_v3  ;;  %624 = vmatprep.subr.bf16.mxu0 %v700_v4  ;;  %v708_v12 = vld [vmem:[%s913_s1 + $0x60] sm:$0xff]   ;;  %v712_v16 = vld [vmem:[%s913_s1 + $0x58] sm:$0xff]   ;;  %v716_v20 = vld [vmem:[%s913_s1 + $0x50] sm:$0xff]  }
   0x6   :  { %652 = vmatprep.subr.bf16.mxu1 %v701_v5  ;;  %v709_v13 = vld [vmem:[%s913_s1 + $0xe0] sm:$0xff]   ;;  %v713_v17 = vld [vmem:[%s913_s1 + $0xd8] sm:$0xff]   ;;  %v717_v21 = vld [vmem:[%s913_s1 + $0xd0] sm:$0xff]  }
   0x7   :  { %v710_v14 = vld [vmem:[%s913_s1 + $0x20] sm:$0xff]   ;;  %v714_v18 = vld [vmem:[%s913_s1 + $0x18] sm:$0xff]   ;;  %v718_v22 = vld [vmem:[%s913_s1 + $0x10] sm:$0xff]  }
   0x8   :  { %625 = vmatpush3.bf16.msra.mxu0 %v702_v6  ;;  %v711_v15 = vld [vmem:[%s913_s1 + $0xa0] sm:$0xff]   ;;  %v715_v19 = vld [vmem:[%s913_s1 + $0x98] sm:$0xff]   ;;  %v719_v23 = vld [vmem:[%s913_s1 + $0x90] sm:$0xff]  }
   0x9   :  { %653 = vmatpush3.bf16.msra.mxu1 %v703_v7  ;;  %626 = vmatprep.subr.bf16.mxu0 %v704_v8  ;;  %v720_v24 = vld [vmem:[%s913_s1 + $0x48] sm:$0xff]   ;;  %v724_v28 = vld [vmem:[%s913_s1 + $0x40] sm:$0xff]   ;;  %v734_v36 = vld [vmem:[%s913_s1 + $0x118] sm:$0xff]  }
   0xa   :  { %654 = vmatprep.subr.bf16.mxu1 %v705_v9  ;;  %v721_v25 = vld [vmem:[%s913_s1 + $0xc8] sm:$0xff]   ;;  %v725_v29 = vld [vmem:[%s913_s1 + $0xc0] sm:$0xff]   ;;  %v735_v37 = vld [vmem:[%s913_s1 + $0x110] sm:$0xff]  }
   0xb   :  { %v722_v26 = vld [vmem:[%s913_s1 + $0x8] sm:$0xff]   ;;  %v726_v30 = vld [vmem:[%s913_s1] sm:$0xff]  }
   0xc   :  { %627 = vmatpush3.bf16.msra.mxu0 %v706_v10  ;;  %v723_v27 = vld [vmem:[%s913_s1 + $0x88] sm:$0xff]   ;;  %v727_v31 = vld [vmem:[%s913_s1 + $0x80] sm:$0xff]  }
   0xd   :  { %655 = vmatpush3.bf16.msra.mxu1 %v707_v11  ;;  %628 = vmatprep.subr.bf16.mxu0 %v708_v12  ;;  %v728_v32 = vld [vmem:[%s914_s0] ss:$20 sps:$4 sm:$0xff]   ;;  %v730_v33 = vld [vmem:[%s914_s0 + $0x4] ss:$20 sps:$4 sm:$0xff]   ;;  %v731_v34 = vld [vmem:[%s914_s0 + $0x8] ss:$20 sps:$4 sm:$0xff]  }
   0xe   :  { %656 = vmatprep.subr.bf16.mxu1 %v709_v13  ;;  %v733_v35 = vld [vmem:[%s914_s0 + $0xc] ss:$20 sps:$4 sm:$0xff]   ;;  %411 = vmatprep.mubr.bf16.mxu0 %v730_v33  ;;  %v738_v39 = vld [vmem:[%s914_s0 + $0x34] ss:$20 sps:$4 sm:$0xff]   ;;  %v741_v42 = vld [vmem:[%s914_s0 + $0x30] ss:$20 sps:$4 sm:$0xff]  }
   0xf   :  { %460 = vmatprep.mubr.bf16.mxu1 %v733_v35  ;;  %v736_v38 = vld [vmem:[%s914_s0 + $0x2c] ss:$20 sps:$4 sm:$0xff]   ;;  %v740_v40 = vld [vmem:[%s914_s0 + $0x28] ss:$20 sps:$4 sm:$0xff]   ;;  %v744_v43 = vld [vmem:[%s914_s0 + $0x10] ss:$20 sps:$4 sm:$0xff]  }
  0x10   :  { %629 = vmatpush3.bf16.msra.mxu0 %v710_v14  ;;  %v742_v41 = vld [vmem:[%s913_s1 + $0x108] sm:$0xff]   ;;  %v743_v44 = vld [vmem:[%s913_s1 + $0x100] sm:$0xff]  }
  0x11   :  { %657 = vmatpush3.bf16.msra.mxu1 %v711_v15  ;;  %630 = vmatprep.subr.bf16.mxu0 %v712_v16  ;;  %v745_v45 = vld [vmem:[%s914_s0 + $0x38] ss:$20 sps:$4 sm:$0xff]   ;;  %v554_v59 = vld [vmem:[%s915_s2] ss:$0 sm:$0xff] }
  0x12   :  { %658 = vmatprep.subr.bf16.mxu1 %v713_v17 }
  0x14   :  { %631 = vmatpush3.bf16.msra.mxu0 %v714_v18 }
  0x15   :  { %659 = vmatpush3.bf16.msra.mxu1 %v715_v19  ;;  %632 = vmatprep.subr.bf16.mxu0 %v716_v20 }
  0x16   :  { %660 = vmatprep.subr.bf16.mxu1 %v717_v21 }
  0x18   :  { %633 = vmatpush3.bf16.msra.mxu0 %v718_v22 }
  0x19   :  { %661 = vmatpush3.bf16.msra.mxu1 %v719_v23  ;;  %634 = vmatprep.subr.bf16.mxu0 %v720_v24 }
  0x1a   :  { %662 = vmatprep.subr.bf16.mxu1 %v721_v25 }
  0x1c   :  { %635 = vmatpush3.bf16.msra.mxu0 %v722_v26 }
  0x1d   :  { %663 = vmatpush3.bf16.msra.mxu1 %v723_v27  ;;  %636 = vmatprep.subr.bf16.mxu0 %v724_v28 }
  0x1e   :  { %664 = vmatprep.subr.bf16.mxu1 %v725_v29 }
  0x20   :  { %637 = vmatpush3.bf16.msra.mxu0 %v726_v30 }
  0x21   :  { %665 = vmatpush3.bf16.msra.mxu1 %v727_v31  ;;  %684 = vmatprep.subr.bf16.mxu0 %v734_v36 }
  0x23   :  { %412 = vmatmul.mubr.bf16.vlgmr.msra.gmra.mxu0 %v728_v32 }
  0x24   :  { %461 = vmatmul.mubr.bf16.vlgmr.msra.gmra.mxu1 %v731_v34  ;;  %685 = vmatpush3.bf16.msra.mxu0 %v734_v36 }
  0x25   :  { %686 = vmatprep.subr.bf16.mxu0 %v735_v37  ;;  %419 = vmatprep.mubr.bf16.mxu0 %v736_v38 }
  0x26   :  { %468 = vmatprep.mubr.bf16.mxu1 %v738_v39 }
  0x28   :  { %687 = vmatpush3.bf16.msra.mxu0 %v735_v37 }
  0x29   :  { %688 = vmatprep.subr.bf16.mxu0 %v742_v41 }
  0x2b   :  { %420 = vmatmul.mubr.bf16.gmra.mxu0 %v740_v40 }
  0x2c   :  { %469 = vmatmul.mubr.bf16.gmra.mxu1 %v741_v42  ;;  %692 = vmatprep.mubr.msk.bf16.mxu0 %vm372_vm0, %v744_v43 }
  0x2d   :  { %689 = vmatpush3.bf16.msra.mxu0 %v742_v41 }
  0x2e   :  { %690 = vmatprep.subr.bf16.mxu0 %v743_v44 }
  0x31   :  { %691 = vmatpush3.bf16.msra.mxu0 %v743_v44 }
  0x34   :  { %693 = vmatmul.mubr.msk.bf16.vlgmr.msra.gmra.mxu0 %vm372_vm0, %v745_v45 }
  0xe3   :  { %v638_v46 = vpop.f32.mrf.mxu0 }
  0xe4   :  { %v666_v47 = vpop.f32.mrf.mxu1 }
  0xe5   :  { %v639_v48 = vpop.f32.mrf.mxu0 }
  0xe6   :  { %v667_v49 = vpop.f32.mrf.mxu1  ;;  %v640_v60 = vadd.f32 %v639_v48, %v638_v46 }
  0xe7   :  { %v641_v50 = vpop.f32.mrf.mxu0  ;;  %v668_v6 = vadd.f32 %v667_v49, %v666_v47 }
  0xe8   :  { %v669_v51 = vpop.f32.mrf.mxu1  ;;  %v414_v5 = vadd.f32 %v640_v60, %v554_v59 }
  0xe9   :  { %v642_v52 = vpop.f32.mrf.mxu0 }
  0xea   :  { %v670_v53 = vpop.f32.mrf.mxu1  ;;  %v643_v1 = vadd.f32 %v642_v52, %v641_v50  ;;  %v463_v16 = vadd.f32 %v668_v6, %v414_v5 }
  0xeb   :  { %v644_v54 = vpop.f32.mrf.mxu0  ;;  %v671_v14 = vadd.f32 %v670_v53, %v669_v51 }
  0xec   :  { %v672_v55 = vpop.f32.mrf.mxu1  ;;  %v417_v11 = vadd.f32 %v643_v1, %v554_v59 }
  0xed   :  { %v645_v56 = vpop.f32.mrf.mxu0 }
  0xee   :  { %v646_v57 = vadd.f32 %v645_v56, %v644_v54  ;;  %v673_v58 = vpop.f32.mrf.mxu1  ;;  %v466_v20 = vadd.f32 %v671_v14, %v417_v11 }
  0xef   :  { %v674_v61 = vadd.f32 %v673_v58, %v672_v55  ;;  %v647_v62 = vpop.f32.mrf.mxu0 }
  0xf0   :  { %v422_v63 = vadd.f32 %v646_v57, %v554_v59  ;;  %v675_v0 = vpop.f32.mrf.mxu1 }
  0xf1   :  { %v648_v2 = vpop.f32.mrf.mxu0 }
  0xf2   :  { %v649_v3 = vadd.f32 %v648_v2, %v647_v62  ;;  %v676_v4 = vpop.f32.mrf.mxu1  ;;  %v471_v7 = vadd.f32 %v674_v61, %v422_v63 }
  0xf3   :  { %v677_v9 = vadd.f32 %v676_v4, %v675_v0 }
  0xf4   :  { %v425_v8 = vadd.f32 %v649_v3, %v554_v59  ;;  %v694_v10 = vpop.f32.mrf.mxu0 }
  0xf5   :  { %v520_v15 = vadd.f32 %v694_v10, %v471_v7 }
  0xf6   :  { %v511_v12 = vpop.f32.mrf.mxu0  ;;  %v474_v13 = vadd.f32 %v677_v9, %v425_v8 }
  0xf7   :  { %v512_v18 = vadd.f32 %v511_v12, %v463_v16  ;;  %v528_v22 = vmax.f32 %v520_v15, 0.0 }
  0xf8   :  { %v695_v17 = vpop.f32.mrf.mxu0 }
  0xf9   :  { %v523_v19 = vadd.f32 %v695_v17, %v474_v13  ;;  %v526_v25 = vmax.f32 %v512_v18, 0.0 }
  0xfa   :  { %v514_v21 = vpop.f32.mrf.mxu0 }
  0xfb   :  { %v529_v23 = vmax.f32 %v523_v19, 0.0  ;;  %v515_v24 = vadd.f32 %v514_v21, %v466_v20 }
  0xfd   :  { %v619_v26 = vpack.c.bf16 %v529_v23, %v528_v22  ;;  %v527_v27 = vmax.f32 %v515_v24, 0.0 }
  0xff   :  { %621 = vst [vmem:[%s916_s3 + $0x8] sm:$0xff] %v619_v26   ;;  %v614_v28 = vpack.c.bf16 %v527_v27, %v526_v25 }
 0x101   :  { %615 = vst [vmem:[%s916_s3] sm:$0xff] %v614_v28  }

// kernel: encoder_forward.5
= control target key start
LH: loop header
LB: loop body
LE: loop exit
PB: predicated region body
PF: predicated region fallthrough
CT: control target
= control target key end

     0   :  { %vm508_vm0 = vcmask 261120   ;;  %vm1622_vm1 = vcmask 519168   ;;  %s3049_s1 = inlined_call_operand.vmem [shape: bf16[800,64], index: 1, kind: input, shape index: {}]   ;;  %s3050_s0 = inlined_call_operand.vmem [shape: bf16[4,32,800], index: 0, kind: input, shape index: {}]   ;;  %s3051_s2 = inlined_call_operand.vmem [shape: f32[1,64], index: 2, kind: input, shape index: {}]   ;;  %s3052_s3 = inlined_call_operand.vmem [shape: bf16[32,64], index: 3, kind: output, shape index: {}]  }
   0x1   :  { %v2339_v0 = vld [vmem:[%s3049_s1 + $0x78] sm:$0xff]   ;;  %v2362_v4 = vld [vmem:[%s3049_s1 + $0x70] sm:$0xff]   ;;  %v2386_v8 = vld [vmem:[%s3049_s1 + $0x68] sm:$0xff]  }
   0x2   :  { %v2344_v1 = vld [vmem:[%s3049_s1 + $0xf8] sm:$0xff]   ;;  %1802 = vmatprep.subr.bf16.mxu0 %v2339_v0  ;;  %v2368_v5 = vld [vmem:[%s3049_s1 + $0xf0] sm:$0xff]   ;;  %v2392_v9 = vld [vmem:[%s3049_s1 + $0xe8] sm:$0xff]  }
   0x3   :  { %v2350_v2 = vld [vmem:[%s3049_s1 + $0x38] sm:$0xff]   ;;  %1830 = vmatprep.subr.bf16.mxu1 %v2344_v1  ;;  %v2374_v6 = vld [vmem:[%s3049_s1 + $0x30] sm:$0xff]   ;;  %v2398_v10 = vld [vmem:[%s3049_s1 + $0x28] sm:$0xff]  }
   0x4   :  { %v2356_v3 = vld [vmem:[%s3049_s1 + $0xb8] sm:$0xff]   ;;  %1803 = vmatpush3.bf16.msra.mxu0 %v2350_v2  ;;  %v2380_v7 = vld [vmem:[%s3049_s1 + $0xb0] sm:$0xff]   ;;  %v2404_v11 = vld [vmem:[%s3049_s1 + $0xa8] sm:$0xff]  }
   0x5   :  { %1831 = vmatpush3.bf16.msra.mxu1 %v2356_v3  ;;  %1804 = vmatprep.subr.bf16.mxu0 %v2362_v4  ;;  %v2410_v12 = vld [vmem:[%s3049_s1 + $0x60] sm:$0xff]   ;;  %v2434_v16 = vld [vmem:[%s3049_s1 + $0x58] sm:$0xff]   ;;  %v2458_v20 = vld [vmem:[%s3049_s1 + $0x50] sm:$0xff]  }
   0x6   :  { %1832 = vmatprep.subr.bf16.mxu1 %v2368_v5  ;;  %v2416_v13 = vld [vmem:[%s3049_s1 + $0xe0] sm:$0xff]   ;;  %v2440_v17 = vld [vmem:[%s3049_s1 + $0xd8] sm:$0xff]   ;;  %v2464_v21 = vld [vmem:[%s3049_s1 + $0xd0] sm:$0xff]  }
   0x7   :  { %v2422_v14 = vld [vmem:[%s3049_s1 + $0x20] sm:$0xff]   ;;  %v2446_v18 = vld [vmem:[%s3049_s1 + $0x18] sm:$0xff]   ;;  %v2470_v22 = vld [vmem:[%s3049_s1 + $0x10] sm:$0xff]  }
   0x8   :  { %1805 = vmatpush3.bf16.msra.mxu0 %v2374_v6  ;;  %v2428_v15 = vld [vmem:[%s3049_s1 + $0xa0] sm:$0xff]   ;;  %v2452_v19 = vld [vmem:[%s3049_s1 + $0x98] sm:$0xff]   ;;  %v2476_v23 = vld [vmem:[%s3049_s1 + $0x90] sm:$0xff]  }
   0x9   :  { %1833 = vmatpush3.bf16.msra.mxu1 %v2380_v7  ;;  %1806 = vmatprep.subr.bf16.mxu0 %v2386_v8  ;;  %v2482_v24 = vld [vmem:[%s3049_s1 + $0x48] sm:$0xff]   ;;  %v2506_v28 = vld [vmem:[%s3049_s1 + $0x40] sm:$0xff]   ;;  %v2543_v36 = vld [vmem:[%s3049_s1 + $0x178] sm:$0xff]  }
   0xa   :  { %1834 = vmatprep.subr.bf16.mxu1 %v2392_v9  ;;  %v2488_v25 = vld [vmem:[%s3049_s1 + $0xc8] sm:$0xff]   ;;  %v2512_v29 = vld [vmem:[%s3049_s1 + $0xc0] sm:$0xff]   ;;  %v2554_v38 = vld [vmem:[%s3049_s1 + $0x138] sm:$0xff]  }
   0xb   :  { %v2494_v26 = vld [vmem:[%s3049_s1 + $0x8] sm:$0xff]   ;;  %v2518_v30 = vld [vmem:[%s3049_s1] sm:$0xff]   ;;  %v2560_v39 = vld [vmem:[%s3049_s1 + $0x170] sm:$0xff]  }
   0xc   :  { %1807 = vmatpush3.bf16.msra.mxu0 %v2398_v10  ;;  %v2500_v27 = vld [vmem:[%s3049_s1 + $0x88] sm:$0xff]   ;;  %v2524_v31 = vld [vmem:[%s3049_s1 + $0x80] sm:$0xff]   ;;  %v2567_v40 = vld [vmem:[%s3049_s1 + $0x130] sm:$0xff]  }
   0xd   :  { %1835 = vmatpush3.bf16.msra.mxu1 %v2404_v11  ;;  %1808 = vmatprep.subr.bf16.mxu0 %v2410_v12  ;;  %v2218_v32 = vld [vmem:[%s3050_s0] ss:$28 sps:$4 sm:$0xff]   ;;  %v2221_v34 = vld [vmem:[%s3050_s0 + $0x8] ss:$28 sps:$4 sm:$0xff]   ;;  %v2233_v43 = vld [vmem:[%s3050_s0 + $0x38] ss:$28 sps:$4 sm:$0xff]  }
   0xe   :  { %1836 = vmatprep.subr.bf16.mxu1 %v2416_v13  ;;  %v2220_v33 = vld [vmem:[%s3050_s0 + $0x4] ss:$28 sps:$4 sm:$0xff]   ;;  %v2223_v35 = vld [vmem:[%s3050_s0 + $0xc] ss:$28 sps:$4 sm:$0xff]   ;;  %v2229_v41 = vld [vmem:[%s3050_s0 + $0x3c] ss:$28 sps:$4 sm:$0xff]  }
   0xf   :  { %547 = vmatprep.mubr.bf16.mxu0 %v2220_v33  ;;  %596 = vmatprep.mubr.bf16.mxu1 %v2223_v35  ;;  %v2548_v37 = vld [vmem:[%s3049_s1 + $0x188] sm:$0xff]   ;;  %v2231_v42 = vld [vmem:[%s3050_s0 + $0x44] ss:$28 sps:$4 sm:$0xff]   ;;  %v2240_v50 = vld [vmem:[%s3050_s0 + $0x18] ss:$28 sps:$4 sm:$0xff]  }
  0x10   :  { %1809 = vmatpush3.bf16.msra.mxu0 %v2422_v14  ;;  %v2234_v44 = vld [vmem:[%s3050_s0 + $0x40] ss:$28 sps:$4 sm:$0xff]   ;;  %v2586_v45 = vld [vmem:[%s3049_s1 + $0x168] sm:$0xff]   ;;  %v2636_v54 = vld [vmem:[%s3049_s1 + $0x150] sm:$0xff]  }
  0x11   :  { %1837 = vmatpush3.bf16.msra.mxu1 %v2428_v15  ;;  %1810 = vmatprep.subr.bf16.mxu0 %v2434_v16  ;;  %v2591_v46 = vld [vmem:[%s3049_s1 + $0x180] sm:$0xff]   ;;  %v2597_v47 = vld [vmem:[%s3049_s1 + $0x128] sm:$0xff]   ;;  %v2620_v51 = vld [vmem:[%s3049_s1 + $0x158] sm:$0xff]  }
  0x12   :  { %1838 = vmatprep.subr.bf16.mxu1 %v2440_v17  ;;  %v2603_v48 = vld [vmem:[%s3049_s1 + $0x160] sm:$0xff]   ;;  %v2242_v52 = vld [vmem:[%s3050_s0 + $0x50] ss:$28 sps:$4 sm:$0xff]   ;;  %v2630_v53 = vld [vmem:[%s3049_s1 + $0x118] sm:$0xff]  }
  0x13   :  { %v2610_v49 = vld [vmem:[%s3049_s1 + $0x120] sm:$0xff]   ;;  %v2645_v55 = vld [vmem:[%s3049_s1 + $0x110] sm:$0xff]   ;;  %v2651_v56 = vld [vmem:[%s3049_s1 + $0x148] sm:$0xff]  }
  0x14   :  { %1811 = vmatpush3.bf16.msra.mxu0 %v2446_v18  ;;  %v2252_v57 = vld [vmem:[%s3050_s0 + $0x14] ss:$28 sps:$4 sm:$0xff]   ;;  %v2662_v58 = vld [vmem:[%s3049_s1 + $0x108] sm:$0xff]   ;;  %v2668_v59 = vld [vmem:[%s3049_s1 + $0x140] sm:$0xff]  }
  0x15   :  { %1839 = vmatpush3.bf16.msra.mxu1 %v2452_v19  ;;  %1812 = vmatprep.subr.bf16.mxu0 %v2458_v20  ;;  %v2258_v60 = vld [vmem:[%s3050_s0 + $0x74] ss:$28 sps:$4 sm:$0xff]   ;;  %v2679_v61 = vld [vmem:[%s3049_s1 + $0x100] sm:$0xff]   ;;  %v2253_v63 = vld [vmem:[%s3050_s0 + $0x4c] ss:$28 sps:$4 sm:$0xff]  }
  0x16   :  { %1840 = vmatprep.subr.bf16.mxu1 %v2464_v21  ;;  %v2250_v62 = vld [vmem:[%s3050_s0 + $0x10] ss:$28 sps:$4 sm:$0xff]   ;;  %v2261_v33 = vld [vmem:[%s3050_s0 + $0x7c] ss:$28 sps:$4 sm:$0xff]  }
  0x17   :  { %v2262_v35 = vld [vmem:[%s3050_s0 + $0xac] ss:$28 sps:$4 sm:$0xff]  }
  0x18   :  { %1813 = vmatpush3.bf16.msra.mxu0 %v2470_v22 }
  0x19   :  { %1841 = vmatpush3.bf16.msra.mxu1 %v2476_v23  ;;  %1814 = vmatprep.subr.bf16.mxu0 %v2482_v24 }
  0x1a   :  { %1842 = vmatprep.subr.bf16.mxu1 %v2488_v25 }
  0x1c   :  { %1815 = vmatpush3.bf16.msra.mxu0 %v2494_v26 }
  0x1d   :  { %1843 = vmatpush3.bf16.msra.mxu1 %v2500_v27  ;;  %1816 = vmatprep.subr.bf16.mxu0 %v2506_v28 }
  0x1e   :  { %1844 = vmatprep.subr.bf16.mxu1 %v2512_v29 }
  0x20   :  { %1817 = vmatpush3.bf16.msra.mxu0 %v2518_v30 }
  0x21   :  { %1845 = vmatpush3.bf16.msra.mxu1 %v2524_v31  ;;  %1858 = vmatprep.subr.bf16.mxu0 %v2543_v36 }
  0x22   :  { %2154 = vmatprep.subr.bf16.mxu1 %v2548_v37 }
  0x23   :  { %548 = vmatmul.mubr.bf16.vlgmr.msra.gmra.mxu0 %v2218_v32  ;;  %v2255_v32 = vld [vmem:[%s3050_s0 + $0x48] ss:$28 sps:$4 sm:$0xff]  }
  0x24   :  { %597 = vmatmul.mubr.bf16.vlgmr.msra.gmra.mxu1 %v2221_v34  ;;  %1859 = vmatpush3.bf16.msra.mxu0 %v2554_v38  ;;  %v2256_v34 = vld [vmem:[%s3050_s0 + $0x70] ss:$28 sps:$4 sm:$0xff]  }
  0x25   :  { %2155 = vmatpush3.bf16.msra.mxu1 %v2548_v37  ;;  %1860 = vmatprep.subr.bf16.mxu0 %v2560_v39 }
  0x26   :  { %555 = vmatprep.mubr.bf16.mxu0 %v2229_v41  ;;  %604 = vmatprep.mubr.bf16.mxu1 %v2231_v42  ;;  %v2264_v41 = vld [vmem:[%s3050_s0 + $0xa8] ss:$28 sps:$4 sm:$0xff]  }
  0x27   :  { %2156 = vmatprep.subr.bf16.mxu1 %v2591_v46  ;;  %v2270_v42 = vld [vmem:[%s3050_s0 + $0x84] ss:$28 sps:$4 sm:$0xff]  }
  0x28   :  { %1861 = vmatpush3.bf16.msra.mxu0 %v2567_v40 }
  0x29   :  { %1862 = vmatprep.subr.bf16.mxu0 %v2586_v45  ;;  %2157 = vmatpush3.bf16.msra.mxu1 %v2591_v46 }
  0x2a   :  { %1890 = vmatprep.subr.bf16.mxu1 %v2339_v0 }
  0x2b   :  { %556 = vmatmul.mubr.bf16.gmra.mxu0 %v2233_v43  ;;  %v2259_v43 = vld [vmem:[%s3050_s0 + $0x78] ss:$28 sps:$4 sm:$0xff]  }
  0x2c   :  { %605 = vmatmul.mubr.bf16.gmra.mxu1 %v2234_v44  ;;  %1863 = vmatpush3.bf16.msra.mxu0 %v2597_v47  ;;  %v2265_v44 = vld [vmem:[%s3050_s0 + $0xb4] ss:$28 sps:$4 sm:$0xff]  }
  0x2d   :  { %1864 = vmatprep.subr.bf16.mxu0 %v2603_v48  ;;  %2158 = vmatprep.mubr.msk.bf16.mxu1 %vm508_vm0, %v2240_v50  ;;  %v2267_v50 = vld [vmem:[%s3050_s0 + $0xb0] ss:$28 sps:$4 sm:$0xff]  }
  0x2e   :  { %645 = vmatprep.mubr.bf16.mxu0 %v2252_v57  ;;  %v2268_v57 = vld [vmem:[%s3050_s0 + $0x80] ss:$28 sps:$4 sm:$0xff]  }
  0x30   :  { %1865 = vmatpush3.bf16.msra.mxu0 %v2610_v49 }
  0x31   :  { %1866 = vmatprep.subr.bf16.mxu0 %v2620_v51 }
  0x34   :  { %2159 = vmatmul.mubr.msk.bf16.vlgmr.msra.gmra.mxu1 %vm508_vm0, %v2242_v52  ;;  %1867 = vmatpush3.bf16.msra.mxu0 %v2630_v53  ;;  %v2271_v52 = vld [vmem:[%s3050_s0 + $0x88] ss:$28 sps:$4 sm:$0xff]  }
  0x35   :  { %1891 = vmatpush3.bf16.msra.mxu1 %v2350_v2  ;;  %1868 = vmatprep.subr.bf16.mxu0 %v2636_v54 }
  0x36   :  { %1892 = vmatprep.subr.bf16.mxu1 %v2362_v4  ;;  %840 = vmatprep.mubr.bf16.mxu1 %v2258_v60  ;;  %v2272_v60 = vld [vmem:[%s3050_s0 + $0xc0] ss:$28 sps:$4 sm:$0xff]  }
  0x38   :  { %1869 = vmatpush3.bf16.msra.mxu0 %v2645_v55 }
  0x39   :  { %1893 = vmatpush3.bf16.msra.mxu1 %v2374_v6  ;;  %1870 = vmatprep.subr.bf16.mxu0 %v2651_v56 }
  0x3a   :  { %1894 = vmatprep.subr.bf16.mxu1 %v2386_v8 }
  0x3c   :  { %1871 = vmatpush3.bf16.msra.mxu0 %v2662_v58 }
  0x3d   :  { %1895 = vmatpush3.bf16.msra.mxu1 %v2398_v10  ;;  %1872 = vmatprep.subr.bf16.mxu0 %v2668_v59 }
  0x3e   :  { %1896 = vmatprep.subr.bf16.mxu1 %v2410_v12 }
  0x40   :  { %1873 = vmatpush3.bf16.msra.mxu0 %v2679_v61 }
  0x41   :  { %1897 = vmatpush3.bf16.msra.mxu1 %v2422_v14  ;;  %1918 = vmatprep.subr.bf16.mxu0 %v2344_v1 }
  0x42   :  { %1898 = vmatprep.subr.bf16.mxu1 %v2434_v16 }
  0x43   :  { %646 = vmatmul.mubr.bf16.vlgmr.msra.gmra.mxu0 %v2250_v62  ;;  %v2273_v62 = vld [vmem:[%s3050_s0 + $0xbc] ss:$28 sps:$4 sm:$0xff]  }
  0x44   :  { %1919 = vmatpush3.bf16.msra.mxu0 %v2356_v3  ;;  %653 = vmatprep.mubr.bf16.mxu0 %v2253_v63  ;;  %v2278_v63 = vld [vmem:[%s3050_s0 + $0xe4] ss:$28 sps:$4 sm:$0xff]  }
  0x45   :  { %1899 = vmatpush3.bf16.msra.mxu1 %v2446_v18  ;;  %1920 = vmatprep.subr.bf16.mxu0 %v2368_v5 }
  0x46   :  { %1900 = vmatprep.subr.bf16.mxu1 %v2458_v20 }
  0x48   :  { %1921 = vmatpush3.bf16.msra.mxu0 %v2380_v7 }
  0x49   :  { %1901 = vmatpush3.bf16.msra.mxu1 %v2470_v22  ;;  %1922 = vmatprep.subr.bf16.mxu0 %v2392_v9 }
  0x4a   :  { %1902 = vmatprep.subr.bf16.mxu1 %v2482_v24 }
  0x4b   :  { %654 = vmatmul.mubr.bf16.gmra.mxu0 %v2255_v32  ;;  %v2275_v32 = vld [vmem:[%s3050_s0 + $0xb8] ss:$28 sps:$4 sm:$0xff]  }
  0x4c   :  { %1923 = vmatpush3.bf16.msra.mxu0 %v2404_v11  ;;  %889 = vmatprep.mubr.bf16.mxu0 %v2261_v33  ;;  %v2281_v33 = vld [vmem:[%s3050_s0 + $0xec] ss:$28 sps:$4 sm:$0xff]  }
  0x4d   :  { %1903 = vmatpush3.bf16.msra.mxu1 %v2494_v26  ;;  %1924 = vmatprep.subr.bf16.mxu0 %v2416_v13 }
  0x4e   :  { %1904 = vmatprep.subr.bf16.mxu1 %v2506_v28 }
  0x50   :  { %1925 = vmatpush3.bf16.msra.mxu0 %v2428_v15 }
  0x51   :  { %1905 = vmatpush3.bf16.msra.mxu1 %v2518_v30  ;;  %1926 = vmatprep.subr.bf16.mxu0 %v2440_v17 }
  0x52   :  { %1946 = vmatprep.subr.bf16.mxu1 %v2543_v36 }
  0x54   :  { %841 = vmatmul.mubr.bf16.vlgmr.msra.gmra.mxu1 %v2256_v34  ;;  %1927 = vmatpush3.bf16.msra.mxu0 %v2452_v19  ;;  %v2279_v34 = vld [vmem:[%s3050_s0 + $0xe8] ss:$28 sps:$4 sm:$0xff]  }
  0x55   :  { %1947 = vmatpush3.bf16.msra.mxu1 %v2554_v38  ;;  %848 = vmatprep.mubr.bf16.mxu1 %v2262_v35  ;;  %v2276_v35 = vld [vmem:[%s3050_s0 + $0xe0] ss:$28 sps:$4 sm:$0xff]  }
  0x56   :  { %1948 = vmatprep.subr.bf16.mxu1 %v2560_v39  ;;  %1928 = vmatprep.subr.bf16.mxu0 %v2464_v21 }
  0x58   :  { %1929 = vmatpush3.bf16.msra.mxu0 %v2476_v23 }
  0x59   :  { %1949 = vmatpush3.bf16.msra.mxu1 %v2567_v40  ;;  %1930 = vmatprep.subr.bf16.mxu0 %v2488_v25 }
  0x5a   :  { %1950 = vmatprep.subr.bf16.mxu1 %v2586_v45 }
  0x5c   :  { %849 = vmatmul.mubr.bf16.gmra.mxu1 %v2264_v41  ;;  %1931 = vmatpush3.bf16.msra.mxu0 %v2500_v27  ;;  %v2282_v41 = vld [vmem:[%s3050_s0 + $0x11c] ss:$28 sps:$4 sm:$0xff]  }
  0x5d   :  { %1951 = vmatpush3.bf16.msra.mxu1 %v2597_v47  ;;  %938 = vmatprep.mubr.bf16.mxu1 %v2270_v42  ;;  %v2284_v42 = vld [vmem:[%s3050_s0 + $0x124] ss:$28 sps:$4 sm:$0xff]  }
  0x5e   :  { %1952 = vmatprep.subr.bf16.mxu1 %v2603_v48  ;;  %1932 = vmatprep.subr.bf16.mxu0 %v2512_v29 }
  0x60   :  { %1933 = vmatpush3.bf16.msra.mxu0 %v2524_v31 }
  0x61   :  { %1953 = vmatpush3.bf16.msra.mxu1 %v2610_v49  ;;  %2162 = vmatprep.subr.bf16.mxu0 %v2548_v37 }
  0x62   :  { %1954 = vmatprep.subr.bf16.mxu1 %v2620_v51 }
  0x63   :  { %890 = vmatmul.mubr.bf16.vlgmr.msra.gmra.mxu0 %v2259_v43  ;;  %v2287_v43 = vld [vmem:[%s3050_s0 + $0x120] ss:$28 sps:$4 sm:$0xff]  }
  0x64   :  { %897 = vmatprep.mubr.bf16.mxu0 %v2265_v44  ;;  %2163 = vmatpush3.bf16.msra.mxu0 %v2548_v37  ;;  %v2286_v44 = vld [vmem:[%s3050_s0 + $0x118] ss:$28 sps:$4 sm:$0xff]  }
  0x65   :  { %1955 = vmatpush3.bf16.msra.mxu1 %v2630_v53  ;;  %2164 = vmatprep.subr.bf16.mxu0 %v2591_v46 }
  0x66   :  { %1956 = vmatprep.subr.bf16.mxu1 %v2636_v54 }
  0x68   :  { %2165 = vmatpush3.bf16.msra.mxu0 %v2591_v46 }
  0x69   :  { %1957 = vmatpush3.bf16.msra.mxu1 %v2645_v55  ;;  %1978 = vmatprep.subr.bf16.mxu0 %v2339_v0 }
  0x6a   :  { %1958 = vmatprep.subr.bf16.mxu1 %v2651_v56 }
  0x6b   :  { %898 = vmatmul.mubr.bf16.gmra.mxu0 %v2267_v50  ;;  %v2288_v50 = vld [vmem:[%s3050_s0 + $0xf8] ss:$28 sps:$4 sm:$0xff]  }
  0x6c   :  { %2166 = vmatprep.mubr.msk.bf16.mxu0 %vm508_vm0, %v2271_v52  ;;  %v2292_v52 = vld [vmem:[%s3050_s0 + $0xf4] ss:$28 sps:$4 sm:$0xff]  }
  0x6d   :  { %1959 = vmatpush3.bf16.msra.mxu1 %v2662_v58 }
  0x6e   :  { %1960 = vmatprep.subr.bf16.mxu1 %v2668_v59 }
  0x71   :  { %1961 = vmatpush3.bf16.msra.mxu1 %v2679_v61 }
  0x72   :  { %2006 = vmatprep.subr.bf16.mxu1 %v2344_v1 }
  0x73   :  { %2167 = vmatmul.mubr.msk.bf16.vlgmr.msra.gmra.mxu0 %vm508_vm0, %v2272_v60 }
  0x74   :  { %939 = vmatmul.mubr.bf16.vlgmr.msra.gmra.mxu1 %v2268_v57  ;;  %1979 = vmatpush3.bf16.msra.mxu0 %v2350_v2  ;;  %v2289_v57 = vld [vmem:[%s3050_s0 + $0x130] ss:$28 sps:$4 sm:$0xff]  }
  0x75   :  { %2007 = vmatpush3.bf16.msra.mxu1 %v2356_v3  ;;  %1980 = vmatprep.subr.bf16.mxu0 %v2362_v4 }
  0x76   :  { %2008 = vmatprep.subr.bf16.mxu1 %v2368_v5  ;;  %946 = vmatprep.mubr.bf16.mxu1 %v2273_v62 }
  0x77   :  { %1137 = vmatprep.mubr.bf16.mxu0 %v2278_v63 }
  0x78   :  { %1981 = vmatpush3.bf16.msra.mxu0 %v2374_v6 }
  0x79   :  { %2009 = vmatpush3.bf16.msra.mxu1 %v2380_v7  ;;  %1982 = vmatprep.subr.bf16.mxu0 %v2386_v8 }
  0x7a   :  { %2010 = vmatprep.subr.bf16.mxu1 %v2392_v9 }
  0x7c   :  { %947 = vmatmul.mubr.bf16.gmra.mxu1 %v2275_v32  ;;  %1983 = vmatpush3.bf16.msra.mxu0 %v2398_v10 }
  0x7d   :  { %2011 = vmatpush3.bf16.msra.mxu1 %v2404_v11  ;;  %1186 = vmatprep.mubr.bf16.mxu1 %v2281_v33 }
  0x7e   :  { %2012 = vmatprep.subr.bf16.mxu1 %v2416_v13  ;;  %1984 = vmatprep.subr.bf16.mxu0 %v2410_v12 }
  0x80   :  { %1985 = vmatpush3.bf16.msra.mxu0 %v2422_v14 }
  0x81   :  { %2013 = vmatpush3.bf16.msra.mxu1 %v2428_v15  ;;  %1986 = vmatprep.subr.bf16.mxu0 %v2434_v16 }
  0x82   :  { %2014 = vmatprep.subr.bf16.mxu1 %v2440_v17 }
  0x84   :  { %1987 = vmatpush3.bf16.msra.mxu0 %v2446_v18 }
  0x85   :  { %2015 = vmatpush3.bf16.msra.mxu1 %v2452_v19  ;;  %1988 = vmatprep.subr.bf16.mxu0 %v2458_v20 }
  0x86   :  { %2016 = vmatprep.subr.bf16.mxu1 %v2464_v21 }
  0x88   :  { %1989 = vmatpush3.bf16.msra.mxu0 %v2470_v22 }
  0x89   :  { %2017 = vmatpush3.bf16.msra.mxu1 %v2476_v23  ;;  %1990 = vmatprep.subr.bf16.mxu0 %v2482_v24 }
  0x8a   :  { %2018 = vmatprep.subr.bf16.mxu1 %v2488_v25 }
  0x8c   :  { %1991 = vmatpush3.bf16.msra.mxu0 %v2494_v26 }
  0x8d   :  { %2019 = vmatpush3.bf16.msra.mxu1 %v2500_v27  ;;  %1992 = vmatprep.subr.bf16.mxu0 %v2506_v28 }
  0x8e   :  { %2020 = vmatprep.subr.bf16.mxu1 %v2512_v29 }
  0x90   :  { %1993 = vmatpush3.bf16.msra.mxu0 %v2518_v30 }
  0x91   :  { %2021 = vmatpush3.bf16.msra.mxu1 %v2524_v31  ;;  %2034 = vmatprep.subr.bf16.mxu0 %v2543_v36 }
  0x92   :  { %2170 = vmatprep.subr.bf16.mxu1 %v2548_v37 }
  0x93   :  { %1138 = vmatmul.mubr.bf16.vlgmr.msra.gmra.mxu0 %v2276_v35 }
  0x94   :  { %1187 = vmatmul.mubr.bf16.vlgmr.msra.gmra.mxu1 %v2279_v34  ;;  %2035 = vmatpush3.bf16.msra.mxu0 %v2554_v38 }
  0x95   :  { %2171 = vmatpush3.bf16.msra.mxu1 %v2548_v37  ;;  %1145 = vmatprep.mubr.bf16.mxu0 %v2282_v41 }
  0x96   :  { %2036 = vmatprep.subr.bf16.mxu0 %v2560_v39  ;;  %1194 = vmatprep.mubr.bf16.mxu1 %v2284_v42 }
  0x97   :  { %2172 = vmatprep.subr.bf16.mxu1 %v2591_v46 }
  0x98   :  { %2037 = vmatpush3.bf16.msra.mxu0 %v2567_v40 }
  0x99   :  { %2173 = vmatpush3.bf16.msra.mxu1 %v2591_v46  ;;  %2038 = vmatprep.subr.bf16.mxu0 %v2586_v45 }
  0x9a   :  { %2066 = vmatprep.subr.bf16.mxu1 %v2339_v0  ;;  %v2298_v0 = vld [vmem:[%s3050_s0 + $0x154] ss:$28 sps:$4 sm:$0xff]  }
  0x9b   :  { %1146 = vmatmul.mubr.bf16.gmra.mxu0 %v2286_v44 }
  0x9c   :  { %1195 = vmatmul.mubr.bf16.gmra.mxu1 %v2287_v43  ;;  %2039 = vmatpush3.bf16.msra.mxu0 %v2597_v47 }
  0x9d   :  { %2174 = vmatprep.mubr.msk.bf16.mxu1 %vm508_vm0, %v2288_v50  ;;  %1235 = vmatprep.mubr.bf16.mxu0 %v2292_v52 }
  0x9e   :  { %2040 = vmatprep.subr.bf16.mxu0 %v2603_v48 }
  0xa0   :  { %2041 = vmatpush3.bf16.msra.mxu0 %v2610_v49 }
  0xa1   :  { %2042 = vmatprep.subr.bf16.mxu0 %v2620_v51 }
  0xa4   :  { %2175 = vmatmul.mubr.msk.bf16.vlgmr.msra.gmra.mxu1 %vm508_vm0, %v2289_v57  ;;  %2043 = vmatpush3.bf16.msra.mxu0 %v2630_v53 }
  0xa5   :  { %2067 = vmatpush3.bf16.msra.mxu1 %v2350_v2  ;;  %1430 = vmatprep.mubr.bf16.mxu1 %v2298_v0  ;;  %v2290_v2 = vld [vmem:[%s3050_s0 + $0xf0] ss:$28 sps:$4 sm:$0xff]  }
  0xa6   :  { %2068 = vmatprep.subr.bf16.mxu1 %v2362_v4  ;;  %2044 = vmatprep.subr.bf16.mxu0 %v2636_v54  ;;  %v2293_v4 = vld [vmem:[%s3050_s0 + $0x12c] ss:$28 sps:$4 sm:$0xff]  }
  0xa8   :  { %2045 = vmatpush3.bf16.msra.mxu0 %v2645_v55 }
  0xa9   :  { %2069 = vmatpush3.bf16.msra.mxu1 %v2374_v6  ;;  %2046 = vmatprep.subr.bf16.mxu0 %v2651_v56  ;;  %v2302_v6 = vld [vmem:[%s3050_s0 + $0x18c] ss:$28 sps:$4 sm:$0xff]  }
  0xaa   :  { %2070 = vmatprep.subr.bf16.mxu1 %v2386_v8  ;;  %v2310_v8 = vld [vmem:[%s3050_s0 + $0x164] ss:$28 sps:$4 sm:$0xff]  }
  0xac   :  { %2047 = vmatpush3.bf16.msra.mxu0 %v2662_v58 }
  0xad   :  { %2071 = vmatpush3.bf16.msra.mxu1 %v2398_v10  ;;  %2048 = vmatprep.subr.bf16.mxu0 %v2668_v59  ;;  %v2305_v10 = vld [vmem:[%s3050_s0 + $0x194] ss:$28 sps:$4 sm:$0xff]  }
  0xae   :  { %2072 = vmatprep.subr.bf16.mxu1 %v2410_v12  ;;  %v2311_v12 = vld [vmem:[%s3050_s0 + $0x168] ss:$28 sps:$4 sm:$0xff]  }
  0xb0   :  { %2049 = vmatpush3.bf16.msra.mxu0 %v2679_v61 }
  0xb1   :  { %2073 = vmatpush3.bf16.msra.mxu1 %v2422_v14  ;;  %2094 = vmatprep.subr.bf16.mxu0 %v2344_v1  ;;  %v2295_v1 = vld [vmem:[%s3050_s0 + $0x128] ss:$28 sps:$4 sm:$0xff]   ;;  %v2312_v14 = vld [vmem:[%s3050_s0 + $0x1a0] ss:$28 sps:$4 sm:$0xff]  }
  0xb2   :  { %2074 = vmatprep.subr.bf16.mxu1 %v2434_v16 }
  0xb3   :  { %1236 = vmatmul.mubr.bf16.vlgmr.msra.gmra.mxu0 %v2290_v2 }
  0xb4   :  { %2095 = vmatpush3.bf16.msra.mxu0 %v2356_v3  ;;  %1243 = vmatprep.mubr.bf16.mxu0 %v2293_v4  ;;  %v2301_v3 = vld [vmem:[%s3050_s0 + $0x15c] ss:$28 sps:$4 sm:$0xff]  }
  0xb5   :  { %2075 = vmatpush3.bf16.msra.mxu1 %v2446_v18  ;;  %2096 = vmatprep.subr.bf16.mxu0 %v2368_v5  ;;  %v2296_v5 = vld [vmem:[%s3050_s0 + $0x150] ss:$28 sps:$4 sm:$0xff]   ;;  %v2969_v18 = vld [vmem:[%s3051_s2] ss:$0 sm:$0xff] }
  0xb6   :  { %2076 = vmatprep.subr.bf16.mxu1 %v2458_v20 }
  0xb8   :  { %2097 = vmatpush3.bf16.msra.mxu0 %v2380_v7  ;;  %v2304_v7 = vld [vmem:[%s3050_s0 + $0x188] ss:$28 sps:$4 sm:$0xff]  }
  0xb9   :  { %2077 = vmatpush3.bf16.msra.mxu1 %v2470_v22  ;;  %2098 = vmatprep.subr.bf16.mxu0 %v2392_v9  ;;  %v2299_v9 = vld [vmem:[%s3050_s0 + $0x158] ss:$28 sps:$4 sm:$0xff]  }
  0xba   :  { %2078 = vmatprep.subr.bf16.mxu1 %v2482_v24 }
  0xbb   :  { %1244 = vmatmul.mubr.bf16.gmra.mxu0 %v2295_v1 }
  0xbc   :  { %2099 = vmatpush3.bf16.msra.mxu0 %v2404_v11  ;;  %1479 = vmatprep.mubr.bf16.mxu0 %v2301_v3  ;;  %v2307_v11 = vld [vmem:[%s3050_s0 + $0x190] ss:$28 sps:$4 sm:$0xff]  }
  0xbd   :  { %2079 = vmatpush3.bf16.msra.mxu1 %v2494_v26  ;;  %2100 = vmatprep.subr.bf16.mxu0 %v2416_v13  ;;  %v2308_v13 = vld [vmem:[%s3050_s0 + $0x160] ss:$28 sps:$4 sm:$0xff]   ;;  %v2315_v26 = vld [vmem:[%s3050_s0 + $0x198] ss:$28 sps:$4 sm:$0xff]  }
  0xbe   :  { %2080 = vmatprep.subr.bf16.mxu1 %v2506_v28 }
  0xc0   :  { %2101 = vmatpush3.bf16.msra.mxu0 %v2428_v15  ;;  %v2313_v15 = vld [vmem:[%s3050_s0 + $0x19c] ss:$28 sps:$4 sm:$0xff]  }
  0xc1   :  { %2081 = vmatpush3.bf16.msra.mxu1 %v2518_v30  ;;  %2102 = vmatprep.subr.bf16.mxu0 %v2440_v17 }
  0xc2   :  { %2122 = vmatprep.subr.bf16.mxu1 %v2543_v36 }
  0xc4   :  { %1431 = vmatmul.mubr.bf16.vlgmr.msra.gmra.mxu1 %v2296_v5  ;;  %2103 = vmatpush3.bf16.msra.mxu0 %v2452_v19 }
  0xc5   :  { %2123 = vmatpush3.bf16.msra.mxu1 %v2554_v38  ;;  %1438 = vmatprep.mubr.bf16.mxu1 %v2302_v6 }
  0xc6   :  { %2124 = vmatprep.subr.bf16.mxu1 %v2560_v39  ;;  %2104 = vmatprep.subr.bf16.mxu0 %v2464_v21 }
  0xc8   :  { %2105 = vmatpush3.bf16.msra.mxu0 %v2476_v23 }
  0xc9   :  { %2125 = vmatpush3.bf16.msra.mxu1 %v2567_v40  ;;  %2106 = vmatprep.subr.bf16.mxu0 %v2488_v25 }
  0xca   :  { %2126 = vmatprep.subr.bf16.mxu1 %v2586_v45 }
  0xcc   :  { %1439 = vmatmul.mubr.bf16.gmra.mxu1 %v2304_v7  ;;  %2107 = vmatpush3.bf16.msra.mxu0 %v2500_v27 }
  0xcd   :  { %2127 = vmatpush3.bf16.msra.mxu1 %v2597_v47  ;;  %1528 = vmatprep.mubr.bf16.mxu1 %v2310_v8 }
  0xce   :  { %2128 = vmatprep.subr.bf16.mxu1 %v2603_v48  ;;  %2108 = vmatprep.subr.bf16.mxu0 %v2512_v29 }
  0xd0   :  { %2109 = vmatpush3.bf16.msra.mxu0 %v2524_v31 }
  0xd1   :  { %2129 = vmatpush3.bf16.msra.mxu1 %v2610_v49  ;;  %2178 = vmatprep.subr.bf16.mxu0 %v2548_v37 }
  0xd2   :  { %2130 = vmatprep.subr.bf16.mxu1 %v2620_v51 }
  0xd3   :  { %1480 = vmatmul.mubr.bf16.vlgmr.msra.gmra.mxu0 %v2299_v9 }
  0xd4   :  { %1487 = vmatprep.mubr.bf16.mxu0 %v2305_v10  ;;  %2179 = vmatpush3.bf16.msra.mxu0 %v2548_v37 }
  0xd5   :  { %2131 = vmatpush3.bf16.msra.mxu1 %v2630_v53  ;;  %2180 = vmatprep.subr.bf16.mxu0 %v2591_v46 }
  0xd6   :  { %2132 = vmatprep.subr.bf16.mxu1 %v2636_v54 }
  0xd8   :  { %2181 = vmatpush3.bf16.msra.mxu0 %v2591_v46 }
  0xd9   :  { %2133 = vmatpush3.bf16.msra.mxu1 %v2645_v55 }
  0xda   :  { %2134 = vmatprep.subr.bf16.mxu1 %v2651_v56 }
  0xdb   :  { %1488 = vmatmul.mubr.bf16.gmra.mxu0 %v2307_v11 }
  0xdc   :  { %2182 = vmatprep.mubr.msk.bf16.mxu0 %vm508_vm0, %v2311_v12 }
  0xdd   :  { %2135 = vmatpush3.bf16.msra.mxu1 %v2662_v58 }
  0xde   :  { %2136 = vmatprep.subr.bf16.mxu1 %v2668_v59 }
  0xe1   :  { %2137 = vmatpush3.bf16.msra.mxu1 %v2679_v61 }
  0xe3   :  { %v1818_v16 = vpop.f32.mrf.mxu0  ;;  %2183 = vmatmul.mubr.msk.bf16.vlgmr.msra.gmra.mxu0 %vm508_vm0, %v2312_v14 }
  0xe4   :  { %1529 = vmatmul.mubr.bf16.vlgmr.msra.gmra.mxu1 %v2308_v13  ;;  %v1846_v17 = vpop.f32.mrf.mxu1 }
  0xe5   :  { %v1819_v19 = vpop.f32.mrf.mxu0  ;;  %1536 = vmatprep.mubr.bf16.mxu1 %v2313_v15 }
  0xe6   :  { %v1820_v20 = vadd.f32 %v1819_v19, %v1818_v16  ;;  %v1847_v21 = vpop.f32.mrf.mxu1 }
  0xe7   :  { %v1848_v22 = vadd.f32 %v1847_v21, %v1846_v17  ;;  %v1821_v23 = vpop.f32.mrf.mxu0 }
  0xe8   :  { %v550_v24 = vadd.f32 %v1820_v20, %v2969_v18  ;;  %v1849_v25 = vpop.f32.mrf.mxu1 }
  0xe9   :  { %v1822_v27 = vpop.f32.mrf.mxu0 }
  0xea   :  { %v599_v28 = vadd.f32 %v1848_v22, %v550_v24  ;;  %v1823_v29 = vadd.f32 %v1822_v27, %v1821_v23  ;;  %v1850_v30 = vpop.f32.mrf.mxu1 }
  0xeb   :  { %v1851_v31 = vadd.f32 %v1850_v30, %v1849_v25  ;;  %v1824_v36 = vpop.f32.mrf.mxu0 }
  0xec   :  { %v553_v37 = vadd.f32 %v1823_v29, %v2969_v18  ;;  %1537 = vmatmul.mubr.bf16.gmra.mxu1 %v2315_v26  ;;  %v1852_v38 = vpop.f32.mrf.mxu1 }
  0xed   :  { %v1825_v39 = vpop.f32.mrf.mxu0 }
  0xee   :  { %v602_v40 = vadd.f32 %v1851_v31, %v553_v37  ;;  %v1826_v45 = vadd.f32 %v1825_v39, %v1824_v36  ;;  %v1853_v46 = vpop.f32.mrf.mxu1 }
  0xef   :  { %v1854_v47 = vadd.f32 %v1853_v46, %v1852_v38  ;;  %v1827_v48 = vpop.f32.mrf.mxu0 }
  0xf0   :  { %v558_v49 = vadd.f32 %v1826_v45, %v2969_v18  ;;  %v1855_v51 = vpop.f32.mrf.mxu1 }
  0xf1   :  { %v1828_v53 = vpop.f32.mrf.mxu0 }
  0xf2   :  { %v607_v54 = vadd.f32 %v1854_v47, %v558_v49  ;;  %v1829_v55 = vadd.f32 %v1828_v53, %v1827_v48  ;;  %v1856_v56 = vpop.f32.mrf.mxu1 }
  0xf3   :  { %v1857_v58 = vadd.f32 %v1856_v56, %v1855_v51 }
  0xf4   :  { %v561_v59 = vadd.f32 %v1829_v55, %v2969_v18  ;;  %v2160_v60 = vpop.f32.mrf.mxu1 }
  0xf6   :  { %v610_v61 = vadd.f32 %v1857_v58, %v561_v59  ;;  %v696_v63 = vpop.f32.mrf.mxu1 }
  0xf8   :  { %v2161_v41 = vpop.f32.mrf.mxu1 }
  0xfa   :  { %v699_v57 = vpop.f32.mrf.mxu1 }
 0x103   :  { %v1874_v62 = vpop.f32.mrf.mxu0 }
 0x105   :  { %v1875_v32 = vpop.f32.mrf.mxu0 }
 0x106   :  { %v1876_v33 = vadd.f32 %v1875_v32, %v1874_v62 }
 0x107   :  { %v1877_v34 = vpop.f32.mrf.mxu0 }
 0x108   :  { %v648_v35 = vadd.f32 %v1876_v33, %v599_v28 }
 0x109   :  { %v1878_v42 = vpop.f32.mrf.mxu0 }
 0x10a   :  { %v2979_v43 = vadd.f32 %v696_v63, %v648_v35  ;;  %v1879_v44 = vadd.f32 %v1878_v42, %v1877_v34 }
 0x10b   :  { %v1880_v50 = vpop.f32.mrf.mxu0 }
 0x10c   :  { %v651_v52 = vadd.f32 %v1879_v44, %v602_v40  ;;  %v711_v35 = vmax.f32 %v2979_v43, 0.0 }
 0x10d   :  { %v1881_v0 = vpop.f32.mrf.mxu0 }
 0x10e   :  { %v2981_v2 = vadd.f32 %v699_v57, %v651_v52  ;;  %v1882_v4 = vadd.f32 %v1881_v0, %v1880_v50 }
 0x10f   :  { %v1883_v1 = vpop.f32.mrf.mxu0 }
 0x110   :  { %v656_v3 = vadd.f32 %v1882_v4, %v607_v54 }
 0x111   :  { %v1884_v5 = vpop.f32.mrf.mxu0 }
 0x112   :  { %v2983_v6 = vadd.f32 %v2160_v60, %v656_v3  ;;  %v1885_v7 = vadd.f32 %v1884_v5, %v1883_v1  ;;  %v712_v1 = vmax.f32 %v2981_v2, 0.0 }
 0x114   :  { %v1906_v8 = vpop.f32.mrf.mxu1  ;;  %v659_v9 = vadd.f32 %v1885_v7, %v610_v61 }
 0x116   :  { %v1907_v10 = vpop.f32.mrf.mxu1  ;;  %v2985_v12 = vadd.f32 %v2161_v41, %v659_v9 }
 0x117   :  { %v1908_v11 = vadd.f32 %v1907_v10, %v1906_v8  ;;  %v713_v10 = vmax.f32 %v2983_v6, 0.0 }
 0x118   :  { %v1909_v13 = vpop.f32.mrf.mxu1 }
 0x119   :  { %v843_v25 = vadd.f32 %v1908_v11, %v2969_v18 }
 0x11a   :  { %v1910_v14 = vpop.f32.mrf.mxu1 }
 0x11b   :  { %v1911_v15 = vadd.f32 %v1910_v14, %v1909_v13 }
 0x11c   :  { %v1912_v16 = vpop.f32.mrf.mxu1 }
 0x11d   :  { %v846_v30 = vadd.f32 %v1911_v15, %v2969_v18  ;;  %v714_v15 = vmax.f32 %v2985_v12, 0.0 }
 0x11e   :  { %v1913_v17 = vpop.f32.mrf.mxu1 }
 0x11f   :  { %v1914_v19 = vadd.f32 %v1913_v17, %v1912_v16 }
 0x120   :  { %v1915_v20 = vpop.f32.mrf.mxu1 }
 0x121   :  { %v851_v37 = vadd.f32 %v1914_v19, %v2969_v18 }
 0x122   :  { %v1916_v21 = vpop.f32.mrf.mxu1 }
 0x123   :  { %v1917_v22 = vadd.f32 %v1916_v21, %v1915_v20  ;;  %v1934_v23 = vpop.f32.mrf.mxu0 }
 0x125   :  { %v1935_v24 = vpop.f32.mrf.mxu0  ;;  %v854_v48 = vadd.f32 %v1917_v22, %v2969_v18 }
 0x126   :  { %v1936_v26 = vadd.f32 %v1935_v24, %v1934_v23 }
 0x127   :  { %v1937_v27 = vpop.f32.mrf.mxu0 }
 0x128   :  { %v892_v28 = vadd.f32 %v1936_v26, %v843_v25 }
 0x129   :  { %v1938_v29 = vpop.f32.mrf.mxu0 }
 0x12a   :  { %v1939_v31 = vadd.f32 %v1938_v29, %v1937_v27 }
 0x12b   :  { %v1940_v36 = vpop.f32.mrf.mxu0 }
 0x12c   :  { %v895_v38 = vadd.f32 %v1939_v31, %v846_v30 }
 0x12d   :  { %v1941_v39 = vpop.f32.mrf.mxu0 }
 0x12e   :  { %v1942_v40 = vadd.f32 %v1941_v39, %v1940_v36 }
 0x12f   :  { %v1943_v45 = vpop.f32.mrf.mxu0 }
 0x130   :  { %v900_v46 = vadd.f32 %v1942_v40, %v851_v37 }
 0x131   :  { %v1944_v47 = vpop.f32.mrf.mxu0 }
 0x132   :  { %v1945_v49 = vadd.f32 %v1944_v47, %v1943_v45 }
 0x133   :  { %v2168_v53 = vpop.f32.mrf.mxu0 }
 0x134   :  { %v1962_v51 = vpop.f32.mrf.mxu1  ;;  %v903_v54 = vadd.f32 %v1945_v49, %v854_v48 }
 0x135   :  { %v989_v58 = vpop.f32.mrf.mxu0 }
 0x136   :  { %v1963_v55 = vpop.f32.mrf.mxu1 }
 0x137   :  { %v1964_v56 = vadd.f32 %v1963_v55, %v1962_v51  ;;  %v2169_v60 = vpop.f32.mrf.mxu0 }
 0x138   :  { %v1965_v59 = vpop.f32.mrf.mxu1 }
 0x139   :  { %v941_v61 = vadd.f32 %v1964_v56, %v892_v28  ;;  %v992_v34 = vpop.f32.mrf.mxu0 }
 0x13a   :  { %v1966_v62 = vpop.f32.mrf.mxu1 }
 0x13b   :  { %v1967_v63 = vadd.f32 %v1966_v62, %v1965_v59  ;;  %v990_v32 = vadd.f32 %v989_v58, %v941_v61 }
 0x13c   :  { %v1968_v33 = vpop.f32.mrf.mxu1 }
 0x13d   :  { %v1004_v41 = vmax.f32 %v990_v32, 0.0  ;;  %v944_v42 = vadd.f32 %v1967_v63, %v895_v38 }
 0x13e   :  { %v1969_v44 = vpop.f32.mrf.mxu1 }
 0x13f   :  { %v2992_v50 = vmax.f32 %v711_v35, %v1004_v41  ;;  %v1970_v52 = vadd.f32 %v1969_v44, %v1968_v33  ;;  %v993_v57 = vadd.f32 %v992_v34, %v944_v42 }
 0x140   :  { %v1971_v0 = vpop.f32.mrf.mxu1 }
 0x141   :  { %v949_v4 = vadd.f32 %v1970_v52, %v900_v46  ;;  %v1005_v3 = vmax.f32 %v993_v57, 0.0 }
 0x142   :  { %v1972_v5 = vpop.f32.mrf.mxu1 }
 0x143   :  { %v998_v7 = vadd.f32 %v2168_v53, %v949_v4  ;;  %v2995_v8 = vmax.f32 %v712_v1, %v1005_v3  ;;  %v1973_v9 = vadd.f32 %v1972_v5, %v1971_v0 }
 0x145   :  { %v1006_v43 = vmax.f32 %v998_v7, 0.0  ;;  %v952_v11 = vadd.f32 %v1973_v9, %v903_v54 }
 0x147   :  { %v2998_v13 = vmax.f32 %v713_v10, %v1006_v43  ;;  %v1001_v14 = vadd.f32 %v2169_v60, %v952_v11 }
 0x149   :  { %v1007_v16 = vmax.f32 %v1001_v14, 0.0 }
 0x14b   :  { %v3001_v17 = vmax.f32 %v714_v15, %v1007_v16 }
 0x153   :  { %v1994_v19 = vpop.f32.mrf.mxu0 }
 0x154   :  { %v2022_v2 = vpop.f32.mrf.mxu1 }
 0x155   :  { %v1995_v20 = vpop.f32.mrf.mxu0 }
 0x156   :  { %v2023_v21 = vpop.f32.mrf.mxu1  ;;  %v1996_v32 = vadd.f32 %v1995_v20, %v1994_v19 }
 0x157   :  { %v1997_v22 = vpop.f32.mrf.mxu0  ;;  %v2024_v52 = vadd.f32 %v2023_v21, %v2022_v2 }
 0x158   :  { %v2025_v23 = vpop.f32.mrf.mxu1  ;;  %v1140_v42 = vadd.f32 %v1996_v32, %v2969_v18 }
 0x159   :  { %v1998_v24 = vpop.f32.mrf.mxu0 }
 0x15a   :  { %v2026_v25 = vpop.f32.mrf.mxu1  ;;  %v1999_v35 = vadd.f32 %v1998_v24, %v1997_v22  ;;  %v1189_v7 = vadd.f32 %v2024_v52, %v1140_v42 }
 0x15b   :  { %v2000_v26 = vpop.f32.mrf.mxu0  ;;  %v2027_v43 = vadd.f32 %v2026_v25, %v2025_v23 }
 0x15c   :  { %v2028_v6 = vpop.f32.mrf.mxu1  ;;  %v1143_v1 = vadd.f32 %v1999_v35, %v2969_v18 }
 0x15d   :  { %v2001_v27 = vpop.f32.mrf.mxu0 }
 0x15e   :  { %v2029_v28 = vpop.f32.mrf.mxu1  ;;  %v2002_v3 = vadd.f32 %v2001_v27, %v2000_v26  ;;  %v1192_v22 = vadd.f32 %v2027_v43, %v1143_v1 }
 0x15f   :  { %v2003_v29 = vpop.f32.mrf.mxu0 }
 0x160   :  { %v3003_v30 = vpop.f32.mrf.mxu1  ;;  %v1148_v2 = vadd.f32 %v2002_v3, %v2969_v18 }
 0x161   :  { %v2004_v31 = vpop.f32.mrf.mxu0 }
 0x162   :  { %v3005_v12 = vpop.f32.mrf.mxu1  ;;  %v2005_v21 = vadd.f32 %v2004_v31, %v2003_v29 }
 0x164   :  { %v3007_v37 = vpop.f32.mrf.mxu1  ;;  %v1151_v32 = vadd.f32 %v2005_v21, %v2969_v18 }
 0x166   :  { %v1286_v39 = vpop.f32.mrf.mxu1 }
 0x168   :  { %v3009_v45 = vpop.f32.mrf.mxu1 }
 0x16a   :  { %v3011_v47 = vpop.f32.mrf.mxu1 }
 0x173   :  { %v2050_v36 = vpop.f32.mrf.mxu0 }
 0x175   :  { %v2051_v38 = vpop.f32.mrf.mxu0 }
 0x176   :  { %v2052_v57 = vadd.f32 %v2051_v38, %v2050_v36 }
 0x177   :  { %v2053_v40 = vpop.f32.mrf.mxu0 }
 0x178   :  { %v1238_v15 = vadd.f32 %v2052_v57, %v1189_v7 }
 0x179   :  { %v2054_v46 = vpop.f32.mrf.mxu0 }
 0x17a   :  { %v2055_v11 = vadd.f32 %v2054_v46, %v2053_v40  ;;  %v1287_v40 = vadd.f32 %v1286_v39, %v1238_v15 }
 0x17b   :  { %v2056_v48 = vpop.f32.mrf.mxu0 }
 0x17c   :  { %v1301_v52 = vmax.f32 %v1287_v40, 0.0 }
 0x17d   :  { %v2057_v51 = vpop.f32.mrf.mxu0 }
 0x17e   :  { %v2058_v23 = vadd.f32 %v2057_v51, %v2056_v48 }
 0x17f   :  { %v3013_v54 = vpop.f32.mrf.mxu0 }
 0x181   :  { %v2060_v56 = vpop.f32.mrf.mxu0 }
 0x182   :  { %v2061_v42 = vadd.f32 %v2060_v56, %v3013_v54 }
 0x184   :  { %v2082_v49 = vpop.f32.mrf.mxu1 }
 0x186   :  { %v2083_v53 = vpop.f32.mrf.mxu1 }
 0x187   :  { %v2084_v0 = vadd.f32 %v2083_v53, %v2082_v49  ;;  %v2030_v53 = vadd.f32 %v2029_v28, %v2028_v6  ;;  %v2033_v6 = vadd.f32 %v3005_v12, %v3003_v30 }
 0x188   :  { %v2085_v55 = vpop.f32.mrf.mxu1 }
 0x189   :  { %v1433_v16 = vadd.f32 %v2084_v0, %v2969_v18  ;;  %v1200_v1 = vadd.f32 %v2033_v6, %v1151_v32 }
 0x18a   :  { %v2086_v58 = vpop.f32.mrf.mxu1 }
 0x18b   :  { %v2087_v19 = vadd.f32 %v2086_v58, %v2085_v55  ;;  %v1197_v58 = vadd.f32 %v2030_v53, %v1148_v2 }
 0x18c   :  { %v2088_v61 = vpop.f32.mrf.mxu1 }
 0x18d   :  { %v1436_v46 = vadd.f32 %v2087_v19, %v2969_v18  ;;  %v1246_v39 = vadd.f32 %v2058_v23, %v1197_v58 }
 0x18e   :  { %v2089_v63 = vpop.f32.mrf.mxu1 }
 0x18f   :  { %v2090_v24 = vadd.f32 %v2089_v63, %v2088_v61  ;;  %v1295_v30 = vadd.f32 %v3007_v37, %v1246_v39 }
 0x190   :  { %v2091_v41 = vpop.f32.mrf.mxu1 }
 0x191   :  { %v1441_v29 = vadd.f32 %v2090_v24, %v2969_v18 }
 0x192   :  { %v2092_v5 = vpop.f32.mrf.mxu1 }
 0x193   :  { %v2110_v59 = vpop.f32.mrf.mxu0  ;;  %v2093_v48 = vadd.f32 %v2092_v5, %v2091_v41  ;;  %v1249_v5 = vadd.f32 %v2061_v42, %v1200_v1 }
 0x195   :  { %v2111_v60 = vpop.f32.mrf.mxu0  ;;  %v1444_v12 = vadd.f32 %v2093_v48, %v2969_v18  ;;  %v1298_v2 = vadd.f32 %v3009_v45, %v1249_v5 }
 0x196   :  { %v2112_v9 = vadd.f32 %v2111_v60, %v2110_v59  ;;  %v1241_v59 = vadd.f32 %v2055_v11, %v1192_v22  ;;  %v1303_v22 = vmax.f32 %v1295_v30, 0.0 }
 0x197   :  { %v2113_v62 = vpop.f32.mrf.mxu0 }
 0x198   :  { %v1482_v38 = vadd.f32 %v2112_v9, %v1433_v16  ;;  %v1290_v28 = vadd.f32 %v3011_v47, %v1241_v59 }
 0x199   :  { %v2114_v33 = vpop.f32.mrf.mxu0 }
 0x19a   :  { %v2115_v26 = vadd.f32 %v2114_v33, %v2113_v62  ;;  %v1302_v47 = vmax.f32 %v1290_v28, 0.0 }
 0x19b   :  { %v2116_v34 = vpop.f32.mrf.mxu0 }
 0x19c   :  { %v1485_v61 = vadd.f32 %v2115_v26, %v1436_v46 }
 0x19d   :  { %v2117_v44 = vpop.f32.mrf.mxu0 }
 0x19e   :  { %v2118_v63 = vadd.f32 %v2117_v44, %v2116_v34 }
 0x19f   :  { %v2119_v4 = vpop.f32.mrf.mxu0 }
 0x1a0   :  { %v1490_v34 = vadd.f32 %v2118_v63, %v1441_v29 }
 0x1a1   :  { %v2120_v10 = vpop.f32.mrf.mxu0 }
 0x1a2   :  { %v2121_v3 = vadd.f32 %v2120_v10, %v2119_v4 }
 0x1a3   :  { %v2184_v20 = vpop.f32.mrf.mxu0 }
 0x1a4   :  { %v2138_v14 = vpop.f32.mrf.mxu1 }
 0x1a5   :  { %v1579_v49 = vpop.f32.mrf.mxu0 }
 0x1a6   :  { %v2139_v36 = vpop.f32.mrf.mxu1 }
 0x1a7   :  { %v2140_v27 = vadd.f32 %v2139_v36, %v2138_v14  ;;  %v2185_v55 = vpop.f32.mrf.mxu0  ;;  %v1493_v14 = vadd.f32 %v2121_v3, %v1444_v12 }
 0x1a8   :  { %v2141_v25 = vpop.f32.mrf.mxu1 }
 0x1a9   :  { %v1531_v60 = vadd.f32 %v2140_v27, %v1482_v38  ;;  %v1582_v35 = vpop.f32.mrf.mxu0  ;;  %v1304_v38 = vmax.f32 %v1298_v2, 0.0 }
 0x1aa   :  { %v2142_v31 = vpop.f32.mrf.mxu1 }
 0x1ab   :  { %v2143_v62 = vadd.f32 %v2142_v31, %v2141_v25  ;;  %v1580_v33 = vadd.f32 %v1579_v49, %v1531_v60 }
 0x1ac   :  { %v2144_v51 = vpop.f32.mrf.mxu1 }
 0x1ad   :  { %v1594_v57 = vmax.f32 %v1580_v33, 0.0  ;;  %v1534_v0 = vadd.f32 %v2143_v62, %v1485_v61 }
 0x1ae   :  { %v2145_v7 = vpop.f32.mrf.mxu1 }
 0x1af   :  { %v1598_v44 = vmax.f32 %v1301_v52, %v1594_v57  ;;  %v2146_v9 = vadd.f32 %v2145_v7, %v2144_v51  ;;  %v1583_v43 = vadd.f32 %v1582_v35, %v1534_v0 }
 0x1b0   :  { %v2147_v41 = vpop.f32.mrf.mxu1 }
 0x1b1   :  { %v1602_v11 = vmax.f32 %v2992_v50, %v1598_v44  ;;  %v1539_v54 = vadd.f32 %v2146_v9, %v1490_v34  ;;  %v1595_v56 = vmax.f32 %v1583_v43, 0.0 }
 0x1b2   :  { %v2148_v15 = vpop.f32.mrf.mxu1 }
 0x1b3   :  { %v1798_v4 = vpack.c.bf16 %v1602_v11, %v1602_v11  ;;  %v1588_v10 = vadd.f32 %v2184_v20, %v1539_v54  ;;  %v1599_v16 = vmax.f32 %v1302_v47, %v1595_v56  ;;  %v2149_v19 = vadd.f32 %v2148_v15, %v2147_v41 }
 0x1b5   :  { %1623 = vst.msk [vmem:[%s3052_s3] sm:$0xf] %vm1622_vm1, %v1798_v4  ;;  %v1596_v18 = vmax.f32 %v1588_v10, 0.0  ;;  %v1603_v50 = vmax.f32 %v2995_v8, %v1599_v16  ;;  %v1542_v37 = vadd.f32 %v2149_v19, %v1493_v14 }
 0x1b7   :  { %v1600_v21 = vmax.f32 %v1303_v22, %v1596_v18  ;;  %v1799_v24 = vpack.c.bf16 %v1603_v50, %v1603_v50  ;;  %v1591_v36 = vadd.f32 %v2185_v55, %v1542_v37 }
 0x1b9   :  { %v1604_v20 = vmax.f32 %v2998_v13, %v1600_v21  ;;  %1624 = vst.msk [vmem:[%s3052_s3 + $0x4] sm:$0xf] %vm1622_vm1, %v1799_v24  ;;  %v1597_v45 = vmax.f32 %v1591_v36, 0.0 }
 0x1bb   :  { %v1800_v26 = vpack.c.bf16 %v1604_v20, %v1604_v20  ;;  %v1601_v27 = vmax.f32 %v1304_v38, %v1597_v45 }
 0x1bd   :  { %1625 = vst.msk [vmem:[%s3052_s3 + $0x8] sm:$0xf] %vm1622_vm1, %v1800_v26  ;;  %v1605_v8 = vmax.f32 %v3001_v17, %v1601_v27 }
 0x1bf   :  { %v1801_v49 = vpack.c.bf16 %v1605_v8, %v1605_v8 }
 0x1c1   :  { %1626 = vst.msk [vmem:[%s3052_s3 + $0xc] sm:$0xf] %vm1622_vm1, %v1801_v49 }

// kernel: encoder_forward.7
= control target key start
LH: loop header
LB: loop body
LE: loop exit
PB: predicated region body
PF: predicated region fallthrough
CT: control target
= control target key end

     0   :  { %s3574_s18 = smov 0   ;;  %s4127_s0 = inlined_call_operand.vmem [shape: bf16[2,2048], index: 0, kind: input, shape index: {}]   ;;  %s4128_s1 = inlined_call_operand.vmem [shape: bf16[2048,1024], index: 1, kind: input, shape index: {}]   ;;  %s4129_s2 = inlined_call_operand.vmem [shape: f32[1,1024], index: 2, kind: input, shape index: {}]   ;;  %s4130_s3 = inlined_call_operand.vmem [shape: bf16[1024,128], index: 3, kind: input, shape index: {}]   ;;  %s4131_s4 = inlined_call_operand.vmem [shape: f32[1,128], index: 4, kind: input, shape index: {}]   ;;  %s4132_s5 = inlined_call_operand.vmem [shape: f32[2,128], index: 5, kind: output, shape index: {}]  }
   0x1 LB: > { %s3580_s19 = sadd.s32 4294967295, %s3539_s18   ;;  %p3038_p0 = scmp.ge.s32.totalorder %s3539_s18, 1  ;;  %s3539_s18 = sphi %s3574_s18, %s15_s18  }
   0x2   : > { %p194_p1 = scmp.lt.s32.totalorder %s3539_s18, 5 }
   0x4   : > { %p195_p2 = pnand %p3038_p0, %p194_p1 }
   0x5   : > { %s3039_s20 = sshll.u32 (!%p195_p2), %s3580_s19, 2  ;;  %s3040_s21 = sshll.u32 (!%p195_p2), %s3580_s19, 6 }
   0x6   : > { %198 = sbr.rel (%p195_p2) target bundleno = 759 (0x2f7), region = 40  ;;  %p223_p3 = scmp.lt.s32.totalorder (!%p195_p2), %s3039_s20, 15 }
   0x7   : > { %p228_p4 = scmp.lt.s32.totalorder (!%p195_p2), %s3040_s21, 255  ;;  %p3043_p5 = scmp.ne.s32.totalorder (!%p195_p2), %s3580_s19, 0 }
   0xb   : > { %s4134_s20 = smov (!%p223_p3, %s3039_s20), 15  ;;  %s4136_s21 = smov (!%p228_p4, %s3040_s21), 255 }
   0xc   : > { %s225_s24 = scalar_lea.vmem %s4127_s0, %s4134_s20  ;;  %s3369_s25 = sshll.u32 %s4136_s21, 5 }
   0xd   : > { %s3595_s28 = scalar_lea.vmem %s4128_s1, %s3369_s25  ;;  %238 = sbr.rel (%p3043_p5) target bundleno = 20 (0x14), region = 44 }
  0x12   : > { %v3541_v0 = vmov 0.0  }
  0x13   : > { %239 = vst [vmem:[#allocation2] sm:$0xff] %v3541_v0  ;;  %240 = vst [vmem:[#allocation2 + $0x8] sm:$0xff] %v3541_v0 }
  0x14 PF: > { %v300_v1 = vld [vmem:[%s3595_s28 + $0x1c0] sm:$0xff]  ;;  %v3542_v36 = vmov 1966171168   ;;  %v512_v38 = vlaneseq  ;;  %p3301_p6 = scmp.ne.s32.totalorder %s3580_s19, 3 }
  0x15   : > { %v304_v2 = vld [vmem:[%s3595_s28 + $0x1e0] sm:$0xff]  ;;  %v510_v37 = vunpack.c.l.s4 %v3542_v36 }
  0x16   : > { %v428_v3 = vld [vmem:[%s3595_s28 + $0x5c0] sm:$0xff]  ;;  %v3102_v4 = vcombine.high %v300_v1, %v304_v2  ;;  %v3101_v6 = vcombine.low %v300_v1, %v304_v2  ;;  %v3622_v48 = vshrl.u32 %v512_v38, 7 }
  0x17   : > { %v432_v5 = vld [vmem:[%s3595_s28 + $0x5e0] sm:$0xff]  ;;  %v511_v47 = vunpack.c.0.s8 %v510_v37 }
  0x18   : > { %v292_v7 = vld [vmem:[%s3595_s28 + $0x180] sm:$0xff]  ;;  %v3230_v9 = vcombine.high %v428_v3, %v432_v5  ;;  %v3229_v10 = vcombine.low %v428_v3, %v432_v5  ;;  %1809 = vmatprep.subr.bf16.mxu0 %v3102_v4 }
  0x19   : > { %v296_v8 = vld [vmem:[%s3595_s28 + $0x1a0] sm:$0xff]  ;;  %1810 = vmatpush1.bf16.msra.mxu0 %v3101_v6  ;;  %v3629_v57 = vsub.s32 %v511_v47, %v3622_v48 }
  0x1a   : > { %v3094_v11 = vcombine.high %v292_v7, %v296_v8  ;;  %v420_v12 = vld [vmem:[%s3595_s28 + $0x580] sm:$0xff]  ;;  %1850 = vmatprep.subr.bf16.mxu1 %v3230_v9  ;;  %v3093_v19 = vcombine.low %v292_v7, %v296_v8 }
  0x1b   : > { %v424_v13 = vld [vmem:[%s3595_s28 + $0x5a0] sm:$0xff]  ;;  %1851 = vmatpush1.bf16.msra.mxu1 %v3229_v10 }
  0x1c   : > { %v284_v14 = vld [vmem:[%s3595_s28 + $0x140] sm:$0xff]  ;;  %v3222_v15 = vcombine.high %v420_v12, %v424_v13  ;;  %1811 = vmatprep.subr.bf16.mxu0 %v3094_v11  ;;  %v3221_v20 = vcombine.low %v420_v12, %v424_v13 }
  0x1d   : > { %v288_v16 = vld [vmem:[%s3595_s28 + $0x160] sm:$0xff]  ;;  %1812 = vmatpush1.bf16.msra.mxu0 %v3093_v19 }
  0x1e   : > { %v412_v17 = vld [vmem:[%s3595_s28 + $0x540] sm:$0xff]  ;;  %v3086_v21 = vcombine.high %v284_v14, %v288_v16  ;;  %1852 = vmatprep.subr.bf16.mxu1 %v3222_v15  ;;  %v3085_v27 = vcombine.low %v284_v14, %v288_v16 }
  0x1f   : > { %v416_v18 = vld [vmem:[%s3595_s28 + $0x560] sm:$0xff]  ;;  %1853 = vmatpush1.bf16.msra.mxu1 %v3221_v20 }
  0x20   : > { %v3214_v22 = vcombine.high %v412_v17, %v416_v18  ;;  %v276_v23 = vld [vmem:[%s3595_s28 + $0x100] sm:$0xff]  ;;  %1813 = vmatprep.subr.bf16.mxu0 %v3086_v21  ;;  %v3213_v28 = vcombine.low %v412_v17, %v416_v18 }
  0x21   : > { %v280_v24 = vld [vmem:[%s3595_s28 + $0x120] sm:$0xff]  ;;  %1814 = vmatpush1.bf16.msra.mxu0 %v3085_v27 }
  0x22   : > { %v404_v25 = vld [vmem:[%s3595_s28 + $0x500] sm:$0xff]  ;;  %v3078_v29 = vcombine.high %v276_v23, %v280_v24  ;;  %1854 = vmatprep.subr.bf16.mxu1 %v3214_v22  ;;  %v3077_v35 = vcombine.low %v276_v23, %v280_v24 }
  0x23   : > { %v408_v26 = vld [vmem:[%s3595_s28 + $0x520] sm:$0xff]  ;;  %1855 = vmatpush1.bf16.msra.mxu1 %v3213_v28 }
  0x24   : > { %v3206_v30 = vcombine.high %v404_v25, %v408_v26  ;;  %v268_v31 = vld [vmem:[%s3595_s28 + $0xc0] sm:$0xff]  ;;  %1815 = vmatprep.subr.bf16.mxu0 %v3078_v29  ;;  %v3205_v39 = vcombine.low %v404_v25, %v408_v26 }
  0x25   : > { %v272_v32 = vld [vmem:[%s3595_s28 + $0xe0] sm:$0xff]  ;;  %1816 = vmatpush1.bf16.msra.mxu0 %v3077_v35 }
  0x26   : > { %v396_v33 = vld [vmem:[%s3595_s28 + $0x4c0] sm:$0xff]  ;;  %v3070_v40 = vcombine.high %v268_v31, %v272_v32  ;;  %1856 = vmatprep.subr.bf16.mxu1 %v3206_v30  ;;  %v3069_v46 = vcombine.low %v268_v31, %v272_v32 }
  0x27   : > { %v400_v34 = vld [vmem:[%s3595_s28 + $0x4e0] sm:$0xff]  ;;  %1857 = vmatpush1.bf16.msra.mxu1 %v3205_v39 }
  0x28   : > { %v3198_v41 = vcombine.high %v396_v33, %v400_v34  ;;  %v260_v42 = vld [vmem:[%s3595_s28 + $0x80] sm:$0xff]  ;;  %1817 = vmatprep.subr.bf16.mxu0 %v3070_v40  ;;  %v3197_v49 = vcombine.low %v396_v33, %v400_v34 }
  0x29   : > { %v264_v43 = vld [vmem:[%s3595_s28 + $0xa0] sm:$0xff]  ;;  %1818 = vmatpush1.bf16.msra.mxu0 %v3069_v46 }
  0x2a   : > { %v388_v44 = vld [vmem:[%s3595_s28 + $0x480] sm:$0xff]  ;;  %v3062_v50 = vcombine.high %v260_v42, %v264_v43  ;;  %1858 = vmatprep.subr.bf16.mxu1 %v3198_v41  ;;  %v3061_v56 = vcombine.low %v260_v42, %v264_v43 }
  0x2b   : > { %v392_v45 = vld [vmem:[%s3595_s28 + $0x4a0] sm:$0xff]  ;;  %1859 = vmatpush1.bf16.msra.mxu1 %v3197_v49 }
  0x2c   : > { %v3190_v51 = vcombine.high %v388_v44, %v392_v45  ;;  %v252_v52 = vld [vmem:[%s3595_s28 + $0x40] sm:$0xff]  ;;  %1819 = vmatprep.subr.bf16.mxu0 %v3062_v50  ;;  %v3189_v58 = vcombine.low %v388_v44, %v392_v45 }
  0x2d   : > { %v256_v53 = vld [vmem:[%s3595_s28 + $0x60] sm:$0xff]  ;;  %1820 = vmatpush1.bf16.msra.mxu0 %v3061_v56 }
  0x2e   : > { %v380_v54 = vld [vmem:[%s3595_s28 + $0x440] sm:$0xff]  ;;  %v3054_v59 = vcombine.high %v252_v52, %v256_v53  ;;  %1860 = vmatprep.subr.bf16.mxu1 %v3190_v51  ;;  %v3053_v3 = vcombine.low %v252_v52, %v256_v53 }
  0x2f   : > { %v384_v55 = vld [vmem:[%s3595_s28 + $0x460] sm:$0xff]  ;;  %1861 = vmatpush1.bf16.msra.mxu1 %v3189_v58 }
  0x30   : > { %v3636_v60 = vld.sshfl [vmem:[%s225_s24] sm:$0x33 pattern:$0x75316420]  ;;  %v3182_v61 = vcombine.high %v380_v54, %v384_v55  ;;  %1821 = vmatprep.subr.bf16.mxu0 %v3054_v59  ;;  %v3181_v5 = vcombine.low %v380_v54, %v384_v55 }
  0x31   : > { %v244_v62 = vld [vmem:[%s3595_s28] sm:$0xff]  ;;  %v508_v0 = vcombine.high %v3636_v60, %v3636_v60  ;;  %1822 = vmatpush1.bf16.msra.mxu0 %v3053_v3 }
  0x32   : > { %v248_v63 = vld [vmem:[%s3595_s28 + $0x20] sm:$0xff]  ;;  %1862 = vmatprep.subr.bf16.mxu1 %v3182_v61 }
  0x33   : > { %v372_v1 = vld [vmem:[%s3595_s28 + $0x400] sm:$0xff]  ;;  %v3645_v4 = vrot.slane %v508_v0, %v3629_v57  ;;  %v3046_v6 = vcombine.high %v244_v62, %v248_v63  ;;  %v3045_v13 = vcombine.low %v244_v62, %v248_v63  ;;  %1863 = vmatpush1.bf16.msra.mxu1 %v3181_v5 }
  0x34   : > { %v376_v2 = vld [vmem:[%s3595_s28 + $0x420] sm:$0xff] }
  0x35   : > { %v3174_v7 = vcombine.high %v372_v1, %v376_v2  ;;  %v364_v8 = vld [vmem:[%s3595_s28 + $0x3c0] sm:$0xff]  ;;  %1841 = vmatprep.mubr.bf16.mxu0 %v3645_v4  ;;  %v3652_v10 = vcombine.high %v3645_v4, %v3645_v4  ;;  %1823 = vmatprep.subr.bf16.mxu0 %v3046_v6  ;;  %v3173_v14 = vcombine.low %v372_v1, %v376_v2 }
  0x36   : > { %v368_v9 = vld [vmem:[%s3595_s28 + $0x3e0] sm:$0xff]  ;;  %1824 = vmatpush1.bf16.msra.mxu0 %v3045_v13 }
  0x37   : > { %v492_v11 = vld [vmem:[%s3595_s28 + $0x7c0] sm:$0xff]  ;;  %1882 = vmatprep.mubr.bf16.mxu1 %v3652_v10  ;;  %v3166_v15 = vcombine.high %v364_v8, %v368_v9  ;;  %1864 = vmatprep.subr.bf16.mxu1 %v3174_v7  ;;  %v3165_v21 = vcombine.low %v364_v8, %v368_v9 }
  0x38   : > { %v496_v12 = vld [vmem:[%s3595_s28 + $0x7e0] sm:$0xff]  ;;  %1865 = vmatpush1.bf16.msra.mxu1 %v3173_v14  ;;  %v301_v14 = vld [vmem:[%s3595_s28 + $0x1c8] sm:$0xff] }
  0x39   : > { %v3294_v16 = vcombine.high %v492_v11, %v496_v12  ;;  %v356_v17 = vld [vmem:[%s3595_s28 + $0x380] sm:$0xff]  ;;  %1825 = vmatprep.subr.bf16.mxu0 %v3166_v15  ;;  %v3293_v22 = vcombine.low %v492_v11, %v496_v12  ;;  %v305_v15 = vld [vmem:[%s3595_s28 + $0x1e8] sm:$0xff] }
  0x3a   : > { %v360_v18 = vld [vmem:[%s3595_s28 + $0x3a0] sm:$0xff]  ;;  %1826 = vmatpush2.bf16.msra.mxu0 %v3165_v21  ;;  %v3104_v21 = vcombine.high %v301_v14, %v305_v15 }
  0x3b   : > { %v484_v19 = vld [vmem:[%s3595_s28 + $0x780] sm:$0xff]  ;;  %v3158_v23 = vcombine.high %v356_v17, %v360_v18  ;;  %1866 = vmatprep.subr.bf16.mxu1 %v3294_v16  ;;  %v3157_v29 = vcombine.low %v356_v17, %v360_v18  ;;  %v429_v16 = vld [vmem:[%s3595_s28 + $0x5c8] sm:$0xff] }
  0x3c   : > { %v488_v20 = vld [vmem:[%s3595_s28 + $0x7a0] sm:$0xff]  ;;  %1867 = vmatpush2.bf16.msra.mxu1 %v3293_v22  ;;  %v433_v17 = vld [vmem:[%s3595_s28 + $0x5e8] sm:$0xff] }
  0x3d   : > { %v3286_v24 = vcombine.high %v484_v19, %v488_v20  ;;  %v348_v25 = vld [vmem:[%s3595_s28 + $0x340] sm:$0xff]  ;;  %1827 = vmatprep.subr.bf16.mxu0 %v3158_v23  ;;  %v3285_v30 = vcombine.low %v484_v19, %v488_v20  ;;  %v3691_v19 = vrot.slane %v3636_v60, %v3629_v57  ;;  %v3232_v22 = vcombine.high %v429_v16, %v433_v17  ;;  %v293_v23 = vld [vmem:[%s3595_s28 + $0x188] sm:$0xff] }
  0x3e   : > { %v352_v26 = vld [vmem:[%s3595_s28 + $0x360] sm:$0xff]  ;;  %1828 = vmatpush2.bf16.msra.mxu0 %v3157_v29  ;;  %v3103_v57 = vcombine.low %v301_v14, %v305_v15  ;;  %v3231_v60 = vcombine.low %v429_v16, %v433_v17  ;;  %v377_v14 = vld [vmem:[%s3595_s28 + $0x428] sm:$0xff] }
  0x3f   : > { %v476_v27 = vld [vmem:[%s3595_s28 + $0x740] sm:$0xff]  ;;  %v3150_v31 = vcombine.high %v348_v25, %v352_v26  ;;  %1868 = vmatprep.subr.bf16.mxu1 %v3286_v24  ;;  %v3149_v37 = vcombine.low %v348_v25, %v352_v26  ;;  %v297_v24 = vld [vmem:[%s3595_s28 + $0x1a8] sm:$0xff] }
  0x40   : > { %v480_v28 = vld [vmem:[%s3595_s28 + $0x760] sm:$0xff]  ;;  %1869 = vmatpush2.bf16.msra.mxu1 %v3285_v30  ;;  %v421_v25 = vld [vmem:[%s3595_s28 + $0x588] sm:$0xff] }
  0x41   : > { %v3278_v32 = vcombine.high %v476_v27, %v480_v28  ;;  %v340_v33 = vld [vmem:[%s3595_s28 + $0x300] sm:$0xff]  ;;  %1829 = vmatprep.subr.bf16.mxu0 %v3150_v31  ;;  %v3277_v38 = vcombine.low %v476_v27, %v480_v28  ;;  %v425_v26 = vld [vmem:[%s3595_s28 + $0x5a8] sm:$0xff]  ;;  %v3699_v27 = vcombine.high %v3691_v19, %v3691_v19  ;;  %v3096_v28 = vcombine.high %v293_v23, %v297_v24 }
  0x42   : > { %v344_v34 = vld [vmem:[%s3595_s28 + $0x320] sm:$0xff]  ;;  %1830 = vmatpush2.bf16.msra.mxu0 %v3149_v37  ;;  %v3224_v29 = vcombine.high %v421_v25, %v425_v26  ;;  %v285_v30 = vld [vmem:[%s3595_s28 + $0x148] sm:$0xff] }
  0x43   : > { %v468_v35 = vld [vmem:[%s3595_s28 + $0x700] sm:$0xff]  ;;  %v3142_v39 = vcombine.high %v340_v33, %v344_v34  ;;  %1870 = vmatprep.subr.bf16.mxu1 %v3278_v32  ;;  %v3141_v45 = vcombine.low %v340_v33, %v344_v34  ;;  %v289_v31 = vld [vmem:[%s3595_s28 + $0x168] sm:$0xff]  ;;  %v3095_v34 = vcombine.low %v293_v23, %v297_v24 }
  0x44   : > { %v472_v36 = vld [vmem:[%s3595_s28 + $0x720] sm:$0xff]  ;;  %1871 = vmatpush2.bf16.msra.mxu1 %v3277_v38  ;;  %v413_v32 = vld [vmem:[%s3595_s28 + $0x548] sm:$0xff] }
  0x45   : > { %v3270_v40 = vcombine.high %v468_v35, %v472_v36  ;;  %v332_v41 = vld [vmem:[%s3595_s28 + $0x2c0] sm:$0xff]  ;;  %1831 = vmatprep.subr.bf16.mxu0 %v3142_v39  ;;  %v3269_v46 = vcombine.low %v468_v35, %v472_v36  ;;  %v417_v33 = vld [vmem:[%s3595_s28 + $0x568] sm:$0xff]  ;;  %v3223_v35 = vcombine.low %v421_v25, %v425_v26  ;;  %v3088_v36 = vcombine.high %v285_v30, %v289_v31 }
  0x46   : > { %v336_v42 = vld [vmem:[%s3595_s28 + $0x2e0] sm:$0xff]  ;;  %1832 = vmatpush2.bf16.msra.mxu0 %v3141_v45  ;;  %v3216_v37 = vcombine.high %v413_v32, %v417_v33  ;;  %v277_v38 = vld [vmem:[%s3595_s28 + $0x108] sm:$0xff] }
  0x47   : > { %v460_v43 = vld [vmem:[%s3595_s28 + $0x6c0] sm:$0xff]  ;;  %v3134_v47 = vcombine.high %v332_v41, %v336_v42  ;;  %1872 = vmatprep.subr.bf16.mxu1 %v3270_v40  ;;  %v3133_v54 = vcombine.low %v332_v41, %v336_v42  ;;  %v281_v39 = vld [vmem:[%s3595_s28 + $0x128] sm:$0xff]  ;;  %v3087_v42 = vcombine.low %v285_v30, %v289_v31 }
  0x48   : > { %v464_v44 = vld [vmem:[%s3595_s28 + $0x6e0] sm:$0xff]  ;;  %1873 = vmatpush2.bf16.msra.mxu1 %v3269_v46  ;;  %v405_v40 = vld [vmem:[%s3595_s28 + $0x508] sm:$0xff] }
  0x49   : > { %v3262_v49 = vcombine.high %v460_v43, %v464_v44  ;;  %v324_v50 = vld [vmem:[%s3595_s28 + $0x280] sm:$0xff]  ;;  %1833 = vmatprep.subr.bf16.mxu0 %v3134_v47  ;;  %v3261_v55 = vcombine.low %v460_v43, %v464_v44  ;;  %v409_v41 = vld [vmem:[%s3595_s28 + $0x528] sm:$0xff]  ;;  %v3215_v43 = vcombine.low %v413_v32, %v417_v33  ;;  %v3080_v44 = vcombine.high %v277_v38, %v281_v39 }
  0x4a   : > { %v328_v51 = vld [vmem:[%s3595_s28 + $0x2a0] sm:$0xff]  ;;  %1834 = vmatpush2.bf16.msra.mxu0 %v3133_v54  ;;  %v3208_v45 = vcombine.high %v405_v40, %v409_v41  ;;  %v269_v46 = vld [vmem:[%s3595_s28 + $0xc8] sm:$0xff] }
  0x4b   : > { %v452_v52 = vld [vmem:[%s3595_s28 + $0x680] sm:$0xff]  ;;  %v3126_v56 = vcombine.high %v324_v50, %v328_v51  ;;  %1874 = vmatprep.subr.bf16.mxu1 %v3262_v49  ;;  %v3125_v0 = vcombine.low %v324_v50, %v328_v51  ;;  %v273_v47 = vld [vmem:[%s3595_s28 + $0xe8] sm:$0xff]  ;;  %v3079_v51 = vcombine.low %v277_v38, %v281_v39 }
  0x4c   : > { %v456_v53 = vld [vmem:[%s3595_s28 + $0x6a0] sm:$0xff]  ;;  %1875 = vmatpush2.bf16.msra.mxu1 %v3261_v55  ;;  %v397_v49 = vld [vmem:[%s3595_s28 + $0x4c8] sm:$0xff] }
  0x4d   : > { %v3254_v58 = vcombine.high %v452_v52, %v456_v53  ;;  %v316_v59 = vld [vmem:[%s3595_s28 + $0x240] sm:$0xff]  ;;  %1835 = vmatprep.subr.bf16.mxu0 %v3126_v56  ;;  %v3253_v1 = vcombine.low %v452_v52, %v456_v53  ;;  %v401_v50 = vld [vmem:[%s3595_s28 + $0x4e8] sm:$0xff]  ;;  %v3207_v52 = vcombine.low %v405_v40, %v409_v41  ;;  %v3072_v53 = vcombine.high %v269_v46, %v273_v47 }
  0x4e   : > { %v320_v61 = vld [vmem:[%s3595_s28 + $0x260] sm:$0xff]  ;;  %1836 = vmatpush2.bf16.msra.mxu0 %v3125_v0  ;;  %v3200_v54 = vcombine.high %v397_v49, %v401_v50  ;;  %v261_v55 = vld [vmem:[%s3595_s28 + $0x88] sm:$0xff] }
  0x4f   : > { %v444_v62 = vld [vmem:[%s3595_s28 + $0x640] sm:$0xff]  ;;  %v3118_v2 = vcombine.high %v316_v59, %v320_v61  ;;  %1876 = vmatprep.subr.bf16.mxu1 %v3254_v58  ;;  %v3117_v9 = vcombine.low %v316_v59, %v320_v61  ;;  %v265_v56 = vld [vmem:[%s3595_s28 + $0xa8] sm:$0xff]  ;;  %v3071_v61 = vcombine.low %v269_v46, %v273_v47 }
  0x50   : > { %v448_v63 = vld [vmem:[%s3595_s28 + $0x660] sm:$0xff]  ;;  %1877 = vmatpush2.bf16.msra.mxu1 %v3253_v1  ;;  %v389_v58 = vld [vmem:[%s3595_s28 + $0x488] sm:$0xff] }
  0x51   : > { %v3246_v3 = vcombine.high %v444_v62, %v448_v63  ;;  %v308_v5 = vld [vmem:[%s3595_s28 + $0x200] sm:$0xff]  ;;  %1837 = vmatprep.subr.bf16.mxu0 %v3118_v2  ;;  %v3245_v11 = vcombine.low %v444_v62, %v448_v63  ;;  %v393_v59 = vld [vmem:[%s3595_s28 + $0x4a8] sm:$0xff]  ;;  %v3199_v62 = vcombine.low %v397_v49, %v401_v50  ;;  %v3064_v63 = vcombine.high %v261_v55, %v265_v56 }
  0x52   : > { %v312_v6 = vld [vmem:[%s3595_s28 + $0x220] sm:$0xff]  ;;  %1838 = vmatpush2.bf16.msra.mxu0 %v3117_v9  ;;  %v3192_v0 = vcombine.high %v389_v58, %v393_v59  ;;  %v253_v1 = vld [vmem:[%s3595_s28 + $0x48] sm:$0xff] }
  0x53   : > { %v436_v7 = vld [vmem:[%s3595_s28 + $0x600] sm:$0xff]  ;;  %v3110_v12 = vcombine.high %v308_v5, %v312_v6  ;;  %1878 = vmatprep.subr.bf16.mxu1 %v3246_v3  ;;  %v3109_v18 = vcombine.low %v308_v5, %v312_v6  ;;  %v257_v2 = vld [vmem:[%s3595_s28 + $0x68] sm:$0xff]  ;;  %v3063_v6 = vcombine.low %v261_v55, %v265_v56 }
  0x54   : > { %v440_v8 = vld [vmem:[%s3595_s28 + $0x620] sm:$0xff]  ;;  %1879 = vmatpush2.bf16.msra.mxu1 %v3245_v11  ;;  %v381_v3 = vld [vmem:[%s3595_s28 + $0x448] sm:$0xff]  ;;  %v3055_v15 = vcombine.low %v253_v1, %v257_v2 }
  0x55   : > { %v3238_v13 = vcombine.high %v436_v7, %v440_v8  ;;  %1839 = vmatprep.subr.bf16.mxu0 %v3110_v12  ;;  %v3237_v20 = vcombine.low %v436_v7, %v440_v8  ;;  %v385_v5 = vld [vmem:[%s3595_s28 + $0x468] sm:$0xff]  ;;  %v3191_v7 = vcombine.low %v389_v58, %v393_v59  ;;  %v3056_v8 = vcombine.high %v253_v1, %v257_v2 }
  0x56   : > { %1840 = vmatpush2.bf16.msra.mxu0 %v3109_v18  ;;  %v3184_v9 = vcombine.high %v381_v3, %v385_v5  ;;  %v245_v11 = vld [vmem:[%s3595_s28 + $0x8] sm:$0xff]  ;;  %v3183_v16 = vcombine.low %v381_v3, %v385_v5 }
  0x57   : > { %1880 = vmatprep.subr.bf16.mxu1 %v3238_v13  ;;  %1891 = vmatprep.subr.bf16.mxu0 %v3104_v21  ;;  %v249_v12 = vld [vmem:[%s3595_s28 + $0x28] sm:$0xff] }
  0x58   : > { %1881 = vmatpush2.bf16.msra.mxu1 %v3237_v20  ;;  %v373_v13 = vld [vmem:[%s3595_s28 + $0x408] sm:$0xff]  ;;  %v3048_v17 = vcombine.high %v245_v11, %v249_v12  ;;  %v3047_v24 = vcombine.low %v245_v11, %v249_v12 }
  0x59   : > { %1932 = vmatprep.subr.bf16.mxu1 %v3232_v22  ;;  %1842 = vmatmul.mubr.bf16.vlgmr.msra.gmra.mxu0 %v3691_v19  ;;  %v3176_v18 = vcombine.high %v373_v13, %v377_v14  ;;  %v365_v20 = vld [vmem:[%s3595_s28 + $0x3c8] sm:$0xff]  ;;  %v3175_v25 = vcombine.low %v373_v13, %v377_v14 }
  0x5a   : > { %1892 = vmatpush1.bf16.msra.mxu0 %v3103_v57  ;;  %1923 = vmatprep.mubr.bf16.mxu0 %v3645_v4  ;;  %v369_v21 = vld [vmem:[%s3595_s28 + $0x3e8] sm:$0xff] }
  0x5b   : > { %1883 = vmatmul.mubr.bf16.vlgmr.msra.gmra.mxu1 %v3699_v27  ;;  %1893 = vmatprep.subr.bf16.mxu0 %v3096_v28  ;;  %v493_v22 = vld [vmem:[%s3595_s28 + $0x7c8] sm:$0xff]  ;;  %v3168_v26 = vcombine.high %v365_v20, %v369_v21  ;;  %v3167_v31 = vcombine.low %v365_v20, %v369_v21 }
  0x5c   : > { %1933 = vmatpush1.bf16.msra.mxu1 %v3231_v60  ;;  %1964 = vmatprep.mubr.bf16.mxu1 %v3652_v10  ;;  %v497_v23 = vld [vmem:[%s3595_s28 + $0x7e8] sm:$0xff] }
  0x5d   : > { %1934 = vmatprep.subr.bf16.mxu1 %v3224_v29  ;;  %v3296_v57 = vcombine.high %v493_v22, %v497_v23  ;;  %v357_v60 = vld [vmem:[%s3595_s28 + $0x388] sm:$0xff]  ;;  %v3295_v32 = vcombine.low %v493_v22, %v497_v23 }
  0x5e   : > { %1894 = vmatpush1.bf16.msra.mxu0 %v3095_v34  ;;  %v361_v28 = vld [vmem:[%s3595_s28 + $0x3a8] sm:$0xff] }
  0x5f   : > { %1895 = vmatprep.subr.bf16.mxu0 %v3088_v36  ;;  %v485_v29 = vld [vmem:[%s3595_s28 + $0x788] sm:$0xff]  ;;  %v3160_v33 = vcombine.high %v357_v60, %v361_v28  ;;  %v3159_v39 = vcombine.low %v357_v60, %v361_v28  ;;  %v434_v60 = vld [vmem:[%s3595_s28 + $0x5f0] sm:$0xff] }
  0x60   : > { %1935 = vmatpush1.bf16.msra.mxu1 %v3223_v35  ;;  %v489_v30 = vld [vmem:[%s3595_s28 + $0x7a8] sm:$0xff] }
  0x61   : > { %1936 = vmatprep.subr.bf16.mxu1 %v3216_v37  ;;  %v3288_v34 = vcombine.high %v485_v29, %v489_v30  ;;  %v349_v35 = vld [vmem:[%s3595_s28 + $0x348] sm:$0xff]  ;;  %v3287_v40 = vcombine.low %v485_v29, %v489_v30 }
  0x62   : > { %1896 = vmatpush1.bf16.msra.mxu0 %v3087_v42  ;;  %v353_v36 = vld [vmem:[%s3595_s28 + $0x368] sm:$0xff] }
  0x63   : > { %1897 = vmatprep.subr.bf16.mxu0 %v3080_v44  ;;  %v477_v37 = vld [vmem:[%s3595_s28 + $0x748] sm:$0xff]  ;;  %v3152_v41 = vcombine.high %v349_v35, %v353_v36  ;;  %v3151_v47 = vcombine.low %v349_v35, %v353_v36  ;;  %v426_v35 = vld [vmem:[%s3595_s28 + $0x5b0] sm:$0xff] }
  0x64   : > { %1937 = vmatpush1.bf16.msra.mxu1 %v3215_v43  ;;  %v481_v38 = vld [vmem:[%s3595_s28 + $0x768] sm:$0xff] }
  0x65   : > { %1938 = vmatprep.subr.bf16.mxu1 %v3208_v45  ;;  %v3280_v42 = vcombine.high %v477_v37, %v481_v38  ;;  %v341_v43 = vld [vmem:[%s3595_s28 + $0x308] sm:$0xff]  ;;  %v3279_v49 = vcombine.low %v477_v37, %v481_v38 }
  0x66   : > { %1898 = vmatpush1.bf16.msra.mxu0 %v3079_v51  ;;  %v345_v44 = vld [vmem:[%s3595_s28 + $0x328] sm:$0xff] }
  0x67   : > { %1899 = vmatprep.subr.bf16.mxu0 %v3072_v53  ;;  %v469_v45 = vld [vmem:[%s3595_s28 + $0x708] sm:$0xff]  ;;  %v3144_v50 = vcombine.high %v341_v43, %v345_v44  ;;  %v3143_v56 = vcombine.low %v341_v43, %v345_v44  ;;  %v418_v43 = vld [vmem:[%s3595_s28 + $0x570] sm:$0xff] }
  0x68   : > { %1939 = vmatpush1.bf16.msra.mxu1 %v3207_v52  ;;  %v473_v46 = vld [vmem:[%s3595_s28 + $0x728] sm:$0xff] }
  0x69   : > { %1940 = vmatprep.subr.bf16.mxu1 %v3200_v54  ;;  %v3272_v51 = vcombine.high %v469_v45, %v473_v46  ;;  %v333_v52 = vld [vmem:[%s3595_s28 + $0x2c8] sm:$0xff]  ;;  %v3271_v58 = vcombine.low %v469_v45, %v473_v46 }
  0x6a   : > { %1900 = vmatpush1.bf16.msra.mxu0 %v3071_v61  ;;  %v337_v53 = vld [vmem:[%s3595_s28 + $0x2e8] sm:$0xff] }
  0x6b   : > { %1901 = vmatprep.subr.bf16.mxu0 %v3064_v63  ;;  %v461_v54 = vld [vmem:[%s3595_s28 + $0x6c8] sm:$0xff]  ;;  %v3136_v59 = vcombine.high %v333_v52, %v337_v53  ;;  %v3135_v2 = vcombine.low %v333_v52, %v337_v53  ;;  %v410_v52 = vld [vmem:[%s3595_s28 + $0x530] sm:$0xff] }
  0x6c   : > { %1941 = vmatpush1.bf16.msra.mxu1 %v3199_v62  ;;  %v465_v55 = vld [vmem:[%s3595_s28 + $0x6e8] sm:$0xff] }
  0x6d   : > { %1942 = vmatprep.subr.bf16.mxu1 %v3192_v0  ;;  %v3264_v61 = vcombine.high %v461_v54, %v465_v55  ;;  %v325_v62 = vld [vmem:[%s3595_s28 + $0x288] sm:$0xff]  ;;  %v3263_v3 = vcombine.low %v461_v54, %v465_v55 }
  0x6e   : > { %1902 = vmatpush1.bf16.msra.mxu0 %v3063_v6  ;;  %v329_v63 = vld [vmem:[%s3595_s28 + $0x2a8] sm:$0xff] }
  0x6f   : > { %1903 = vmatprep.subr.bf16.mxu0 %v3056_v8  ;;  %v453_v0 = vld [vmem:[%s3595_s28 + $0x688] sm:$0xff]  ;;  %v3128_v5 = vcombine.high %v325_v62, %v329_v63  ;;  %v3127_v12 = vcombine.low %v325_v62, %v329_v63  ;;  %v402_v62 = vld [vmem:[%s3595_s28 + $0x4f0] sm:$0xff] }
  0x70   : > { %1943 = vmatpush1.bf16.msra.mxu1 %v3191_v7  ;;  %v457_v1 = vld [vmem:[%s3595_s28 + $0x6a8] sm:$0xff] }
  0x71   : > { %1944 = vmatprep.subr.bf16.mxu1 %v3184_v9  ;;  %v3256_v6 = vcombine.high %v453_v0, %v457_v1  ;;  %v317_v7 = vld [vmem:[%s3595_s28 + $0x248] sm:$0xff]  ;;  %v3255_v13 = vcombine.low %v453_v0, %v457_v1 }
  0x72   : > { %1904 = vmatpush1.bf16.msra.mxu0 %v3055_v15  ;;  %v321_v8 = vld [vmem:[%s3595_s28 + $0x268] sm:$0xff] }
  0x73   : > { %1905 = vmatprep.subr.bf16.mxu0 %v3048_v17  ;;  %v445_v9 = vld [vmem:[%s3595_s28 + $0x648] sm:$0xff]  ;;  %v3120_v14 = vcombine.high %v317_v7, %v321_v8  ;;  %v3119_v21 = vcombine.low %v317_v7, %v321_v8  ;;  %v394_v7 = vld [vmem:[%s3595_s28 + $0x4b0] sm:$0xff] }
  0x74   : > { %1945 = vmatpush1.bf16.msra.mxu1 %v3183_v16  ;;  %v449_v11 = vld [vmem:[%s3595_s28 + $0x668] sm:$0xff] }
  0x75   : > { %1946 = vmatprep.subr.bf16.mxu1 %v3176_v18  ;;  %v3248_v15 = vcombine.high %v445_v9, %v449_v11  ;;  %v309_v16 = vld [vmem:[%s3595_s28 + $0x208] sm:$0xff]  ;;  %v3247_v22 = vcombine.low %v445_v9, %v449_v11 }
  0x76   : > { %1906 = vmatpush1.bf16.msra.mxu0 %v3047_v24  ;;  %v313_v17 = vld [vmem:[%s3595_s28 + $0x228] sm:$0xff] }
  0x77   : > { %1907 = vmatprep.subr.bf16.mxu0 %v3168_v26  ;;  %v437_v18 = vld [vmem:[%s3595_s28 + $0x608] sm:$0xff]  ;;  %v3112_v23 = vcombine.high %v309_v16, %v313_v17  ;;  %v306_v26 = vld [vmem:[%s3595_s28 + $0x1f0] sm:$0xff]  ;;  %v3111_v28 = vcombine.low %v309_v16, %v313_v17 }
  0x78   : > { %1947 = vmatpush1.bf16.msra.mxu1 %v3175_v25  ;;  %v441_v20 = vld [vmem:[%s3595_s28 + $0x628] sm:$0xff]  ;;  %v302_v25 = vld [vmem:[%s3595_s28 + $0x1d0] sm:$0xff] }
  0x79   : > { %1948 = vmatprep.subr.bf16.mxu1 %v3296_v57  ;;  %v3240_v24 = vcombine.high %v437_v18, %v441_v20  ;;  %v430_v57 = vld [vmem:[%s3595_s28 + $0x5d0] sm:$0xff]  ;;  %v3239_v29 = vcombine.low %v437_v18, %v441_v20  ;;  %v3106_v30 = vcombine.high %v302_v25, %v306_v26  ;;  %v3105_v36 = vcombine.low %v302_v25, %v306_v26 }
  0x7a   : > { %1908 = vmatpush2.bf16.msra.mxu0 %v3167_v31  ;;  %v3234_v31 = vcombine.high %v430_v57, %v434_v60  ;;  %v3233_v37 = vcombine.low %v430_v57, %v434_v60  ;;  %v386_v16 = vld [vmem:[%s3595_s28 + $0x470] sm:$0xff] }
  0x7b   : > { %1909 = vmatprep.subr.bf16.mxu0 %v3160_v33  ;;  %v298_v33 = vld [vmem:[%s3595_s28 + $0x1b0] sm:$0xff] }
  0x7c   : > { %1949 = vmatpush2.bf16.msra.mxu1 %v3295_v32  ;;  %v294_v32 = vld [vmem:[%s3595_s28 + $0x190] sm:$0xff] }
  0x7d   : > { %1950 = vmatprep.subr.bf16.mxu1 %v3288_v34  ;;  %v422_v34 = vld [vmem:[%s3595_s28 + $0x590] sm:$0xff]  ;;  %v3098_v38 = vcombine.high %v294_v32, %v298_v33  ;;  %v3097_v44 = vcombine.low %v294_v32, %v298_v33 }
  0x7e   : > { %1910 = vmatpush2.bf16.msra.mxu0 %v3159_v39  ;;  %v3226_v39 = vcombine.high %v422_v34, %v426_v35  ;;  %v3225_v45 = vcombine.low %v422_v34, %v426_v35  ;;  %v378_v25 = vld [vmem:[%s3595_s28 + $0x430] sm:$0xff] }
  0x7f   : > { %1911 = vmatprep.subr.bf16.mxu0 %v3152_v41  ;;  %v290_v41 = vld [vmem:[%s3595_s28 + $0x170] sm:$0xff] }
  0x80   : > { %1951 = vmatpush2.bf16.msra.mxu1 %v3287_v40  ;;  %v286_v40 = vld [vmem:[%s3595_s28 + $0x150] sm:$0xff] }
  0x81   : > { %1952 = vmatprep.subr.bf16.mxu1 %v3280_v42  ;;  %v414_v42 = vld [vmem:[%s3595_s28 + $0x550] sm:$0xff]  ;;  %v3090_v46 = vcombine.high %v286_v40, %v290_v41  ;;  %v3089_v53 = vcombine.low %v286_v40, %v290_v41 }
  0x82   : > { %1912 = vmatpush2.bf16.msra.mxu0 %v3151_v47  ;;  %v3218_v47 = vcombine.high %v414_v42, %v418_v43  ;;  %v3217_v54 = vcombine.low %v414_v42, %v418_v43  ;;  %v498_v32 = vld [vmem:[%s3595_s28 + $0x7f0] sm:$0xff] }
  0x83   : > { %1913 = vmatprep.subr.bf16.mxu0 %v3144_v50  ;;  %v282_v50 = vld [vmem:[%s3595_s28 + $0x130] sm:$0xff] }
  0x84   : > { %1953 = vmatpush2.bf16.msra.mxu1 %v3279_v49  ;;  %v278_v49 = vld [vmem:[%s3595_s28 + $0x110] sm:$0xff] }
  0x85   : > { %1954 = vmatprep.subr.bf16.mxu1 %v3272_v51  ;;  %v406_v51 = vld [vmem:[%s3595_s28 + $0x510] sm:$0xff]  ;;  %v3082_v55 = vcombine.high %v278_v49, %v282_v50  ;;  %v3081_v63 = vcombine.low %v278_v49, %v282_v50 }
  0x86   : > { %1914 = vmatpush2.bf16.msra.mxu0 %v3143_v56  ;;  %v3210_v56 = vcombine.high %v406_v51, %v410_v52  ;;  %v3209_v0 = vcombine.low %v406_v51, %v410_v52  ;;  %v490_v40 = vld [vmem:[%s3595_s28 + $0x7b0] sm:$0xff] }
  0x87   : > { %1915 = vmatprep.subr.bf16.mxu0 %v3136_v59  ;;  %v274_v59 = vld [vmem:[%s3595_s28 + $0xf0] sm:$0xff] }
  0x88   : > { %1955 = vmatpush2.bf16.msra.mxu1 %v3271_v58  ;;  %v270_v58 = vld [vmem:[%s3595_s28 + $0xd0] sm:$0xff] }
  0x89   : > { %1956 = vmatprep.subr.bf16.mxu1 %v3264_v61  ;;  %v398_v61 = vld [vmem:[%s3595_s28 + $0x4d0] sm:$0xff]  ;;  %v3074_v1 = vcombine.high %v270_v58, %v274_v59  ;;  %v3073_v8 = vcombine.low %v270_v58, %v274_v59 }
  0x8a   : > { %1916 = vmatpush2.bf16.msra.mxu0 %v3135_v2  ;;  %v3202_v2 = vcombine.high %v398_v61, %v402_v62  ;;  %v3201_v9 = vcombine.low %v398_v61, %v402_v62  ;;  %v482_v49 = vld [vmem:[%s3595_s28 + $0x770] sm:$0xff] }
  0x8b   : > { %1917 = vmatprep.subr.bf16.mxu0 %v3128_v5  ;;  %v266_v5 = vld [vmem:[%s3595_s28 + $0xb0] sm:$0xff] }
  0x8c   : > { %1957 = vmatpush2.bf16.msra.mxu1 %v3263_v3  ;;  %v262_v3 = vld [vmem:[%s3595_s28 + $0x90] sm:$0xff] }
  0x8d   : > { %1958 = vmatprep.subr.bf16.mxu1 %v3256_v6  ;;  %v390_v6 = vld [vmem:[%s3595_s28 + $0x490] sm:$0xff]  ;;  %v3066_v11 = vcombine.high %v262_v3, %v266_v5  ;;  %v3065_v17 = vcombine.low %v262_v3, %v266_v5 }
  0x8e   : > { %1918 = vmatpush2.bf16.msra.mxu0 %v3127_v12  ;;  %v3194_v12 = vcombine.high %v390_v6, %v394_v7  ;;  %v3193_v18 = vcombine.low %v390_v6, %v394_v7  ;;  %v474_v58 = vld [vmem:[%s3595_s28 + $0x730] sm:$0xff] }
  0x8f   : > { %1919 = vmatprep.subr.bf16.mxu0 %v3120_v14  ;;  %v258_v14 = vld [vmem:[%s3595_s28 + $0x70] sm:$0xff] }
  0x90   : > { %1959 = vmatpush2.bf16.msra.mxu1 %v3255_v13  ;;  %v254_v13 = vld [vmem:[%s3595_s28 + $0x50] sm:$0xff] }
  0x91   : > { %1960 = vmatprep.subr.bf16.mxu1 %v3248_v15  ;;  %v382_v15 = vld [vmem:[%s3595_s28 + $0x450] sm:$0xff]  ;;  %v3058_v20 = vcombine.high %v254_v13, %v258_v14  ;;  %v3057_v26 = vcombine.low %v254_v13, %v258_v14 }
  0x92   : > { %1920 = vmatpush2.bf16.msra.mxu0 %v3119_v21  ;;  %v3186_v21 = vcombine.high %v382_v15, %v386_v16  ;;  %v3185_v57 = vcombine.low %v382_v15, %v386_v16  ;;  %v466_v3 = vld [vmem:[%s3595_s28 + $0x6f0] sm:$0xff] }
  0x93   : > { %1921 = vmatprep.subr.bf16.mxu0 %v3112_v23  ;;  %v250_v23 = vld [vmem:[%s3595_s28 + $0x30] sm:$0xff] }
  0x94   : > { %1961 = vmatpush2.bf16.msra.mxu1 %v3247_v22  ;;  %v246_v22 = vld [vmem:[%s3595_s28 + $0x10] sm:$0xff] }
  0x95   : > { %1962 = vmatprep.subr.bf16.mxu1 %v3240_v24  ;;  %v374_v24 = vld [vmem:[%s3595_s28 + $0x410] sm:$0xff]  ;;  %v3050_v60 = vcombine.high %v246_v22, %v250_v23  ;;  %v3049_v33 = vcombine.low %v246_v22, %v250_v23 }
  0x96   : > { %1922 = vmatpush2.bf16.msra.mxu0 %v3111_v28  ;;  %v3178_v28 = vcombine.high %v374_v24, %v378_v25  ;;  %v3177_v34 = vcombine.low %v374_v24, %v378_v25  ;;  %v458_v13 = vld [vmem:[%s3595_s28 + $0x6b0] sm:$0xff] }
  0x97   : > { %1973 = vmatprep.subr.bf16.mxu0 %v3106_v30  ;;  %v370_v30 = vld [vmem:[%s3595_s28 + $0x3f0] sm:$0xff] }
  0x98   : > { %1963 = vmatpush2.bf16.msra.mxu1 %v3239_v29  ;;  %v366_v29 = vld [vmem:[%s3595_s28 + $0x3d0] sm:$0xff] }
  0x99   : > { %2014 = vmatprep.subr.bf16.mxu1 %v3234_v31  ;;  %1924 = vmatmul.mubr.bf16.vlgmr.msra.gmra.mxu0 %v3691_v19  ;;  %v494_v31 = vld [vmem:[%s3595_s28 + $0x7d0] sm:$0xff]  ;;  %v3170_v35 = vcombine.high %v366_v29, %v370_v30  ;;  %v3169_v41 = vcombine.low %v366_v29, %v370_v30 }
  0x9a   : > { %1974 = vmatpush1.bf16.msra.mxu0 %v3105_v36  ;;  %2005 = vmatprep.mubr.bf16.mxu0 %v3645_v4  ;;  %v3298_v36 = vcombine.high %v494_v31, %v498_v32  ;;  %v3297_v42 = vcombine.low %v494_v31, %v498_v32  ;;  %v450_v22 = vld [vmem:[%s3595_s28 + $0x670] sm:$0xff] }
  0x9b   : > { %1965 = vmatmul.mubr.bf16.vlgmr.msra.gmra.mxu1 %v3699_v27  ;;  %1975 = vmatprep.subr.bf16.mxu0 %v3098_v38  ;;  %v362_v38 = vld [vmem:[%s3595_s28 + $0x3b0] sm:$0xff] }
  0x9c   : > { %2015 = vmatpush1.bf16.msra.mxu1 %v3233_v37  ;;  %2046 = vmatprep.mubr.bf16.mxu1 %v3652_v10  ;;  %v358_v37 = vld [vmem:[%s3595_s28 + $0x390] sm:$0xff] }
  0x9d   : > { %2016 = vmatprep.subr.bf16.mxu1 %v3226_v39  ;;  %v486_v39 = vld [vmem:[%s3595_s28 + $0x790] sm:$0xff]  ;;  %v3162_v43 = vcombine.high %v358_v37, %v362_v38  ;;  %v3161_v50 = vcombine.low %v358_v37, %v362_v38  ;;  %v435_v37 = vld [vmem:[%s3595_s28 + $0x5f8] sm:$0xff] }
  0x9e   : > { %1976 = vmatpush1.bf16.msra.mxu0 %v3097_v44  ;;  %v3290_v44 = vcombine.high %v486_v39, %v490_v40  ;;  %v3289_v51 = vcombine.low %v486_v39, %v490_v40  ;;  %v442_v29 = vld [vmem:[%s3595_s28 + $0x630] sm:$0xff] }
  0x9f   : > { %1977 = vmatprep.subr.bf16.mxu0 %v3090_v46  ;;  %v354_v46 = vld [vmem:[%s3595_s28 + $0x370] sm:$0xff] }
  0xa0   : > { %2017 = vmatpush1.bf16.msra.mxu1 %v3225_v45  ;;  %v350_v45 = vld [vmem:[%s3595_s28 + $0x350] sm:$0xff] }
  0xa1   : > { %2018 = vmatprep.subr.bf16.mxu1 %v3218_v47  ;;  %v478_v47 = vld [vmem:[%s3595_s28 + $0x750] sm:$0xff]  ;;  %v3154_v52 = vcombine.high %v350_v45, %v354_v46  ;;  %v3153_v59 = vcombine.low %v350_v45, %v354_v46  ;;  %v427_v45 = vld [vmem:[%s3595_s28 + $0x5b8] sm:$0xff] }
  0xa2   : > { %1978 = vmatpush1.bf16.msra.mxu0 %v3089_v53  ;;  %v3282_v53 = vcombine.high %v478_v47, %v482_v49  ;;  %v3281_v61 = vcombine.low %v478_v47, %v482_v49 }
  0xa3   : > { %1979 = vmatprep.subr.bf16.mxu0 %v3082_v55  ;;  %v346_v55 = vld [vmem:[%s3595_s28 + $0x330] sm:$0xff] }
  0xa4   : > { %2019 = vmatpush1.bf16.msra.mxu1 %v3217_v54  ;;  %v342_v54 = vld [vmem:[%s3595_s28 + $0x310] sm:$0xff] }
  0xa5   : > { %2020 = vmatprep.subr.bf16.mxu1 %v3210_v56  ;;  %v470_v56 = vld [vmem:[%s3595_s28 + $0x710] sm:$0xff]  ;;  %v3146_v62 = vcombine.high %v342_v54, %v346_v55  ;;  %v3145_v5 = vcombine.low %v342_v54, %v346_v55  ;;  %v419_v54 = vld [vmem:[%s3595_s28 + $0x578] sm:$0xff] }
  0xa6   : > { %1980 = vmatpush1.bf16.msra.mxu0 %v3081_v63  ;;  %v3274_v63 = vcombine.high %v470_v56, %v474_v58  ;;  %v3273_v6 = vcombine.low %v470_v56, %v474_v58 }
  0xa7   : > { %1981 = vmatprep.subr.bf16.mxu0 %v3074_v1  ;;  %v338_v1 = vld [vmem:[%s3595_s28 + $0x2f0] sm:$0xff] }
  0xa8   : > { %2021 = vmatpush1.bf16.msra.mxu1 %v3209_v0  ;;  %v334_v0 = vld [vmem:[%s3595_s28 + $0x2d0] sm:$0xff] }
  0xa9   : > { %2022 = vmatprep.subr.bf16.mxu1 %v3202_v2  ;;  %v462_v2 = vld [vmem:[%s3595_s28 + $0x6d0] sm:$0xff]  ;;  %v3138_v7 = vcombine.high %v334_v0, %v338_v1  ;;  %v3137_v14 = vcombine.low %v334_v0, %v338_v1  ;;  %v411_v0 = vld [vmem:[%s3595_s28 + $0x538] sm:$0xff] }
  0xaa   : > { %1982 = vmatpush1.bf16.msra.mxu0 %v3073_v8  ;;  %v3266_v8 = vcombine.high %v462_v2, %v466_v3  ;;  %v3265_v15 = vcombine.low %v462_v2, %v466_v3 }
  0xab   : > { %1983 = vmatprep.subr.bf16.mxu0 %v3066_v11  ;;  %v330_v11 = vld [vmem:[%s3595_s28 + $0x2b0] sm:$0xff] }
  0xac   : > { %2023 = vmatpush1.bf16.msra.mxu1 %v3201_v9  ;;  %v326_v9 = vld [vmem:[%s3595_s28 + $0x290] sm:$0xff] }
  0xad   : > { %2024 = vmatprep.subr.bf16.mxu1 %v3194_v12  ;;  %v454_v12 = vld [vmem:[%s3595_s28 + $0x690] sm:$0xff]  ;;  %v3130_v16 = vcombine.high %v326_v9, %v330_v11  ;;  %v3129_v23 = vcombine.low %v326_v9, %v330_v11 }
  0xae   : > { %1984 = vmatpush1.bf16.msra.mxu0 %v3065_v17  ;;  %v3258_v17 = vcombine.high %v454_v12, %v458_v13  ;;  %v3257_v24 = vcombine.low %v454_v12, %v458_v13  ;;  %v263_v13 = vld [vmem:[%s3595_s28 + $0x98] sm:$0xff] }
  0xaf   : > { %1985 = vmatprep.subr.bf16.mxu0 %v3058_v20  ;;  %v322_v20 = vld [vmem:[%s3595_s28 + $0x270] sm:$0xff] }
  0xb0   : > { %2025 = vmatpush1.bf16.msra.mxu1 %v3193_v18  ;;  %v318_v18 = vld [vmem:[%s3595_s28 + $0x250] sm:$0xff] }
  0xb1   : > { %2026 = vmatprep.subr.bf16.mxu1 %v3186_v21  ;;  %v446_v21 = vld [vmem:[%s3595_s28 + $0x650] sm:$0xff]  ;;  %v3122_v25 = vcombine.high %v318_v18, %v322_v20  ;;  %v3121_v30 = vcombine.low %v318_v18, %v322_v20 }
  0xb2   : > { %1986 = vmatpush1.bf16.msra.mxu0 %v3057_v26  ;;  %v3250_v26 = vcombine.high %v446_v21, %v450_v22  ;;  %v3249_v31 = vcombine.low %v446_v21, %v450_v22  ;;  %v255_v22 = vld [vmem:[%s3595_s28 + $0x58] sm:$0xff] }
  0xb3   : > { %1987 = vmatprep.subr.bf16.mxu0 %v3050_v60  ;;  %v314_v60 = vld [vmem:[%s3595_s28 + $0x230] sm:$0xff] }
  0xb4   : > { %2027 = vmatpush1.bf16.msra.mxu1 %v3185_v57  ;;  %v310_v57 = vld [vmem:[%s3595_s28 + $0x210] sm:$0xff] }
  0xb5   : > { %2028 = vmatprep.subr.bf16.mxu1 %v3178_v28  ;;  %v438_v28 = vld [vmem:[%s3595_s28 + $0x610] sm:$0xff]  ;;  %v3114_v32 = vcombine.high %v310_v57, %v314_v60  ;;  %v3113_v38 = vcombine.low %v310_v57, %v314_v60 }
  0xb6   : > { %1988 = vmatpush1.bf16.msra.mxu0 %v3049_v33  ;;  %v3242_v33 = vcombine.high %v438_v28, %v442_v29  ;;  %v3241_v39 = vcombine.low %v438_v28, %v442_v29  ;;  %v247_v29 = vld [vmem:[%s3595_s28 + $0x18] sm:$0xff] }
  0xb7   : > { %1989 = vmatprep.subr.bf16.mxu0 %v3170_v35  ;;  %v307_v35 = vld [vmem:[%s3595_s28 + $0x1f8] sm:$0xff] }
  0xb8   : > { %2029 = vmatpush1.bf16.msra.mxu1 %v3177_v34  ;;  %v303_v34 = vld [vmem:[%s3595_s28 + $0x1d8] sm:$0xff] }
  0xb9   : > { %2030 = vmatprep.subr.bf16.mxu1 %v3298_v36  ;;  %v431_v36 = vld [vmem:[%s3595_s28 + $0x5d8] sm:$0xff]  ;;  %v3108_v40 = vcombine.high %v303_v34, %v307_v35  ;;  %v3107_v46 = vcombine.low %v303_v34, %v307_v35 }
  0xba   : > { %1990 = vmatpush2.bf16.msra.mxu0 %v3169_v41  ;;  %v3236_v41 = vcombine.high %v431_v36, %v435_v37  ;;  %v3235_v47 = vcombine.low %v431_v36, %v435_v37  ;;  %v367_v37 = vld [vmem:[%s3595_s28 + $0x3d8] sm:$0xff] }
  0xbb   : > { %1991 = vmatprep.subr.bf16.mxu0 %v3162_v43  ;;  %v299_v43 = vld [vmem:[%s3595_s28 + $0x1b8] sm:$0xff] }
  0xbc   : > { %2031 = vmatpush2.bf16.msra.mxu1 %v3297_v42  ;;  %v295_v42 = vld [vmem:[%s3595_s28 + $0x198] sm:$0xff] }
  0xbd   : > { %2032 = vmatprep.subr.bf16.mxu1 %v3290_v44  ;;  %v423_v44 = vld [vmem:[%s3595_s28 + $0x598] sm:$0xff]  ;;  %v3100_v49 = vcombine.high %v295_v42, %v299_v43  ;;  %v3099_v55 = vcombine.low %v295_v42, %v299_v43 }
  0xbe   : > { %1992 = vmatpush2.bf16.msra.mxu0 %v3161_v50  ;;  %v3228_v50 = vcombine.high %v423_v44, %v427_v45  ;;  %v3227_v56 = vcombine.low %v423_v44, %v427_v45  ;;  %v359_v45 = vld [vmem:[%s3595_s28 + $0x398] sm:$0xff] }
  0xbf   : > { %1993 = vmatprep.subr.bf16.mxu0 %v3154_v52  ;;  %v291_v52 = vld [vmem:[%s3595_s28 + $0x178] sm:$0xff] }
  0xc0   : > { %2033 = vmatpush2.bf16.msra.mxu1 %v3289_v51  ;;  %v287_v51 = vld [vmem:[%s3595_s28 + $0x158] sm:$0xff] }
  0xc1   : > { %2034 = vmatprep.subr.bf16.mxu1 %v3282_v53  ;;  %v415_v53 = vld [vmem:[%s3595_s28 + $0x558] sm:$0xff]  ;;  %v3092_v58 = vcombine.high %v287_v51, %v291_v52  ;;  %v3091_v1 = vcombine.low %v287_v51, %v291_v52 }
  0xc2   : > { %1994 = vmatpush2.bf16.msra.mxu0 %v3153_v59  ;;  %v3220_v59 = vcombine.high %v415_v53, %v419_v54  ;;  %v3219_v2 = vcombine.low %v415_v53, %v419_v54  ;;  %v351_v54 = vld [vmem:[%s3595_s28 + $0x358] sm:$0xff] }
  0xc3   : > { %1995 = vmatprep.subr.bf16.mxu0 %v3146_v62  ;;  %v283_v62 = vld [vmem:[%s3595_s28 + $0x138] sm:$0xff] }
  0xc4   : > { %2035 = vmatpush2.bf16.msra.mxu1 %v3281_v61  ;;  %v279_v61 = vld [vmem:[%s3595_s28 + $0x118] sm:$0xff] }
  0xc5   : > { %2036 = vmatprep.subr.bf16.mxu1 %v3274_v63  ;;  %v407_v63 = vld [vmem:[%s3595_s28 + $0x518] sm:$0xff]  ;;  %v3084_v3 = vcombine.high %v279_v61, %v283_v62  ;;  %v3083_v9 = vcombine.low %v279_v61, %v283_v62 }
  0xc6   : > { %1996 = vmatpush2.bf16.msra.mxu0 %v3145_v5  ;;  %v3212_v5 = vcombine.high %v407_v63, %v411_v0 }
  0xc7   : > { %1997 = vmatprep.subr.bf16.mxu0 %v3138_v7  ;;  %v275_v7 = vld [vmem:[%s3595_s28 + $0xf8] sm:$0xff] }
  0xc8   : > { %2037 = vmatpush2.bf16.msra.mxu1 %v3273_v6  ;;  %v271_v6 = vld [vmem:[%s3595_s28 + $0xd8] sm:$0xff] }
  0xc9   : > { %2038 = vmatprep.subr.bf16.mxu1 %v3266_v8  ;;  %v399_v8 = vld [vmem:[%s3595_s28 + $0x4d8] sm:$0xff]  ;;  %v3076_v11 = vcombine.high %v271_v6, %v275_v7 }
  0xca   : > { %1998 = vmatpush2.bf16.msra.mxu0 %v3137_v14  ;;  %v267_v14 = vld [vmem:[%s3595_s28 + $0xb8] sm:$0xff] }
  0xcb   : > { %1999 = vmatprep.subr.bf16.mxu0 %v3130_v16  ;;  %v395_v16 = vld [vmem:[%s3595_s28 + $0x4b8] sm:$0xff]  ;;  %v3068_v20 = vcombine.high %v263_v13, %v267_v14 }
  0xcc   : > { %2039 = vmatpush2.bf16.msra.mxu1 %v3265_v15  ;;  %v391_v15 = vld [vmem:[%s3595_s28 + $0x498] sm:$0xff] }
  0xcd   : > { %2040 = vmatprep.subr.bf16.mxu1 %v3258_v17  ;;  %v3075_v17 = vcombine.low %v271_v6, %v275_v7  ;;  %v3196_v21 = vcombine.high %v391_v15, %v395_v16  ;;  %v3195_v57 = vcombine.low %v391_v15, %v395_v16  ;;  %v327_v16 = vld [vmem:[%s3595_s28 + $0x298] sm:$0xff] }
  0xce   : > { %2000 = vmatpush2.bf16.msra.mxu0 %v3129_v23  ;;  %v259_v23 = vld [vmem:[%s3595_s28 + $0x78] sm:$0xff] }
  0xcf   : > { %2001 = vmatprep.subr.bf16.mxu0 %v3122_v25  ;;  %v387_v25 = vld [vmem:[%s3595_s28 + $0x478] sm:$0xff]  ;;  %v3060_v60 = vcombine.high %v255_v22, %v259_v23 }
  0xd0   : > { %2041 = vmatpush2.bf16.msra.mxu1 %v3257_v24  ;;  %v383_v24 = vld [vmem:[%s3595_s28 + $0x458] sm:$0xff] }
  0xd1   : > { %2042 = vmatprep.subr.bf16.mxu1 %v3250_v26  ;;  %v3067_v26 = vcombine.low %v263_v13, %v267_v14  ;;  %v3188_v28 = vcombine.high %v383_v24, %v387_v25  ;;  %v3187_v34 = vcombine.low %v383_v24, %v387_v25  ;;  %v319_v25 = vld [vmem:[%s3595_s28 + $0x258] sm:$0xff] }
  0xd2   : > { %2002 = vmatpush2.bf16.msra.mxu0 %v3121_v30  ;;  %v251_v30 = vld [vmem:[%s3595_s28 + $0x38] sm:$0xff] }
  0xd3   : > { %2003 = vmatprep.subr.bf16.mxu0 %v3114_v32  ;;  %v379_v32 = vld [vmem:[%s3595_s28 + $0x438] sm:$0xff]  ;;  %v3052_v35 = vcombine.high %v247_v29, %v251_v30 }
  0xd4   : > { %2043 = vmatpush2.bf16.msra.mxu1 %v3249_v31  ;;  %v375_v31 = vld [vmem:[%s3595_s28 + $0x418] sm:$0xff] }
  0xd5   : > { %2044 = vmatprep.subr.bf16.mxu1 %v3242_v33  ;;  %v3059_v33 = vcombine.low %v255_v22, %v259_v23  ;;  %v3180_v36 = vcombine.high %v375_v31, %v379_v32  ;;  %v3179_v42 = vcombine.low %v375_v31, %v379_v32  ;;  %v311_v32 = vld [vmem:[%s3595_s28 + $0x218] sm:$0xff] }
  0xd6   : > { %2004 = vmatpush2.bf16.msra.mxu0 %v3113_v38  ;;  %v371_v38 = vld [vmem:[%s3595_s28 + $0x3f8] sm:$0xff] }
  0xd7   : > { %2055 = vmatprep.subr.bf16.mxu0 %v3108_v40  ;;  %v499_v40 = vld [vmem:[%s3595_s28 + $0x7f8] sm:$0xff]  ;;  %v3172_v43 = vcombine.high %v367_v37, %v371_v38 }
  0xd8   : > { %2045 = vmatpush2.bf16.msra.mxu1 %v3241_v39  ;;  %v495_v39 = vld [vmem:[%s3595_s28 + $0x7d8] sm:$0xff] }
  0xd9   : > { %2096 = vmatprep.subr.bf16.mxu1 %v3236_v41  ;;  %2006 = vmatmul.mubr.bf16.vlgmr.msra.gmra.mxu0 %v3691_v19  ;;  %v3051_v41 = vcombine.low %v247_v29, %v251_v30  ;;  %v3300_v44 = vcombine.high %v495_v39, %v499_v40  ;;  %v3299_v51 = vcombine.low %v495_v39, %v499_v40 }
  0xda   : > { %2056 = vmatpush1.bf16.msra.mxu0 %v3107_v46  ;;  %2087 = vmatprep.mubr.bf16.mxu0 %v3645_v4  ;;  %v403_v4 = vld [vmem:[%s3595_s28 + $0x4f8] sm:$0xff] }
  0xdb   : > { %2047 = vmatmul.mubr.bf16.vlgmr.msra.gmra.mxu1 %v3699_v27  ;;  %2057 = vmatprep.subr.bf16.mxu0 %v3100_v49  ;;  %v3204_v12 = vcombine.high %v399_v8, %v403_v4  ;;  %v3203_v18 = vcombine.low %v399_v8, %v403_v4  ;;  %v363_v46 = vld [vmem:[%s3595_s28 + $0x3b8] sm:$0xff] }
  0xdc   : > { %2097 = vmatpush1.bf16.msra.mxu1 %v3235_v47  ;;  %2128 = vmatprep.mubr.bf16.mxu1 %v3652_v10  ;;  %v3211_v10 = vcombine.low %v407_v63, %v411_v0  ;;  %v487_v47 = vld [vmem:[%s3595_s28 + $0x798] sm:$0xff]  ;;  %v3164_v52 = vcombine.high %v359_v45, %v363_v46 }
  0xdd   : > { %2098 = vmatprep.subr.bf16.mxu1 %v3228_v50  ;;  %v491_v49 = vld [vmem:[%s3595_s28 + $0x7b8] sm:$0xff]  ;;  %v3171_v50 = vcombine.low %v367_v37, %v371_v38 }
  0xde   : > { %2058 = vmatpush1.bf16.msra.mxu0 %v3099_v55  ;;  %v3292_v53 = vcombine.high %v487_v47, %v491_v49  ;;  %v355_v55 = vld [vmem:[%s3595_s28 + $0x378] sm:$0xff]  ;;  %v3291_v61 = vcombine.low %v487_v47, %v491_v49 }
  0xdf   : > { %2059 = vmatprep.subr.bf16.mxu0 %v3092_v58  ;;  %v483_v58 = vld [vmem:[%s3595_s28 + $0x778] sm:$0xff]  ;;  %v3156_v62 = vcombine.high %v351_v54, %v355_v55 }
  0xe0   : > { %2099 = vmatpush1.bf16.msra.mxu1 %v3227_v56  ;;  %v479_v56 = vld [vmem:[%s3595_s28 + $0x758] sm:$0xff] }
  0xe1   : > { %2100 = vmatprep.subr.bf16.mxu1 %v3220_v59  ;;  %v3163_v59 = vcombine.low %v359_v45, %v363_v46  ;;  %v3284_v63 = vcombine.high %v479_v56, %v483_v58  ;;  %v343_v0 = vld [vmem:[%s3595_s28 + $0x318] sm:$0xff]  ;;  %v3283_v6 = vcombine.low %v479_v56, %v483_v58 }
  0xe2   : > { %2060 = vmatpush1.bf16.msra.mxu0 %v3091_v1  ;;  %v347_v1 = vld [vmem:[%s3595_s28 + $0x338] sm:$0xff] }
  0xe3   : > { %2061 = vmatprep.subr.bf16.mxu0 %v3084_v3  ;;  %v475_v3 = vld [vmem:[%s3595_s28 + $0x738] sm:$0xff]  ;;  %v3148_v7 = vcombine.high %v343_v0, %v347_v1 }
  0xe4   : > { %2101 = vmatpush1.bf16.msra.mxu1 %v3219_v2  ;;  %v471_v2 = vld [vmem:[%s3595_s28 + $0x718] sm:$0xff] }
  0xe5   : > { %2102 = vmatprep.subr.bf16.mxu1 %v3212_v5  ;;  %v3155_v5 = vcombine.low %v351_v54, %v355_v55  ;;  %v3276_v8 = vcombine.high %v471_v2, %v475_v3  ;;  %v335_v4 = vld [vmem:[%s3595_s28 + $0x2d8] sm:$0xff]  ;;  %v3275_v13 = vcombine.low %v471_v2, %v475_v3  ;;  %v3543_v54 = vmov 1983009808  }
  0xe6   : > { %2062 = vmatpush1.bf16.msra.mxu0 %v3083_v9  ;;  %v339_v9 = vld [vmem:[%s3595_s28 + $0x2f8] sm:$0xff]  ;;  %v2148_v55 = vunpack.c.l.s4 %v3543_v54 }
  0xe7   : > { %2063 = vmatprep.subr.bf16.mxu0 %v3076_v11  ;;  %v467_v11 = vld [vmem:[%s3595_s28 + $0x6f8] sm:$0xff]  ;;  %v3140_v14 = vcombine.high %v335_v4, %v339_v9 }
  0xe8   : > { %2103 = vmatpush1.bf16.msra.mxu1 %v3211_v10  ;;  %v463_v10 = vld [vmem:[%s3595_s28 + $0x6d8] sm:$0xff]  ;;  %v2149_v56 = vunpack.c.0.s8 %v2148_v55 }
  0xe9   : > { %2104 = vmatprep.subr.bf16.mxu1 %v3204_v12  ;;  %v3147_v12 = vcombine.low %v343_v0, %v347_v1  ;;  %v3268_v15 = vcombine.high %v463_v10, %v467_v11  ;;  %v3267_v22 = vcombine.low %v463_v10, %v467_v11 }
  0xea   : > { %2064 = vmatpush1.bf16.msra.mxu0 %v3075_v17  ;;  %v331_v17 = vld [vmem:[%s3595_s28 + $0x2b8] sm:$0xff] }
  0xeb   : > { %2065 = vmatprep.subr.bf16.mxu0 %v3068_v20  ;;  %v459_v20 = vld [vmem:[%s3595_s28 + $0x6b8] sm:$0xff]  ;;  %v3132_v23 = vcombine.high %v327_v16, %v331_v17 }
  0xec   : > { %2105 = vmatpush1.bf16.msra.mxu1 %v3203_v18  ;;  %v455_v18 = vld [vmem:[%s3595_s28 + $0x698] sm:$0xff] }
  0xed   : > { %2106 = vmatprep.subr.bf16.mxu1 %v3196_v21  ;;  %v3139_v21 = vcombine.low %v335_v4, %v339_v9  ;;  %v3260_v24 = vcombine.high %v455_v18, %v459_v20  ;;  %v3259_v29 = vcombine.low %v455_v18, %v459_v20 }
  0xee   : > { %2066 = vmatpush1.bf16.msra.mxu0 %v3067_v26  ;;  %v323_v26 = vld [vmem:[%s3595_s28 + $0x278] sm:$0xff] }
  0xef   : > { %2067 = vmatprep.subr.bf16.mxu0 %v3060_v60  ;;  %v451_v60 = vld [vmem:[%s3595_s28 + $0x678] sm:$0xff]  ;;  %v3124_v30 = vcombine.high %v319_v25, %v323_v26 }
  0xf0   : > { %2107 = vmatpush1.bf16.msra.mxu1 %v3195_v57  ;;  %v447_v57 = vld [vmem:[%s3595_s28 + $0x658] sm:$0xff] }
  0xf1   : > { %2108 = vmatprep.subr.bf16.mxu1 %v3188_v28  ;;  %v3131_v28 = vcombine.low %v327_v16, %v331_v17  ;;  %v3252_v31 = vcombine.high %v447_v57, %v451_v60  ;;  %v3251_v37 = vcombine.low %v447_v57, %v451_v60 }
  0xf2   : > { %2068 = vmatpush1.bf16.msra.mxu0 %v3059_v33  ;;  %v315_v33 = vld [vmem:[%s3595_s28 + $0x238] sm:$0xff] }
  0xf3   : > { %2069 = vmatprep.subr.bf16.mxu0 %v3052_v35  ;;  %v443_v35 = vld [vmem:[%s3595_s28 + $0x638] sm:$0xff]  ;;  %v3116_v38 = vcombine.high %v311_v32, %v315_v33  ;;  %v3115_v40 = vcombine.low %v311_v32, %v315_v33 }
  0xf4   : > { %2109 = vmatpush1.bf16.msra.mxu1 %v3187_v34  ;;  %v439_v34 = vld [vmem:[%s3595_s28 + $0x618] sm:$0xff] }
  0xf5   : > { %2110 = vmatprep.subr.bf16.mxu1 %v3180_v36  ;;  %v3123_v36 = vcombine.low %v319_v25, %v323_v26  ;;  %v3244_v39 = vcombine.high %v439_v34, %v443_v35 }
  0xf6   : > { %2070 = vmatpush1.bf16.msra.mxu0 %v3051_v41  ;;  %v3243_v41 = vcombine.low %v439_v34, %v443_v35  ;;  %v242_v34 = vld [vmem:[#allocation2 + $0x8] sm:$0xff] }
  0xf7   : > { %2071 = vmatprep.subr.bf16.mxu0 %v3172_v43 }
  0xf8   : > { %2111 = vmatpush1.bf16.msra.mxu1 %v3179_v42 }
  0xf9   : > { %2112 = vmatprep.subr.bf16.mxu1 %v3300_v44 }
  0xfa   : > { %2072 = vmatpush2.bf16.msra.mxu0 %v3171_v50 }
  0xfb   : > { %2073 = vmatprep.subr.bf16.mxu0 %v3164_v52 }
  0xfc   : > { %2113 = vmatpush2.bf16.msra.mxu1 %v3299_v51 }
  0xfd   : > { %2114 = vmatprep.subr.bf16.mxu1 %v3292_v53 }
  0xfe   : > { %2074 = vmatpush2.bf16.msra.mxu0 %v3163_v59 }
  0xff   : > { %2075 = vmatprep.subr.bf16.mxu0 %v3156_v62 }
 0x100   : > { %2115 = vmatpush2.bf16.msra.mxu1 %v3291_v61 }
 0x101   : > { %2116 = vmatprep.subr.bf16.mxu1 %v3284_v63  ;;  %v3900_v63 = vsub.s32 %v2149_v56, %v3622_v48 }
 0x102   : > { %2076 = vmatpush2.bf16.msra.mxu0 %v3155_v5 }
 0x103   : > { %2077 = vmatprep.subr.bf16.mxu0 %v3148_v7 }
 0x104   : > { %2117 = vmatpush2.bf16.msra.mxu1 %v3283_v6 }
 0x105   : > { %2118 = vmatprep.subr.bf16.mxu1 %v3276_v8  ;;  %v241_v8 = vld [vmem:[#allocation2] sm:$0xff] }
 0x106   : > { %2078 = vmatpush2.bf16.msra.mxu0 %v3147_v12 }
 0x107   : > { %2079 = vmatprep.subr.bf16.mxu0 %v3140_v14 }
 0x108   : > { %2119 = vmatpush2.bf16.msra.mxu1 %v3275_v13 }
 0x109   : > { %2120 = vmatprep.subr.bf16.mxu1 %v3268_v15 }
 0x10a   : > { %2080 = vmatpush2.bf16.msra.mxu0 %v3139_v21 }
 0x10b   : > { %2081 = vmatprep.subr.bf16.mxu0 %v3132_v23 }
 0x10c   : > { %2121 = vmatpush2.bf16.msra.mxu1 %v3267_v22 }
 0x10d   : > { %2122 = vmatprep.subr.bf16.mxu1 %v3260_v24 }
 0x10e   : > { %2082 = vmatpush2.bf16.msra.mxu0 %v3131_v28 }
 0x10f   : > { %2083 = vmatprep.subr.bf16.mxu0 %v3124_v30 }
 0x110   : > { %2123 = vmatpush2.bf16.msra.mxu1 %v3259_v29 }
 0x111   : > { %2124 = vmatprep.subr.bf16.mxu1 %v3252_v31 }
 0x112   : > { %2084 = vmatpush2.bf16.msra.mxu0 %v3123_v36 }
 0x113   : > { %2085 = vmatprep.subr.bf16.mxu0 %v3116_v38 }
 0x114   : > { %2125 = vmatpush2.bf16.msra.mxu1 %v3251_v37 }
 0x115   : > { %2126 = vmatprep.subr.bf16.mxu1 %v3244_v39 }
 0x116   : > { %2086 = vmatpush2.bf16.msra.mxu0 %v3115_v40 }
 0x118   : > { %2127 = vmatpush2.bf16.msra.mxu1 %v3243_v41 }
 0x119   : > { %v1843_v42 = vpop.f32.mrf.mxu0  ;;  %2088 = vmatmul.mubr.bf16.vlgmr.msra.gmra.mxu0 %v3691_v19 }
 0x11b   : > { %v1884_v43 = vpop.f32.mrf.mxu1  ;;  %2129 = vmatmul.mubr.bf16.vlgmr.msra.gmra.mxu1 %v3699_v27  ;;  %v1845_v45 = vpop.f32.mrf.mxu0 }
 0x11c   : > { %v1885_v44 = vadd.f32 %v1884_v43, %v1843_v42 }
 0x11d   : > { %v1886_v46 = vpop.f32.mrf.mxu1  ;;  %v1847_v49 = vpop.f32.mrf.mxu0 }
 0x11e   : > { %v1887_v47 = vadd.f32 %v1886_v46, %v1845_v45 }
 0x11f   : > { %v1888_v50 = vpop.f32.mrf.mxu1  ;;  %v1848_v52 = vpop.f32.mrf.mxu0 }
 0x120   : > { %v2145_v51 = vcombine.low %v1885_v44, %v1887_v47 }
 0x121   : > { %v1889_v53 = vpop.f32.mrf.mxu1 }
 0x122   : > { %v2153_v6 = vrot.slane %v2145_v51, %v3900_v63 }
 0x159   : > { %v1925_v58 = vpop.f32.mrf.mxu0 }
 0x15b   : > { %v1966_v59 = vpop.f32.mrf.mxu1  ;;  %v1927_v62 = vpop.f32.mrf.mxu0 }
 0x15c   : > { %v1967_v61 = vadd.f32 %v1966_v59, %v1925_v58 }
 0x15d   : > { %v1968_v19 = vpop.f32.mrf.mxu1  ;;  %v1929_v0 = vpop.f32.mrf.mxu0 }
 0x15e   : > { %v1969_v27 = vadd.f32 %v1968_v19, %v1927_v62 }
 0x15f   : > { %v1970_v1 = vpop.f32.mrf.mxu1  ;;  %v1930_v3 = vpop.f32.mrf.mxu0 }
 0x160   : > { %v2146_v2 = vcombine.low %v1967_v61, %v1969_v27 }
 0x161   : > { %v1971_v5 = vpop.f32.mrf.mxu1 }
 0x162   : > { %v2160_v7 = vrot.slane %v2146_v2, %v3900_v63 }
 0x164   : > { %v2161_v4 = vcombine.low %v2153_v6, %v2160_v7 }
 0x166   : > { %v2181_v9 = vadd.f32 %v2161_v4, %v241_v8 }
 0x168   : > { %2183 = vst [vmem:[#allocation2] sm:$0xff] %v2181_v9 }
 0x199   : > { %v2007_v10 = vpop.f32.mrf.mxu0 }
 0x19b   : > { %v2048_v11 = vpop.f32.mrf.mxu1  ;;  %v2009_v13 = vpop.f32.mrf.mxu0 }
 0x19c   : > { %v2049_v12 = vadd.f32 %v2048_v11, %v2007_v10 }
 0x19d   : > { %v2050_v14 = vpop.f32.mrf.mxu1  ;;  %v2011_v16 = vpop.f32.mrf.mxu0 }
 0x19e   : > { %v2051_v15 = vadd.f32 %v2050_v14, %v2009_v13 }
 0x19f   : > { %v2052_v17 = vpop.f32.mrf.mxu1  ;;  %v2012_v20 = vpop.f32.mrf.mxu0 }
 0x1a0   : > { %v2162_v18 = vcombine.low %v2049_v12, %v2051_v15 }
 0x1a1   : > { %v2053_v21 = vpop.f32.mrf.mxu1 }
 0x1a2   : > { %v2170_v32 = vrot.slane %v2162_v18, %v3900_v63 }
 0x1d9   : > { %v2089_v22 = vpop.f32.mrf.mxu0 }
 0x1db   : > { %v2130_v23 = vpop.f32.mrf.mxu1  ;;  %v2091_v24 = vpop.f32.mrf.mxu0 }
 0x1dc   : > { %v2131_v26 = vadd.f32 %v2130_v23, %v2089_v22 }
 0x1dd   : > { %v2132_v25 = vpop.f32.mrf.mxu1  ;;  %v2093_v60 = vpop.f32.mrf.mxu0 }
 0x1de   : > { %v2133_v57 = vadd.f32 %v2132_v25, %v2091_v24 }
 0x1df   : > { %v2134_v28 = vpop.f32.mrf.mxu1  ;;  %v2094_v30 = vpop.f32.mrf.mxu0 }
 0x1e0   : > { %v2163_v29 = vcombine.low %v2131_v26, %v2133_v57 }
 0x1e1   : > { %v2135_v31 = vpop.f32.mrf.mxu1 }
 0x1e2   : > { %v2177_v33 = vrot.slane %v2163_v29, %v3900_v63 }
 0x1e4   : > { %v2178_v35 = vcombine.low %v2170_v32, %v2177_v33  ;;  %2188 = sbr.rel (%p3301_p6) target bundleno = 759 (0x2f7), region = 48 }
 0x1e6   : > { %v2182_v36 = vadd.f32 %v2178_v35, %v242_v34 }
 0x1e8   : > { %2184 = vst [vmem:[#allocation2 + $0x8] sm:$0xff] %v2182_v36 }
 0x1e9   : > { %v3469_v37 = vld [vmem:[%s4130_s3 + $0x78] sm:$0xff]   ;;  %v3473_v41 = vld [vmem:[%s4130_s3 + $0x70] sm:$0xff]   ;;  %v3477_v45 = vld [vmem:[%s4130_s3 + $0x68] sm:$0xff]   ;;  %v2195_v2 = vsub.s32 0, %v3622_v48  ;;  %v2199_v5 = vsub.s32 1, %v3622_v48  ;;  %v2203_v7 = vsub.s32 2, %v3622_v48 }
 0x1ea   : > { %v3470_v38 = vld [vmem:[%s4130_s3 + $0xf8] sm:$0xff]   ;;  %3370 = vmatprep.subr.bf16.mxu0 %v3469_v37  ;;  %v3474_v42 = vld [vmem:[%s4130_s3 + $0xf0] sm:$0xff]   ;;  %v3478_v46 = vld [vmem:[%s4130_s3 + $0xe8] sm:$0xff]   ;;  %v2207_v4 = vsub.s32 3, %v3622_v48  ;;  %v2211_v57 = vsub.s32 4, %v3622_v48  ;;  %v2215_v60 = vsub.s32 5, %v3622_v48 }
 0x1eb   : > { %v3471_v39 = vld [vmem:[%s4130_s3 + $0x38] sm:$0xff]   ;;  %3392 = vmatprep.subr.bf16.mxu1 %v3470_v38  ;;  %v3475_v43 = vld [vmem:[%s4130_s3 + $0x30] sm:$0xff]   ;;  %v3479_v47 = vld [vmem:[%s4130_s3 + $0x28] sm:$0xff]   ;;  %v2219_v30 = vsub.s32 6, %v3622_v48  ;;  %v2223_v31 = vsub.s32 7, %v3622_v48 }
 0x1ec   : > { %v3472_v40 = vld [vmem:[%s4130_s3 + $0xb8] sm:$0xff]   ;;  %3371 = vmatpush3.bf16.msra.mxu0 %v3471_v39  ;;  %v3476_v44 = vld [vmem:[%s4130_s3 + $0xb0] sm:$0xff]   ;;  %v3480_v49 = vld [vmem:[%s4130_s3 + $0xa8] sm:$0xff]  }
 0x1ed   : > { %3393 = vmatpush3.bf16.msra.mxu1 %v3472_v40  ;;  %3372 = vmatprep.subr.bf16.mxu0 %v3473_v41  ;;  %v3481_v50 = vld [vmem:[%s4130_s3 + $0x60] sm:$0xff]   ;;  %v3485_v54 = vld [vmem:[%s4130_s3 + $0x58] sm:$0xff]   ;;  %v3489_v59 = vld [vmem:[%s4130_s3 + $0x50] sm:$0xff]  }
 0x1ee   : > { %3394 = vmatprep.subr.bf16.mxu1 %v3474_v42  ;;  %v3482_v51 = vld [vmem:[%s4130_s3 + $0xe0] sm:$0xff]   ;;  %v3486_v55 = vld [vmem:[%s4130_s3 + $0xd8] sm:$0xff]   ;;  %v3490_v61 = vld [vmem:[%s4130_s3 + $0xd0] sm:$0xff]  }
 0x1ef   : > { %v3483_v52 = vld [vmem:[%s4130_s3 + $0x20] sm:$0xff]   ;;  %v3487_v56 = vld [vmem:[%s4130_s3 + $0x18] sm:$0xff]   ;;  %v3491_v62 = vld [vmem:[%s4130_s3 + $0x10] sm:$0xff]  }
 0x1f0   : > { %3373 = vmatpush3.bf16.msra.mxu0 %v3475_v43  ;;  %v3484_v53 = vld [vmem:[%s4130_s3 + $0xa0] sm:$0xff]   ;;  %v3488_v58 = vld [vmem:[%s4130_s3 + $0x98] sm:$0xff]   ;;  %v3492_v19 = vld [vmem:[%s4130_s3 + $0x90] sm:$0xff]  }
 0x1f1   : > { %3395 = vmatpush3.bf16.msra.mxu1 %v3476_v44  ;;  %3374 = vmatprep.subr.bf16.mxu0 %v3477_v45  ;;  %v3493_v27 = vld [vmem:[%s4130_s3 + $0x48] sm:$0xff]   ;;  %v3497_v6 = vld [vmem:[%s4130_s3 + $0x40] sm:$0xff]   ;;  %v3501_v16 = vld [vmem:[%s4130_s3 + $0x178] sm:$0xff]  }
 0x1f2   : > { %3396 = vmatprep.subr.bf16.mxu1 %v3478_v46  ;;  %v3494_v0 = vld [vmem:[%s4130_s3 + $0xc8] sm:$0xff]   ;;  %v3498_v8 = vld [vmem:[%s4130_s3 + $0xc0] sm:$0xff]   ;;  %v3502_v17 = vld [vmem:[%s4130_s3 + $0x1f8] sm:$0xff]  }
 0x1f3   : > { %v3495_v1 = vld [vmem:[%s4130_s3 + $0x8] sm:$0xff]   ;;  %v3499_v9 = vld [vmem:[%s4130_s3] sm:$0xff]   ;;  %v3503_v39 = vld [vmem:[%s4130_s3 + $0x138] sm:$0xff]  }
 0x1f4   : > { %3375 = vmatpush3.bf16.msra.mxu0 %v3479_v47  ;;  %v3496_v3 = vld [vmem:[%s4130_s3 + $0x88] sm:$0xff]   ;;  %v3500_v10 = vld [vmem:[%s4130_s3 + $0x80] sm:$0xff]   ;;  %v3505_v43 = vld [vmem:[%s4130_s3 + $0x170] sm:$0xff]  }
 0x1f5   : > { %3397 = vmatpush3.bf16.msra.mxu1 %v3480_v49  ;;  %3376 = vmatprep.subr.bf16.mxu0 %v3481_v50  ;;  %v2191_v11 = vld [vmem:[%s4129_s2] sm:$0xff]  ;;  %v3504_v44 = vld [vmem:[%s4130_s3 + $0x1b8] sm:$0xff]   ;;  %v3506_v45 = vld [vmem:[%s4130_s3 + $0x1f0] sm:$0xff]  }
 0x1f6   : > { %3398 = vmatprep.subr.bf16.mxu1 %v3482_v51  ;;  %v2196_v12 = vrot.slane %v2191_v11, %v2195_v2  ;;  %v2200_v13 = vrot.slane %v2191_v11, %v2199_v5  ;;  %v2204_v14 = vrot.slane %v2191_v11, %v2203_v7  ;;  %v2208_v15 = vrot.slane %v2191_v11, %v2207_v4  ;;  %v2189_v23 = vld [vmem:[#allocation2] sm:$0xff]  ;;  %v3507_v46 = vld [vmem:[%s4130_s3 + $0x130] sm:$0xff]   ;;  %v3509_v50 = vld [vmem:[%s4130_s3 + $0x168] sm:$0xff]  }
 0x1f7   : > { %v2212_v35 = vrot.slane %v2191_v11, %v2211_v57  ;;  %v2216_v36 = vrot.slane %v2191_v11, %v2215_v60  ;;  %v2220_v40 = vrot.slane %v2191_v11, %v2219_v30  ;;  %v2224_v41 = vrot.slane %v2191_v11, %v2223_v31  ;;  %v3508_v51 = vld [vmem:[%s4130_s3 + $0x1b0] sm:$0xff]   ;;  %v3519_v2 = vld [vmem:[%s4130_s3 + $0x118] sm:$0xff]   ;;  %v3525_v11 = vld [vmem:[%s4130_s3 + $0x148] sm:$0xff]  }
 0x1f8   : > { %3377 = vmatpush3.bf16.msra.mxu0 %v3483_v52  ;;  %v2225_v18 = vcombine.low %v2196_v12, %v2200_v13  ;;  %v2226_v20 = vcombine.low %v2204_v14, %v2208_v15  ;;  %v3510_v52 = vld [vmem:[%s4130_s3 + $0x1e8] sm:$0xff]   ;;  %v3521_v5 = vld [vmem:[%s4130_s3 + $0x150] sm:$0xff]  }
 0x1f9   : > { %3399 = vmatpush3.bf16.msra.mxu1 %v3484_v53  ;;  %3378 = vmatprep.subr.bf16.mxu0 %v3485_v54  ;;  %v2242_v47 = vcombine.low %v2212_v35, %v2216_v36  ;;  %v2243_v49 = vcombine.low %v2220_v40, %v2224_v41  ;;  %v3511_v53 = vld [vmem:[%s4130_s3 + $0x128] sm:$0xff]   ;;  %v3523_v4 = vld [vmem:[%s4130_s3 + $0x110] sm:$0xff]   ;;  %v3302_v35 = vld [vmem:[%s4131_s4] ss:$0 sm:$0xff] }
 0x1fa   : > { %3400 = vmatprep.subr.bf16.mxu1 %v3486_v55  ;;  %v2233_v21 = vrot.slane %v2225_v18, %v3900_v63  ;;  %v2240_v22 = vrot.slane %v2226_v20, %v3900_v63  ;;  %v3524_v12 = vld [vmem:[%s4130_s3 + $0x190] sm:$0xff]   ;;  %v3526_v15 = vld [vmem:[%s4130_s3 + $0x1c8] sm:$0xff]   ;;  %v3529_v20 = vld [vmem:[%s4130_s3 + $0x140] sm:$0xff]  }
 0x1fb   : > { %v2250_v54 = vrot.slane %v2242_v47, %v3900_v63  ;;  %v2257_v55 = vrot.slane %v2243_v49, %v3900_v63 }
 0x1fc   : > { %3379 = vmatpush3.bf16.msra.mxu0 %v3487_v56  ;;  %v2241_v24 = vcombine.low %v2233_v21, %v2240_v22  ;;  %v3513_v56 = vld [vmem:[%s4130_s3 + $0x160] sm:$0xff]  }
 0x1fd   : > { %3401 = vmatpush3.bf16.msra.mxu1 %v3488_v58  ;;  %3380 = vmatprep.subr.bf16.mxu0 %v3489_v59  ;;  %v3512_v58 = vld [vmem:[%s4130_s3 + $0x1a8] sm:$0xff]   ;;  %v3514_v59 = vld [vmem:[%s4130_s3 + $0x1e0] sm:$0xff]  }
 0x1fe   : > { %3402 = vmatprep.subr.bf16.mxu1 %v3490_v61  ;;  %v2261_v25 = vadd.f32 %v2241_v24, %v2189_v23  ;;  %v3515_v61 = vld [vmem:[%s4130_s3 + $0x120] sm:$0xff]  }
 0x1ff   : > { %v3530_v22 = vld [vmem:[%s4130_s3 + $0x1c0] sm:$0xff]  }
 0x200   : > { %3381 = vmatpush3.bf16.msra.mxu0 %v3491_v62  ;;  %v2263_v26 = vmax.f32 %v2261_v25, 0.0  ;;  %v2258_v62 = vcombine.low %v2250_v54, %v2257_v55  ;;  %v3531_v23 = vld [vmem:[%s4130_s3 + $0x100] sm:$0xff]  }
 0x201   : > { %3403 = vmatpush3.bf16.msra.mxu1 %v3492_v19  ;;  %3382 = vmatprep.subr.bf16.mxu0 %v3493_v27  ;;  %v3517_v19 = vld [vmem:[%s4130_s3 + $0x158] sm:$0xff]   ;;  %v3516_v27 = vld [vmem:[%s4130_s3 + $0x1a0] sm:$0xff]  }
 0x202   : > { %3404 = vmatprep.subr.bf16.mxu1 %v3494_v0  ;;  %v2274_v28 = vrot.slane %v2263_v26, %v3900_v63  ;;  %v2267_v29 = vcombine.high %v2263_v26, %v2263_v26  ;;  %v3518_v0 = vld [vmem:[%s4130_s3 + $0x1d8] sm:$0xff]   ;;  %v3532_v24 = vld [vmem:[%s4130_s3 + $0x180] sm:$0xff]  }
 0x204   : > { %3383 = vmatpush3.bf16.msra.mxu0 %v3495_v1  ;;  %v2282_v32 = vcombine.high %v2274_v28, %v2274_v28  ;;  %v2281_v33 = vrot.slane %v2267_v29, %v3900_v63  ;;  %v2309_v34 = vpack.c.bf16 %v2274_v28, %v2274_v28  ;;  %v2190_v1 = vld [vmem:[#allocation2 + $0x8] sm:$0xff] }
 0x205   : > { %3405 = vmatpush3.bf16.msra.mxu1 %v3496_v3  ;;  %3384 = vmatprep.subr.bf16.mxu0 %v3497_v6  ;;  %v2262_v3 = vadd.f32 %v2258_v62, %v2190_v1  ;;  %v3520_v6 = vld [vmem:[%s4130_s3 + $0x198] sm:$0xff]  }
 0x206   : > { %3406 = vmatprep.subr.bf16.mxu1 %v3498_v8  ;;  %v2310_v37 = vpack.c.bf16 %v2282_v32, %v2282_v32  ;;  %v2283_v38 = vcombine.high %v2281_v33, %v2281_v33  ;;  %v2311_v42 = vpack.c.bf16 %v2281_v33, %v2281_v33  ;;  %v3522_v8 = vld [vmem:[%s4130_s3 + $0x1d0] sm:$0xff]  }
 0x207   : > { %v2264_v7 = vmax.f32 %v2262_v3, 0.0 }
 0x208   : > { %3385 = vmatpush3.bf16.msra.mxu0 %v3499_v9  ;;  %2868 = vmatprep.mubr.bf16.mxu0 %v2310_v37  ;;  %v2312_v48 = vpack.c.bf16 %v2283_v38, %v2283_v38 }
 0x209   : > { %3407 = vmatpush3.bf16.msra.mxu1 %v3500_v10  ;;  %3414 = vmatprep.subr.bf16.mxu0 %v3501_v16  ;;  %v2291_v9 = vrot.slane %v2264_v7, %v3900_v63  ;;  %v2284_v10 = vcombine.high %v2264_v7, %v2264_v7  ;;  %v3527_v16 = vld [vmem:[%s4130_s3 + $0x108] sm:$0xff]  }
 0x20a   : > { %3436 = vmatprep.subr.bf16.mxu1 %v3502_v17  ;;  %2908 = vmatprep.mubr.bf16.mxu1 %v2312_v48 }
 0x20b   : > { %2869 = vmatmul.mubr.bf16.vlgmr.msra.gmra.mxu0 %v2309_v34  ;;  %v2299_v13 = vcombine.high %v2291_v9, %v2291_v9  ;;  %v2298_v14 = vrot.slane %v2284_v10, %v3900_v63  ;;  %v3528_v63 = vld [vmem:[%s4130_s3 + $0x188] sm:$0xff]   ;;  %v2313_v25 = vpack.c.bf16 %v2291_v9, %v2291_v9 }
 0x20c   : > { %3415 = vmatpush3.bf16.msra.mxu0 %v3503_v39  ;;  %2909 = vmatmul.mubr.bf16.vlgmr.msra.gmra.mxu1 %v2311_v42 }
 0x20d   : > { %3416 = vmatprep.subr.bf16.mxu0 %v3505_v43  ;;  %3437 = vmatpush3.bf16.msra.mxu1 %v3504_v44  ;;  %v2314_v17 = vpack.c.bf16 %v2299_v13, %v2299_v13  ;;  %v2300_v18 = vcombine.high %v2298_v14, %v2298_v14  ;;  %v2315_v26 = vpack.c.bf16 %v2298_v14, %v2298_v14 }
 0x20e   : > { %3438 = vmatprep.subr.bf16.mxu1 %v3506_v45 }
 0x20f   : > { %2948 = vmatprep.mubr.bf16.mxu0 %v2314_v17  ;;  %v2316_v21 = vpack.c.bf16 %v2300_v18, %v2300_v18 }
 0x210   : > { %3417 = vmatpush3.bf16.msra.mxu0 %v3507_v46 }
 0x211   : > { %3418 = vmatprep.subr.bf16.mxu0 %v3509_v50  ;;  %3439 = vmatpush3.bf16.msra.mxu1 %v3508_v51 }
 0x212   : > { %3440 = vmatprep.subr.bf16.mxu1 %v3510_v52  ;;  %2988 = vmatprep.mubr.bf16.mxu1 %v2316_v21 }
 0x214   : > { %3419 = vmatpush3.bf16.msra.mxu0 %v3511_v53 }
 0x215   : > { %3420 = vmatprep.subr.bf16.mxu0 %v3513_v56  ;;  %3441 = vmatpush3.bf16.msra.mxu1 %v3512_v58 }
 0x216   : > { %3442 = vmatprep.subr.bf16.mxu1 %v3514_v59 }
 0x218   : > { %3421 = vmatpush3.bf16.msra.mxu0 %v3515_v61 }
 0x219   : > { %3422 = vmatprep.subr.bf16.mxu0 %v3517_v19  ;;  %3443 = vmatpush3.bf16.msra.mxu1 %v3516_v27 }
 0x21a   : > { %3444 = vmatprep.subr.bf16.mxu1 %v3518_v0 }
 0x21c   : > { %3423 = vmatpush3.bf16.msra.mxu0 %v3519_v2 }
 0x21d   : > { %3424 = vmatprep.subr.bf16.mxu0 %v3521_v5  ;;  %3445 = vmatpush3.bf16.msra.mxu1 %v3520_v6 }
 0x21e   : > { %3446 = vmatprep.subr.bf16.mxu1 %v3522_v8 }
 0x220   : > { %3425 = vmatpush3.bf16.msra.mxu0 %v3523_v4 }
 0x221   : > { %3426 = vmatprep.subr.bf16.mxu0 %v3525_v11  ;;  %3447 = vmatpush3.bf16.msra.mxu1 %v3524_v12 }
 0x222   : > { %3448 = vmatprep.subr.bf16.mxu1 %v3526_v15 }
 0x224   : > { %3427 = vmatpush3.bf16.msra.mxu0 %v3527_v16 }
 0x225   : > { %3428 = vmatprep.subr.bf16.mxu0 %v3529_v20  ;;  %3449 = vmatpush3.bf16.msra.mxu1 %v3528_v63 }
 0x226   : > { %3450 = vmatprep.subr.bf16.mxu1 %v3530_v22 }
 0x228   : > { %3429 = vmatpush3.bf16.msra.mxu0 %v3531_v23 }
 0x229   : > { %3451 = vmatpush3.bf16.msra.mxu1 %v3532_v24 }
 0x22b   : > { %2949 = vmatmul.mubr.bf16.vlgmr.msra.gmra.mxu0 %v2313_v25 }
 0x22c   : > { %2989 = vmatmul.mubr.bf16.vlgmr.msra.gmra.mxu1 %v2315_v26 }
 0x2cb   : > { %v3386_v57 = vpop.f32.mrf.mxu0 }
 0x2cc   : > { %v3408_v60 = vpop.f32.mrf.mxu1 }
 0x2cd   : > { %v3387_v28 = vpop.f32.mrf.mxu0 }
 0x2ce   : > { %v3409_v29 = vpop.f32.mrf.mxu1  ;;  %v3388_v34 = vadd.f32 %v3387_v28, %v3386_v57 }
 0x2cf   : > { %v3389_v30 = vpop.f32.mrf.mxu0  ;;  %v3410_v37 = vadd.f32 %v3409_v29, %v3408_v60 }
 0x2d0   : > { %v3411_v31 = vpop.f32.mrf.mxu1  ;;  %v2871_v36 = vadd.f32 %v3388_v34, %v3302_v35 }
 0x2d1   : > { %v3390_v32 = vpop.f32.mrf.mxu0 }
 0x2d2   : > { %v3412_v33 = vpop.f32.mrf.mxu1  ;;  %v2911_v41 = vadd.f32 %v3410_v37, %v2871_v36 }
 0x2eb   : > { %v3430_v38 = vpop.f32.mrf.mxu0 }
 0x2ec   : > { %v3452_v39 = vpop.f32.mrf.mxu1 }
 0x2ed   : > { %v3431_v40 = vpop.f32.mrf.mxu0 }
 0x2ee   : > { %v3432_v42 = vadd.f32 %v3431_v40, %v3430_v38  ;;  %v3453_v43 = vpop.f32.mrf.mxu1 }
 0x2ef   : > { %v3433_v48 = vpop.f32.mrf.mxu0  ;;  %v3454_v45 = vadd.f32 %v3453_v43, %v3452_v39 }
 0x2f0   : > { %v2951_v44 = vadd.f32 %v3432_v42, %v2911_v41  ;;  %v3455_v46 = vpop.f32.mrf.mxu1 }
 0x2f1   : > { %v3434_v47 = vpop.f32.mrf.mxu0 }
 0x2f2   : > { %v2991_v49 = vadd.f32 %v3454_v45, %v2951_v44  ;;  %v3456_v50 = vpop.f32.mrf.mxu1 }
 0x2f4   : > { %v2996_v51 = vmax.f32 %v2991_v49, 0.0 }
 0x2f6   : > { %2997 = vst [vmem:[%s4132_s5] sm:$0x3] %v2996_v51 }
 0x2f7 PF: > { %s15_s18 = sadd.s32 1, %s3539_s18  }
 0x2f8   : > { %p12_p7 = scmp.ge.s32.totalorder %s15_s18, 6  }
 0x2fa   :  { %14 = sbr.rel (!%p12_p7) target bundleno = 1 (0x1), region = 77 }

</bundles_post_ra>
